<compile_context>
chip_gen: v5e
topology: v5e:2x2
jax: 0.10.0
libtpu: 0.0.40
codegen_flags: <defaults>
</compile_context>

<pallas_src>
import functools

import jax
import jax.numpy as jnp
import numpy as np
from jax import lax
from jax.experimental import pallas as pl
from jax.experimental.pallas import tpu as pltpu


def _round_up(x, m):
    return (x + m - 1) // m * m


def _phase_taps(phase, K, stride, pad):
    """Taps (input offset r, original kernel index k) for one output phase.

    ConvTranspose:  oh = stride*ih + k - pad.  For oh = stride*i + phase the
    contributing taps are k = phase + pad - stride*r with input index i + r.
    """
    taps = []
    for r in range(-K, K + 1):
        k = phase + pad - stride * r
        if 0 <= k < K:
            taps.append((r, k))
    return tuple(taps)


# --------------------------- fused conv-transpose kernel --------------------


def _conv_t_kernel(x_ref, w_ref, scale_ref, shift_ref,
                   out_ref, sum_ref, sq_ref,
                   xs_ref, acc_ref, *,
                   N, H, W, Cin, Cout, K, s, OHp, OWp, Hp, Wp,
                   pad_t, pad_l, Mflat, row_taps, col_taps, col_shifts,
                   apply_in_bn, apply_tanh):
    ph = pl.program_id(0)

    # ---- phase 0 only: build the bf16 zero-padded scratch once.  One copy
    #      per distinct column shift so later slab loads are 16-aligned. -----
    @pl.when(ph == 0)
    def _fill():
        xs_ref[...] = jnp.zeros_like(xs_ref)
        if apply_in_bn:
            # Hoisted: loaded & broadcast once, reused for every row.
            scale = jnp.broadcast_to(scale_ref[...], (W, Cin))
            shift = jnp.broadcast_to(shift_ref[...], (W, Cin))
        for n in range(N):
            for ih in range(H):
                row = x_ref[n, ih, :, :]                       # (W, Cin) f32
                if apply_in_bn:
                    row = jnp.maximum(row * scale + shift, 0.0)
                base = (n * Hp + pad_t + ih) * Wp + pad_l      # multiple of 16
                for vi, v in enumerate(col_shifts):
                    if v > 0:
                        if W - v <= 0:
                            continue
                        seg = row[v:, :]                       # drop first v
                    elif v == 0:
                        seg = row
                    else:                                      # prepend zeros
                        seg = jnp.concatenate(
                            [jnp.zeros((-v, Cin), row.dtype), row], axis=0)
                    xs_ref[vi, base:base + (W - v), :] = seg.astype(
                        xs_ref.dtype)

    # ---- per-phase taps: value-accumulated MXU matmuls, one acc store ------
    for a in range(s):
        for b in range(s):
            @pl.when(ph == a * s + b)
            def _taps(a=a, b=b):
                acc = None
                for (rih, kh) in row_taps[a]:
                    delta = (pad_t + rih) * Wp + pad_l         # multiple of 16
                    for (riw, kw) in col_taps[b]:
                        vi = col_shifts.index(riw)
                        lhs = xs_ref[vi, delta:delta + Mflat, :]   # bf16 slab
                        rhs = w_ref[kh * K + kw, :, :]             # (Cin,Cout)
                        part = jnp.dot(lhs, rhs,
                                       preferred_element_type=jnp.float32)
                        acc = part if acc is None else acc + part
                acc_ref[...] = acc

    # ---- common epilogue (emitted once): output copy + fused stats / tanh --
    compute_stats = not apply_tanh
    if compute_stats:
        ssum = jnp.zeros((OWp, Cout), jnp.float32)   # resident accumulators
        ssq = jnp.zeros((OWp, Cout), jnp.float32)
    for n in range(N):
        for i in range(OHp):
            base = (n * Hp + i) * Wp                 # multiple of 16
            vals = acc_ref[base:base + OWp, :]       # (OWp, Cout) f32
            if compute_stats:
                ssum = ssum + vals
                ssq = ssq + vals * vals
            if apply_tanh:
                vals = jnp.tanh(vals)
            out_ref[n, i, :, :] = vals
    if compute_stats:
        sum_ref[...] = jnp.sum(ssum, axis=0, keepdims=True)   # reduce once
        sq_ref[...] = jnp.sum(ssq, axis=0, keepdims=True)
    else:
        sum_ref[...] = jnp.zeros((1, Cout), jnp.float32)
        sq_ref[...] = jnp.zeros((1, Cout), jnp.float32)


def conv_transpose_layer(x, w_taps, scale, shift, *, stride, pad, K,
                         apply_in_bn, apply_tanh):
    """One fused ConvTranspose2d (+ folded input BN/ReLU, + stats or tanh).

    x       : (N, H, W, Cin) f32 raw activations of the previous layer.
    w_taps  : (K*K, Cin, Cout) bf16, w_taps[kh*K+kw] = w[:, :, kh, kw].
    scale/shift : (1, Cin) f32 folded BN affine applied to the *input*.
    Returns (out NHWC f32, per-channel sum, per-channel sum-of-squares).
    """
    N, H, W, Cin = x.shape
    Cout = w_taps.shape[-1]
    s = stride
    OH = (H - 1) * s - 2 * pad + K
    OW = (W - 1) * s - 2 * pad + K
    OHp, OWp = OH // s, OW // s

    row_taps = tuple(_phase_taps(a, K, s, pad) for a in range(s))
    col_taps = row_taps                          # square kernel / same stride
    shifts = sorted({r for taps in row_taps for (r, _) in taps})
    col_shifts = tuple(shifts)
    max_r, min_r = max(shifts), min(shifts)

    pad_t = max(0, -min_r)
    pad_l = 16                                   # 16-aligned bf16 stores/loads
    Hp = pad_t + max(OHp + max_r, H)
    Wp = _round_up(pad_l + max(OWp + max_r, W, W - min_r), 16)
    Mflat = N * Hp * Wp
    delta_max = (pad_t + max_r) * Wp + pad_l
    S_rows = _round_up(Mflat + delta_max, 16)
    n_var = len(col_shifts)

    kernel = functools.partial(
        _conv_t_kernel,
        N=N, H=H, W=W, Cin=Cin, Cout=Cout, K=K, s=s, OHp=OHp, OWp=OWp,
        Hp=Hp, Wp=Wp, pad_t=pad_t, pad_l=pad_l, Mflat=Mflat,
        row_taps=row_taps, col_taps=col_taps, col_shifts=col_shifts,
        apply_in_bn=apply_in_bn, apply_tanh=apply_tanh)

    out_ph, psum, psq = pl.pallas_call(
        kernel,
        out_shape=(
            jax.ShapeDtypeStruct((s * s, N, OHp, OWp, Cout), jnp.float32),
            jax.ShapeDtypeStruct((s * s, 1, Cout), jnp.float32),
            jax.ShapeDtypeStruct((s * s, 1, Cout), jnp.float32),
        ),
        grid_spec=pltpu.PrefetchScalarGridSpec(
            num_scalar_prefetch=0,
            grid=(s * s,),
            in_specs=[
                pl.BlockSpec((N, H, W, Cin), lambda ph: (0, 0, 0, 0)),
                pl.BlockSpec((K * K, Cin, Cout), lambda ph: (0, 0, 0)),
                pl.BlockSpec((1, Cin), lambda ph: (0, 0)),
                pl.BlockSpec((1, Cin), lambda ph: (0, 0)),
            ],
            out_specs=[
                pl.BlockSpec((None, N, OHp, OWp, Cout),
                             lambda ph: (ph, 0, 0, 0, 0)),
                pl.BlockSpec((None, 1, Cout), lambda ph: (ph, 0, 0)),
                pl.BlockSpec((None, 1, Cout), lambda ph: (ph, 0, 0)),
            ],
            scratch_shapes=[
                # bf16 padded input, one pre-shifted copy per column tap.
                pltpu.VMEM((n_var, S_rows, Cin), jnp.bfloat16),
                # f32 per-phase accumulator (written once per phase).
                pltpu.VMEM((Mflat, Cout), jnp.float32),
            ]),
        compiler_params=pltpu.CompilerParams(
            # "arbitrary": phase 0 fills the persistent scratch, later phases
            # read it -> must stay on one core / in order (v7x megacore safe).
            dimension_semantics=("arbitrary",),
            vmem_limit_bytes=32 * 1024 * 1024),
    )(x, w_taps, scale, shift)

    # Sub-pixel phases -> full-resolution NHWC (cheap interleave in XLA).
    out = out_ph.reshape(s, s, N, OHp, OWp, Cout)
    out = jnp.transpose(out, (2, 3, 0, 4, 1, 5)).reshape(N, OH, OW, Cout)
    sums = jnp.sum(psum[:, 0, :], axis=0)
    sqs = jnp.sum(psq[:, 0, :], axis=0)
    return out, sums, sqs


# ------------------------------- Generator ---------------------------------


def generator_forward(x_nchw, params, eps=1e-5):
    """DCGAN Generator forward; input/output NCHW like the PyTorch module."""
    convs, bns = params["convs"], params["bns"]
    x = jnp.transpose(x_nchw, (0, 2, 3, 1)).astype(jnp.float32)   # NHWC
    n_layers = len(convs)
    prev_stats = None
    for li, (w, s, p) in enumerate(convs):
        Cin, Cout, K, _ = w.shape
        # Per-tap weight matrix, bf16 for the MXU (tiny XLA transform).
        w_taps = jnp.transpose(w, (2, 3, 0, 1)).reshape(K * K, Cin, Cout)
        w_taps = w_taps.astype(jnp.bfloat16)
        if li == 0:
            scale = jnp.ones((1, Cin), jnp.float32)
            shift = jnp.zeros((1, Cin), jnp.float32)
            in_bn = False
        else:
            gamma, beta = bns[li - 1]
            sums, sqs, count = prev_stats
            mean = sums / count
            var = sqs / count - mean * mean      # biased (training-mode BN)
            inv = gamma * lax.rsqrt(var + eps)
            scale = inv.reshape(1, Cin)
            shift = (beta - mean * inv).reshape(1, Cin)
            in_bn = True
        is_last = li == n_layers - 1
        x, sums, sqs = conv_transpose_layer(
            x, w_taps, scale, shift, stride=s, pad=p, K=K,
            apply_in_bn=in_bn, apply_tanh=is_last)
        N, OH, OW, _ = x.shape
        prev_stats = (sums, sqs, float(N * OH * OW))
    return jnp.transpose(x, (0, 3, 1, 2))        # back to NCHW


# ------------------------------- Reference ---------------------------------


def generator_reference(x_nchw, params):
    x = x_nchw
    convs, bns = params["convs"], params["bns"]
    for i, (w, s, p) in enumerate(convs):
        K = w.shape[2]
        w_oihw = jnp.transpose(jnp.flip(w, (2, 3)), (1, 0, 2, 3))
        x = jax.lax.conv_general_dilated(
            x, w_oihw, window_strides=(1, 1),
            padding=[(K - 1 - p, K - 1 - p)] * 2, lhs_dilation=(s, s),
            dimension_numbers=("NCHW", "OIHW", "NCHW"),
            precision=jax.lax.Precision.HIGHEST)
        if i < len(convs) - 1:
            gamma, beta = bns[i]
            mean = jnp.mean(x, axis=(0, 2, 3), keepdims=True)
            var = jnp.mean((x - mean) ** 2, axis=(0, 2, 3), keepdims=True)
            x = (x - mean) * jax.lax.rsqrt(var + 1e-5)
            x = x * gamma[None, :, None, None] + beta[None, :, None, None]
            x = jnp.maximum(x, 0.0)
        else:
            x = jnp.tanh(x)
    return x


# --------------------------------- Main -------------------------------------

if __name__ == "__main__":
    # Small config consistent with the module: Generator(nz, ngf), x (B,nz,1,1)
    nz, ngf, batch, K = 32, 8, 2, 4
    chans = [nz, ngf * 8, ngf * 4, ngf * 2, ngf, 3]
    strides = [1, 2, 2, 2, 2]
    pads = [0, 1, 1, 1, 1]

    key = jax.random.PRNGKey(0)
    keys = jax.random.split(key, 3 * 5 + 1)
    ki = 0
    convs, bns = [], []
    for li in range(5):
        cin, cout = chans[li], chans[li + 1]
        w = 0.02 * jax.random.normal(keys[ki], (cin, cout, K, K), jnp.float32)
        ki += 1
        convs.append((w, strides[li], pads[li]))
        if li < 4:
            gamma = 1.0 + 0.02 * jax.random.normal(keys[ki], (cout,),
                                                   jnp.float32)
            ki += 1
            beta = 0.02 * jax.random.normal(keys[ki], (cout,), jnp.float32)
            ki += 1
            bns.append((gamma, beta))
    params = {"convs": convs, "bns": bns}

    x = jax.random.normal(keys[ki], (batch, nz, 1, 1), jnp.float32)

    out = jax.block_until_ready(generator_forward(x, params))
    assert out.shape == (batch, 3, 64, 64), out.shape

    ref = jax.block_until_ready(generator_reference(x, params))
    out_np, ref_np = np.asarray(out), np.asarray(ref)
    assert np.all(np.isfinite(out_np))
    err = float(np.max(np.abs(out_np - ref_np)))
    # bf16 MXU inputs (f32 accumulation) through 5 layers + batch-stat BN
    # bound the error; 5e-2 keeps a real correctness gate with some margin.
    assert err < 5e-2, err

    print("KERNEL_OK")
</pallas_src>

<mosaic_0001>
module attributes {stable_mosaic.version = 11 : i64} {
  func.func @_conv_t_kernel(%arg0: i32, %arg1: memref<2x1x1x32xf32, #tpu.memory_space<vmem>>, %arg2: memref<16x32x64xbf16, #tpu.memory_space<vmem>>, %arg3: memref<1x32xf32, #tpu.memory_space<vmem>>, %arg4: memref<1x32xf32, #tpu.memory_space<vmem>>, %arg5: memref<1x2x4x4x64xf32, #tpu.memory_space<vmem>>, %arg6: memref<1x1x64xf32, #tpu.memory_space<vmem>>, %arg7: memref<1x1x64xf32, #tpu.memory_space<vmem>>, %arg8: memref<4x560x32xbf16, #tpu.memory_space<vmem>>, %arg9: memref<448x64xf32, #tpu.memory_space<vmem>>) attributes {dimension_semantics = [#tpu.dimension_semantics<arbitrary>], iteration_bounds = array<i64: 1>, scalar_prefetch = 0 : i64, scratch_operands = 2 : i64, tpu.core_type = #tpu.core_type<tc>, window_params = [{pipeline_mode = #tpu.pipeline_mode<synchronous>, transform_indices = @transform_0, window_bounds = array<i64: 2, 1, 1, 32>}, {pipeline_mode = #tpu.pipeline_mode<synchronous>, transform_indices = @transform_1, window_bounds = array<i64: 16, 32, 64>}, {pipeline_mode = #tpu.pipeline_mode<synchronous>, transform_indices = @transform_2, window_bounds = array<i64: 1, 32>}, {pipeline_mode = #tpu.pipeline_mode<synchronous>, transform_indices = @transform_3, window_bounds = array<i64: 1, 32>}, {transform_indices = @transform_4, window_bounds = array<i64: 1, 2, 4, 4, 64>}, {transform_indices = @transform_5, window_bounds = array<i64: 1, 1, 64>}, {transform_indices = @transform_6, window_bounds = array<i64: 1, 1, 64>}]} {
    %c0_i32 = arith.constant 0 : i32
    %0 = arith.cmpi eq, %arg0, %c0_i32 : i32
    %1 = arith.extui %0 : i1 to i32
    %c0_i32_0 = arith.constant 0 : i32
    %2 = arith.cmpi ne, %1, %c0_i32_0 : i32
    scf.if %2 {
      %cst_57 = arith.constant 0.000000e+00 : bf16
      %74 = vector.broadcast %cst_57 : bf16 to vector<4x560x32xbf16>
      %c0_58 = arith.constant 0 : index
      %c0_59 = arith.constant 0 : index
      %c0_60 = arith.constant 0 : index
      %75 = vector.load %arg8[%c0_58, %c0_59, %c0_60] : memref<4x560x32xbf16, #tpu.memory_space<vmem>>, vector<4x560x32xbf16>
      tpu.vector_store %arg8[%c0_58, %c0_59, %c0_60], %74 {strides = array<i32>} : memref<4x560x32xbf16, #tpu.memory_space<vmem>>, vector<4x560x32xbf16>,
      %c0_61 = arith.constant 0 : index
      %c0_62 = arith.constant 0 : index
      %c0_63 = arith.constant 0 : index
      %c0_64 = arith.constant 0 : index
      %76 = vector.load %arg1[%c0_61, %c0_62, %c0_63, %c0_64] : memref<2x1x1x32xf32, #tpu.memory_space<vmem>>, vector<1x1x1x32xf32>
      %77 = vector.shape_cast %76 : vector<1x1x1x32xf32> to vector<1x32xf32>
      %cst_65 = arith.constant 0.000000e+00 : f32
      %78 = vector.broadcast %cst_65 : f32 to vector<3x32xf32>
      %79 = tpu.concatenate %78, %77 in 0 : vector<3x32xf32>, vector<1x32xf32> -> vector<4x32xf32>
      %80 = arith.truncf %79 : vector<4x32xf32> to vector<4x32xbf16>
      %c0_66 = arith.constant 0 : index
      %c112 = arith.constant 112 : index
      %c0_67 = arith.constant 0 : index
      %81 = vector.load %arg8[%c0_66, %c112, %c0_67] : memref<4x560x32xbf16, #tpu.memory_space<vmem>>, vector<1x4x32xbf16>
      %82 = vector.shape_cast %81 : vector<1x4x32xbf16> to vector<4x32xbf16>
      %83 = vector.shape_cast %80 : vector<4x32xbf16> to vector<1x4x32xbf16>
      tpu.vector_store %arg8[%c0_66, %c112, %c0_67], %83 {strides = array<i32>} : memref<4x560x32xbf16, #tpu.memory_space<vmem>>, vector<1x4x32xbf16>,
      %cst_68 = arith.constant 0.000000e+00 : f32
      %84 = vector.broadcast %cst_68 : f32 to vector<2x32xf32>
      %85 = tpu.concatenate %84, %77 in 0 : vector<2x32xf32>, vector<1x32xf32> -> vector<3x32xf32>
      %86 = arith.truncf %85 : vector<3x32xf32> to vector<3x32xbf16>
      %c1_69 = arith.constant 1 : index
      %c112_70 = arith.constant 112 : index
      %c0_71 = arith.constant 0 : index
      %87 = vector.load %arg8[%c1_69, %c112_70, %c0_71] : memref<4x560x32xbf16, #tpu.memory_space<vmem>>, vector<1x3x32xbf16>
      %88 = vector.shape_cast %87 : vector<1x3x32xbf16> to vector<3x32xbf16>
      %89 = vector.shape_cast %86 : vector<3x32xbf16> to vector<1x3x32xbf16>
      tpu.vector_store %arg8[%c1_69, %c112_70, %c0_71], %89 {strides = array<i32>} : memref<4x560x32xbf16, #tpu.memory_space<vmem>>, vector<1x3x32xbf16>,
      %cst_72 = arith.constant 0.000000e+00 : f32
      %90 = vector.broadcast %cst_72 : f32 to vector<1x32xf32>
      %91 = tpu.concatenate %90, %77 in 0 : vector<1x32xf32>, vector<1x32xf32> -> vector<2x32xf32>
      %92 = arith.truncf %91 : vector<2x32xf32> to vector<2x32xbf16>
      %c2_73 = arith.constant 2 : index
      %c112_74 = arith.constant 112 : index
      %c0_75 = arith.constant 0 : index
      %93 = vector.load %arg8[%c2_73, %c112_74, %c0_75] : memref<4x560x32xbf16, #tpu.memory_space<vmem>>, vector<1x2x32xbf16>
      %94 = vector.shape_cast %93 : vector<1x2x32xbf16> to vector<2x32xbf16>
      %95 = vector.shape_cast %92 : vector<2x32xbf16> to vector<1x2x32xbf16>
      tpu.vector_store %arg8[%c2_73, %c112_74, %c0_75], %95 {strides = array<i32>} : memref<4x560x32xbf16, #tpu.memory_space<vmem>>, vector<1x2x32xbf16>,
      %96 = arith.truncf %77 : vector<1x32xf32> to vector<1x32xbf16>
      %c3_76 = arith.constant 3 : index
      %c112_77 = arith.constant 112 : index
      %c0_78 = arith.constant 0 : index
      %97 = vector.load %arg8[%c3_76, %c112_77, %c0_78] : memref<4x560x32xbf16, #tpu.memory_space<vmem>>, vector<1x1x32xbf16>
      %98 = vector.shape_cast %97 : vector<1x1x32xbf16> to vector<1x32xbf16>
      %99 = vector.shape_cast %96 : vector<1x32xbf16> to vector<1x1x32xbf16>
      tpu.vector_store %arg8[%c3_76, %c112_77, %c0_78], %99 {strides = array<i32>} : memref<4x560x32xbf16, #tpu.memory_space<vmem>>, vector<1x1x32xbf16>,
      %c1_79 = arith.constant 1 : index
      %c0_80 = arith.constant 0 : index
      %c0_81 = arith.constant 0 : index
      %c0_82 = arith.constant 0 : index
      %100 = vector.load %arg1[%c1_79, %c0_80, %c0_81, %c0_82] : memref<2x1x1x32xf32, #tpu.memory_space<vmem>>, vector<1x1x1x32xf32>
      %101 = vector.shape_cast %100 : vector<1x1x1x32xf32> to vector<1x32xf32>
      %cst_83 = arith.constant 0.000000e+00 : f32
      %102 = vector.broadcast %cst_83 : f32 to vector<3x32xf32>
      %103 = tpu.concatenate %102, %101 in 0 : vector<3x32xf32>, vector<1x32xf32> -> vector<4x32xf32>
      %104 = arith.truncf %103 : vector<4x32xf32> to vector<4x32xbf16>
      %c0_84 = arith.constant 0 : index
      %c336 = arith.constant 336 : index
      %c0_85 = arith.constant 0 : index
      %105 = vector.load %arg8[%c0_84, %c336, %c0_85] : memref<4x560x32xbf16, #tpu.memory_space<vmem>>, vector<1x4x32xbf16>
      %106 = vector.shape_cast %105 : vector<1x4x32xbf16> to vector<4x32xbf16>
      %107 = vector.shape_cast %104 : vector<4x32xbf16> to vector<1x4x32xbf16>
      tpu.vector_store %arg8[%c0_84, %c336, %c0_85], %107 {strides = array<i32>} : memref<4x560x32xbf16, #tpu.memory_space<vmem>>, vector<1x4x32xbf16>,
      %cst_86 = arith.constant 0.000000e+00 : f32
      %108 = vector.broadcast %cst_86 : f32 to vector<2x32xf32>
      %109 = tpu.concatenate %108, %101 in 0 : vector<2x32xf32>, vector<1x32xf32> -> vector<3x32xf32>
      %110 = arith.truncf %109 : vector<3x32xf32> to vector<3x32xbf16>
      %c1_87 = arith.constant 1 : index
      %c336_88 = arith.constant 336 : index
      %c0_89 = arith.constant 0 : index
      %111 = vector.load %arg8[%c1_87, %c336_88, %c0_89] : memref<4x560x32xbf16, #tpu.memory_space<vmem>>, vector<1x3x32xbf16>
      %112 = vector.shape_cast %111 : vector<1x3x32xbf16> to vector<3x32xbf16>
      %113 = vector.shape_cast %110 : vector<3x32xbf16> to vector<1x3x32xbf16>
      tpu.vector_store %arg8[%c1_87, %c336_88, %c0_89], %113 {strides = array<i32>} : memref<4x560x32xbf16, #tpu.memory_space<vmem>>, vector<1x3x32xbf16>,
      %cst_90 = arith.constant 0.000000e+00 : f32
      %114 = vector.broadcast %cst_90 : f32 to vector<1x32xf32>
      %115 = tpu.concatenate %114, %101 in 0 : vector<1x32xf32>, vector<1x32xf32> -> vector<2x32xf32>
      %116 = arith.truncf %115 : vector<2x32xf32> to vector<2x32xbf16>
      %c2_91 = arith.constant 2 : index
      %c336_92 = arith.constant 336 : index
      %c0_93 = arith.constant 0 : index
      %117 = vector.load %arg8[%c2_91, %c336_92, %c0_93] : memref<4x560x32xbf16, #tpu.memory_space<vmem>>, vector<1x2x32xbf16>
      %118 = vector.shape_cast %117 : vector<1x2x32xbf16> to vector<2x32xbf16>
      %119 = vector.shape_cast %116 : vector<2x32xbf16> to vector<1x2x32xbf16>
      tpu.vector_store %arg8[%c2_91, %c336_92, %c0_93], %119 {strides = array<i32>} : memref<4x560x32xbf16, #tpu.memory_space<vmem>>, vector<1x2x32xbf16>,
      %120 = arith.truncf %101 : vector<1x32xf32> to vector<1x32xbf16>
      %c3_94 = arith.constant 3 : index
      %c336_95 = arith.constant 336 : index
      %c0_96 = arith.constant 0 : index
      %121 = vector.load %arg8[%c3_94, %c336_95, %c0_96] : memref<4x560x32xbf16, #tpu.memory_space<vmem>>, vector<1x1x32xbf16>
      %122 = vector.shape_cast %121 : vector<1x1x32xbf16> to vector<1x32xbf16>
      %123 = vector.shape_cast %120 : vector<1x32xbf16> to vector<1x1x32xbf16>
      tpu.vector_store %arg8[%c3_94, %c336_95, %c0_96], %123 {strides = array<i32>} : memref<4x560x32xbf16, #tpu.memory_space<vmem>>, vector<1x1x32xbf16>,
    } else {
    }
    %c0_i32_1 = arith.constant 0 : i32
    %3 = arith.cmpi eq, %arg0, %c0_i32_1 : i32
    %4 = arith.extui %3 : i1 to i32
    %c0_i32_2 = arith.constant 0 : i32
    %5 = arith.cmpi ne, %4, %c0_i32_2 : i32
    scf.if %5 {
      %c0_57 = arith.constant 0 : index
      %c16 = arith.constant 16 : index
      %c0_58 = arith.constant 0 : index
      %74 = vector.load %arg8[%c0_57, %c16, %c0_58] : memref<4x560x32xbf16, #tpu.memory_space<vmem>>, vector<1x448x32xbf16>
      %75 = vector.shape_cast %74 : vector<1x448x32xbf16> to vector<448x32xbf16>
      %c15 = arith.constant 15 : index
      %c0_59 = arith.constant 0 : index
      %c0_60 = arith.constant 0 : index
      %76 = vector.load %arg2[%c15, %c0_59, %c0_60] : memref<16x32x64xbf16, #tpu.memory_space<vmem>>, vector<1x32x64xbf16>
      %77 = vector.shape_cast %76 : vector<1x32x64xbf16> to vector<32x64xbf16>
      %cst_61 = arith.constant dense<0.000000e+00> : vector<448x64xf32>
      %78 = tpu.matmul %75, %77, %cst_61 {dimension_numbers = #tpu.dot_dimension_numbers<[1], [0], [0], [1], [0, 0, 1, 1], [], []>} : vector<448x32xbf16>, vector<32x64xbf16>, vector<448x64xf32> -> vector<448x64xf32>
      %c1_62 = arith.constant 1 : index
      %c16_63 = arith.constant 16 : index
      %c0_64 = arith.constant 0 : index
      %79 = vector.load %arg8[%c1_62, %c16_63, %c0_64] : memref<4x560x32xbf16, #tpu.memory_space<vmem>>, vector<1x448x32xbf16>
      %80 = vector.shape_cast %79 : vector<1x448x32xbf16> to vector<448x32xbf16>
      %c14 = arith.constant 14 : index
      %c0_65 = arith.constant 0 : index
      %c0_66 = arith.constant 0 : index
      %81 = vector.load %arg2[%c14, %c0_65, %c0_66] : memref<16x32x64xbf16, #tpu.memory_space<vmem>>, vector<1x32x64xbf16>
      %82 = vector.shape_cast %81 : vector<1x32x64xbf16> to vector<32x64xbf16>
      %cst_67 = arith.constant dense<0.000000e+00> : vector<448x64xf32>
      %83 = tpu.matmul %80, %82, %cst_67 {dimension_numbers = #tpu.dot_dimension_numbers<[1], [0], [0], [1], [0, 0, 1, 1], [], []>} : vector<448x32xbf16>, vector<32x64xbf16>, vector<448x64xf32> -> vector<448x64xf32>
      %84 = arith.addf %78, %83 : vector<448x64xf32>
      %c2_68 = arith.constant 2 : index
      %c16_69 = arith.constant 16 : index
      %c0_70 = arith.constant 0 : index
      %85 = vector.load %arg8[%c2_68, %c16_69, %c0_70] : memref<4x560x32xbf16, #tpu.memory_space<vmem>>, vector<1x448x32xbf16>
      %86 = vector.shape_cast %85 : vector<1x448x32xbf16> to vector<448x32xbf16>
      %c13 = arith.constant 13 : index
      %c0_71 = arith.constant 0 : index
      %c0_72 = arith.constant 0 : index
      %87 = vector.load %arg2[%c13, %c0_71, %c0_72] : memref<16x32x64xbf16, #tpu.memory_space<vmem>>, vector<1x32x64xbf16>
      %88 = vector.shape_cast %87 : vector<1x32x64xbf16> to vector<32x64xbf16>
      %cst_73 = arith.constant dense<0.000000e+00> : vector<448x64xf32>
      %89 = tpu.matmul %86, %88, %cst_73 {dimension_numbers = #tpu.dot_dimension_numbers<[1], [0], [0], [1], [0, 0, 1, 1], [], []>} : vector<448x32xbf16>, vector<32x64xbf16>, vector<448x64xf32> -> vector<448x64xf32>
      %90 = arith.addf %84, %89 : vector<448x64xf32>
      %c3_74 = arith.constant 3 : index
      %c16_75 = arith.constant 16 : index
      %c0_76 = arith.constant 0 : index
      %91 = vector.load %arg8[%c3_74, %c16_75, %c0_76] : memref<4x560x32xbf16, #tpu.memory_space<vmem>>, vector<1x448x32xbf16>
      %92 = vector.shape_cast %91 : vector<1x448x32xbf16> to vector<448x32xbf16>
      %c12 = arith.constant 12 : index
      %c0_77 = arith.constant 0 : index
      %c0_78 = arith.constant 0 : index
      %93 = vector.load %arg2[%c12, %c0_77, %c0_78] : memref<16x32x64xbf16, #tpu.memory_space<vmem>>, vector<1x32x64xbf16>
      %94 = vector.shape_cast %93 : vector<1x32x64xbf16> to vector<32x64xbf16>
      %cst_79 = arith.constant dense<0.000000e+00> : vector<448x64xf32>
      %95 = tpu.matmul %92, %94, %cst_79 {dimension_numbers = #tpu.dot_dimension_numbers<[1], [0], [0], [1], [0, 0, 1, 1], [], []>} : vector<448x32xbf16>, vector<32x64xbf16>, vector<448x64xf32> -> vector<448x64xf32>
      %96 = arith.addf %90, %95 : vector<448x64xf32>
      %c0_80 = arith.constant 0 : index
      %c48 = arith.constant 48 : index
      %c0_81 = arith.constant 0 : index
      %97 = vector.load %arg8[%c0_80, %c48, %c0_81] : memref<4x560x32xbf16, #tpu.memory_space<vmem>>, vector<1x448x32xbf16>
      %98 = vector.shape_cast %97 : vector<1x448x32xbf16> to vector<448x32xbf16>
      %c11 = arith.constant 11 : index
      %c0_82 = arith.constant 0 : index
      %c0_83 = arith.constant 0 : index
      %99 = vector.load %arg2[%c11, %c0_82, %c0_83] : memref<16x32x64xbf16, #tpu.memory_space<vmem>>, vector<1x32x64xbf16>
      %100 = vector.shape_cast %99 : vector<1x32x64xbf16> to vector<32x64xbf16>
      %cst_84 = arith.constant dense<0.000000e+00> : vector<448x64xf32>
      %101 = tpu.matmul %98, %100, %cst_84 {dimension_numbers = #tpu.dot_dimension_numbers<[1], [0], [0], [1], [0, 0, 1, 1], [], []>} : vector<448x32xbf16>, vector<32x64xbf16>, vector<448x64xf32> -> vector<448x64xf32>
      %102 = arith.addf %96, %101 : vector<448x64xf32>
      %c1_85 = arith.constant 1 : index
      %c48_86 = arith.constant 48 : index
      %c0_87 = arith.constant 0 : index
      %103 = vector.load %arg8[%c1_85, %c48_86, %c0_87] : memref<4x560x32xbf16, #tpu.memory_space<vmem>>, vector<1x448x32xbf16>
      %104 = vector.shape_cast %103 : vector<1x448x32xbf16> to vector<448x32xbf16>
      %c10 = arith.constant 10 : index
      %c0_88 = arith.constant 0 : index
      %c0_89 = arith.constant 0 : index
      %105 = vector.load %arg2[%c10, %c0_88, %c0_89] : memref<16x32x64xbf16, #tpu.memory_space<vmem>>, vector<1x32x64xbf16>
      %106 = vector.shape_cast %105 : vector<1x32x64xbf16> to vector<32x64xbf16>
      %cst_90 = arith.constant dense<0.000000e+00> : vector<448x64xf32>
      %107 = tpu.matmul %104, %106, %cst_90 {dimension_numbers = #tpu.dot_dimension_numbers<[1], [0], [0], [1], [0, 0, 1, 1], [], []>} : vector<448x32xbf16>, vector<32x64xbf16>, vector<448x64xf32> -> vector<448x64xf32>
      %108 = arith.addf %102, %107 : vector<448x64xf32>
      %c2_91 = arith.constant 2 : index
      %c48_92 = arith.constant 48 : index
      %c0_93 = arith.constant 0 : index
      %109 = vector.load %arg8[%c2_91, %c48_92, %c0_93] : memref<4x560x32xbf16, #tpu.memory_space<vmem>>, vector<1x448x32xbf16>
      %110 = vector.shape_cast %109 : vector<1x448x32xbf16> to vector<448x32xbf16>
      %c9 = arith.constant 9 : index
      %c0_94 = arith.constant 0 : index
      %c0_95 = arith.constant 0 : index
      %111 = vector.load %arg2[%c9, %c0_94, %c0_95] : memref<16x32x64xbf16, #tpu.memory_space<vmem>>, vector<1x32x64xbf16>
      %112 = vector.shape_cast %111 : vector<1x32x64xbf16> to vector<32x64xbf16>
      %cst_96 = arith.constant dense<0.000000e+00> : vector<448x64xf32>
      %113 = tpu.matmul %110, %112, %cst_96 {dimension_numbers = #tpu.dot_dimension_numbers<[1], [0], [0], [1], [0, 0, 1, 1], [], []>} : vector<448x32xbf16>, vector<32x64xbf16>, vector<448x64xf32> -> vector<448x64xf32>
      %114 = arith.addf %108, %113 : vector<448x64xf32>
      %c3_97 = arith.constant 3 : index
      %c48_98 = arith.constant 48 : index
      %c0_99 = arith.constant 0 : index
      %115 = vector.load %arg8[%c3_97, %c48_98, %c0_99] : memref<4x560x32xbf16, #tpu.memory_space<vmem>>, vector<1x448x32xbf16>
      %116 = vector.shape_cast %115 : vector<1x448x32xbf16> to vector<448x32xbf16>
      %c8 = arith.constant 8 : index
      %c0_100 = arith.constant 0 : index
      %c0_101 = arith.constant 0 : index
      %117 = vector.load %arg2[%c8, %c0_100, %c0_101] : memref<16x32x64xbf16, #tpu.memory_space<vmem>>, vector<1x32x64xbf16>
      %118 = vector.shape_cast %117 : vector<1x32x64xbf16> to vector<32x64xbf16>
      %cst_102 = arith.constant dense<0.000000e+00> : vector<448x64xf32>
      %119 = tpu.matmul %116, %118, %cst_102 {dimension_numbers = #tpu.dot_dimension_numbers<[1], [0], [0], [1], [0, 0, 1, 1], [], []>} : vector<448x32xbf16>, vector<32x64xbf16>, vector<448x64xf32> -> vector<448x64xf32>
      %120 = arith.addf %114, %119 : vector<448x64xf32>
      %c0_103 = arith.constant 0 : index
      %c80 = arith.constant 80 : index
      %c0_104 = arith.constant 0 : index
      %121 = vector.load %arg8[%c0_103, %c80, %c0_104] : memref<4x560x32xbf16, #tpu.memory_space<vmem>>, vector<1x448x32xbf16>
      %122 = vector.shape_cast %121 : vector<1x448x32xbf16> to vector<448x32xbf16>
      %c7 = arith.constant 7 : index
      %c0_105 = arith.constant 0 : index
      %c0_106 = arith.constant 0 : index
      %123 = vector.load %arg2[%c7, %c0_105, %c0_106] : memref<16x32x64xbf16, #tpu.memory_space<vmem>>, vector<1x32x64xbf16>
      %124 = vector.shape_cast %123 : vector<1x32x64xbf16> to vector<32x64xbf16>
      %cst_107 = arith.constant dense<0.000000e+00> : vector<448x64xf32>
      %125 = tpu.matmul %122, %124, %cst_107 {dimension_numbers = #tpu.dot_dimension_numbers<[1], [0], [0], [1], [0, 0, 1, 1], [], []>} : vector<448x32xbf16>, vector<32x64xbf16>, vector<448x64xf32> -> vector<448x64xf32>
      %126 = arith.addf %120, %125 : vector<448x64xf32>
      %c1_108 = arith.constant 1 : index
      %c80_109 = arith.constant 80 : index
      %c0_110 = arith.constant 0 : index
      %127 = vector.load %arg8[%c1_108, %c80_109, %c0_110] : memref<4x560x32xbf16, #tpu.memory_space<vmem>>, vector<1x448x32xbf16>
      %128 = vector.shape_cast %127 : vector<1x448x32xbf16> to vector<448x32xbf16>
      %c6 = arith.constant 6 : index
      %c0_111 = arith.constant 0 : index
      %c0_112 = arith.constant 0 : index
      %129 = vector.load %arg2[%c6, %c0_111, %c0_112] : memref<16x32x64xbf16, #tpu.memory_space<vmem>>, vector<1x32x64xbf16>
      %130 = vector.shape_cast %129 : vector<1x32x64xbf16> to vector<32x64xbf16>
      %cst_113 = arith.constant dense<0.000000e+00> : vector<448x64xf32>
      %131 = tpu.matmul %128, %130, %cst_113 {dimension_numbers = #tpu.dot_dimension_numbers<[1], [0], [0], [1], [0, 0, 1, 1], [], []>} : vector<448x32xbf16>, vector<32x64xbf16>, vector<448x64xf32> -> vector<448x64xf32>
      %132 = arith.addf %126, %131 : vector<448x64xf32>
      %c2_114 = arith.constant 2 : index
      %c80_115 = arith.constant 80 : index
      %c0_116 = arith.constant 0 : index
      %133 = vector.load %arg8[%c2_114, %c80_115, %c0_116] : memref<4x560x32xbf16, #tpu.memory_space<vmem>>, vector<1x448x32xbf16>
      %134 = vector.shape_cast %133 : vector<1x448x32xbf16> to vector<448x32xbf16>
      %c5 = arith.constant 5 : index
      %c0_117 = arith.constant 0 : index
      %c0_118 = arith.constant 0 : index
      %135 = vector.load %arg2[%c5, %c0_117, %c0_118] : memref<16x32x64xbf16, #tpu.memory_space<vmem>>, vector<1x32x64xbf16>
      %136 = vector.shape_cast %135 : vector<1x32x64xbf16> to vector<32x64xbf16>
      %cst_119 = arith.constant dense<0.000000e+00> : vector<448x64xf32>
      %137 = tpu.matmul %134, %136, %cst_119 {dimension_numbers = #tpu.dot_dimension_numbers<[1], [0], [0], [1], [0, 0, 1, 1], [], []>} : vector<448x32xbf16>, vector<32x64xbf16>, vector<448x64xf32> -> vector<448x64xf32>
      %138 = arith.addf %132, %137 : vector<448x64xf32>
      %c3_120 = arith.constant 3 : index
      %c80_121 = arith.constant 80 : index
      %c0_122 = arith.constant 0 : index
      %139 = vector.load %arg8[%c3_120, %c80_121, %c0_122] : memref<4x560x32xbf16, #tpu.memory_space<vmem>>, vector<1x448x32xbf16>
      %140 = vector.shape_cast %139 : vector<1x448x32xbf16> to vector<448x32xbf16>
      %c4 = arith.constant 4 : index
      %c0_123 = arith.constant 0 : index
      %c0_124 = arith.constant 0 : index
      %141 = vector.load %arg2[%c4, %c0_123, %c0_124] : memref<16x32x64xbf16, #tpu.memory_space<vmem>>, vector<1x32x64xbf16>
      %142 = vector.shape_cast %141 : vector<1x32x64xbf16> to vector<32x64xbf16>
      %cst_125 = arith.constant dense<0.000000e+00> : vector<448x64xf32>
      %143 = tpu.matmul %140, %142, %cst_125 {dimension_numbers = #tpu.dot_dimension_numbers<[1], [0], [0], [1], [0, 0, 1, 1], [], []>} : vector<448x32xbf16>, vector<32x64xbf16>, vector<448x64xf32> -> vector<448x64xf32>
      %144 = arith.addf %138, %143 : vector<448x64xf32>
      %c0_126 = arith.constant 0 : index
      %c112 = arith.constant 112 : index
      %c0_127 = arith.constant 0 : index
      %145 = vector.load %arg8[%c0_126, %c112, %c0_127] : memref<4x560x32xbf16, #tpu.memory_space<vmem>>, vector<1x448x32xbf16>
      %146 = vector.shape_cast %145 : vector<1x448x32xbf16> to vector<448x32xbf16>
      %c3_128 = arith.constant 3 : index
      %c0_129 = arith.constant 0 : index
      %c0_130 = arith.constant 0 : index
      %147 = vector.load %arg2[%c3_128, %c0_129, %c0_130] : memref<16x32x64xbf16, #tpu.memory_space<vmem>>, vector<1x32x64xbf16>
      %148 = vector.shape_cast %147 : vector<1x32x64xbf16> to vector<32x64xbf16>
      %cst_131 = arith.constant dense<0.000000e+00> : vector<448x64xf32>
      %149 = tpu.matmul %146, %148, %cst_131 {dimension_numbers = #tpu.dot_dimension_numbers<[1], [0], [0], [1], [0, 0, 1, 1], [], []>} : vector<448x32xbf16>, vector<32x64xbf16>, vector<448x64xf32> -> vector<448x64xf32>
      %150 = arith.addf %144, %149 : vector<448x64xf32>
      %c1_132 = arith.constant 1 : index
      %c112_133 = arith.constant 112 : index
      %c0_134 = arith.constant 0 : index
      %151 = vector.load %arg8[%c1_132, %c112_133, %c0_134] : memref<4x560x32xbf16, #tpu.memory_space<vmem>>, vector<1x448x32xbf16>
      %152 = vector.shape_cast %151 : vector<1x448x32xbf16> to vector<448x32xbf16>
      %c2_135 = arith.constant 2 : index
      %c0_136 = arith.constant 0 : index
      %c0_137 = arith.constant 0 : index
      %153 = vector.load %arg2[%c2_135, %c0_136, %c0_137] : memref<16x32x64xbf16, #tpu.memory_space<vmem>>, vector<1x32x64xbf16>
      %154 = vector.shape_cast %153 : vector<1x32x64xbf16> to vector<32x64xbf16>
      %cst_138 = arith.constant dense<0.000000e+00> : vector<448x64xf32>
      %155 = tpu.matmul %152, %154, %cst_138 {dimension_numbers = #tpu.dot_dimension_numbers<[1], [0], [0], [1], [0, 0, 1, 1], [], []>} : vector<448x32xbf16>, vector<32x64xbf16>, vector<448x64xf32> -> vector<448x64xf32>
      %156 = arith.addf %150, %155 : vector<448x64xf32>
      %c2_139 = arith.constant 2 : index
      %c112_140 = arith.constant 112 : index
      %c0_141 = arith.constant 0 : index
      %157 = vector.load %arg8[%c2_139, %c112_140, %c0_141] : memref<4x560x32xbf16, #tpu.memory_space<vmem>>, vector<1x448x32xbf16>
      %158 = vector.shape_cast %157 : vector<1x448x32xbf16> to vector<448x32xbf16>
      %c1_142 = arith.constant 1 : index
      %c0_143 = arith.constant 0 : index
      %c0_144 = arith.constant 0 : index
      %159 = vector.load %arg2[%c1_142, %c0_143, %c0_144] : memref<16x32x64xbf16, #tpu.memory_space<vmem>>, vector<1x32x64xbf16>
      %160 = vector.shape_cast %159 : vector<1x32x64xbf16> to vector<32x64xbf16>
      %cst_145 = arith.constant dense<0.000000e+00> : vector<448x64xf32>
      %161 = tpu.matmul %158, %160, %cst_145 {dimension_numbers = #tpu.dot_dimension_numbers<[1], [0], [0], [1], [0, 0, 1, 1], [], []>} : vector<448x32xbf16>, vector<32x64xbf16>, vector<448x64xf32> -> vector<448x64xf32>
      %162 = arith.addf %156, %161 : vector<448x64xf32>
      %c3_146 = arith.constant 3 : index
      %c112_147 = arith.constant 112 : index
      %c0_148 = arith.constant 0 : index
      %163 = vector.load %arg8[%c3_146, %c112_147, %c0_148] : memref<4x560x32xbf16, #tpu.memory_space<vmem>>, vector<1x448x32xbf16>
      %164 = vector.shape_cast %163 : vector<1x448x32xbf16> to vector<448x32xbf16>
      %c0_149 = arith.constant 0 : index
      %c0_150 = arith.constant 0 : index
      %c0_151 = arith.constant 0 : index
      %165 = vector.load %arg2[%c0_149, %c0_150, %c0_151] : memref<16x32x64xbf16, #tpu.memory_space<vmem>>, vector<1x32x64xbf16>
      %166 = vector.shape_cast %165 : vector<1x32x64xbf16> to vector<32x64xbf16>
      %cst_152 = arith.constant dense<0.000000e+00> : vector<448x64xf32>
      %167 = tpu.matmul %164, %166, %cst_152 {dimension_numbers = #tpu.dot_dimension_numbers<[1], [0], [0], [1], [0, 0, 1, 1], [], []>} : vector<448x32xbf16>, vector<32x64xbf16>, vector<448x64xf32> -> vector<448x64xf32>
      %168 = arith.addf %162, %167 : vector<448x64xf32>
      %c0_153 = arith.constant 0 : index
      %c0_154 = arith.constant 0 : index
      %169 = vector.load %arg9[%c0_153, %c0_154] : memref<448x64xf32, #tpu.memory_space<vmem>>, vector<448x64xf32>
      tpu.vector_store %arg9[%c0_153, %c0_154], %168 {strides = array<i32>} : memref<448x64xf32, #tpu.memory_space<vmem>>, vector<448x64xf32>,
    } else {
    }
    %cst = arith.constant 0.000000e+00 : f32
    %6 = vector.broadcast %cst : f32 to vector<4x64xf32>
    %cst_3 = arith.constant 0.000000e+00 : f32
    %7 = vector.broadcast %cst_3 : f32 to vector<4x64xf32>
    %c0 = arith.constant 0 : index
    %c0_4 = arith.constant 0 : index
    %8 = vector.load %arg9[%c0, %c0_4] : memref<448x64xf32, #tpu.memory_space<vmem>>, vector<4x64xf32>
    %9 = arith.addf %6, %8 : vector<4x64xf32>
    %10 = arith.mulf %8, %8 : vector<4x64xf32>
    %11 = arith.addf %7, %10 : vector<4x64xf32>
    %c0_5 = arith.constant 0 : index
    %c0_6 = arith.constant 0 : index
    %c0_7 = arith.constant 0 : index
    %c0_8 = arith.constant 0 : index
    %c0_9 = arith.constant 0 : index
    %12 = vector.load %arg5[%c0_5, %c0_6, %c0_7, %c0_8, %c0_9] : memref<1x2x4x4x64xf32, #tpu.memory_space<vmem>>, vector<1x1x1x4x64xf32>
    %13 = vector.shape_cast %12 : vector<1x1x1x4x64xf32> to vector<4x64xf32>
    %14 = vector.shape_cast %8 : vector<4x64xf32> to vector<1x1x1x4x64xf32>
    tpu.vector_store %arg5[%c0_5, %c0_6, %c0_7, %c0_8, %c0_9], %14 {strides = array<i32>} : memref<1x2x4x4x64xf32, #tpu.memory_space<vmem>>, vector<1x1x1x4x64xf32>,
    %c32 = arith.constant 32 : index
    %c0_10 = arith.constant 0 : index
    %15 = vector.load %arg9[%c32, %c0_10] : memref<448x64xf32, #tpu.memory_space<vmem>>, vector<4x64xf32>
    %16 = arith.addf %9, %15 : vector<4x64xf32>
    %17 = arith.mulf %15, %15 : vector<4x64xf32>
    %18 = arith.addf %11, %17 : vector<4x64xf32>
    %c0_11 = arith.constant 0 : index
    %c0_12 = arith.constant 0 : index
    %c1 = arith.constant 1 : index
    %c0_13 = arith.constant 0 : index
    %c0_14 = arith.constant 0 : index
    %19 = vector.load %arg5[%c0_11, %c0_12, %c1, %c0_13, %c0_14] : memref<1x2x4x4x64xf32, #tpu.memory_space<vmem>>, vector<1x1x1x4x64xf32>
    %20 = vector.shape_cast %19 : vector<1x1x1x4x64xf32> to vector<4x64xf32>
    %21 = vector.shape_cast %15 : vector<4x64xf32> to vector<1x1x1x4x64xf32>
    tpu.vector_store %arg5[%c0_11, %c0_12, %c1, %c0_13, %c0_14], %21 {strides = array<i32>} : memref<1x2x4x4x64xf32, #tpu.memory_space<vmem>>, vector<1x1x1x4x64xf32>,
    %c64 = arith.constant 64 : index
    %c0_15 = arith.constant 0 : index
    %22 = vector.load %arg9[%c64, %c0_15] : memref<448x64xf32, #tpu.memory_space<vmem>>, vector<4x64xf32>
    %23 = arith.addf %16, %22 : vector<4x64xf32>
    %24 = arith.mulf %22, %22 : vector<4x64xf32>
    %25 = arith.addf %18, %24 : vector<4x64xf32>
    %c0_16 = arith.constant 0 : index
    %c0_17 = arith.constant 0 : index
    %c2 = arith.constant 2 : index
    %c0_18 = arith.constant 0 : index
    %c0_19 = arith.constant 0 : index
    %26 = vector.load %arg5[%c0_16, %c0_17, %c2, %c0_18, %c0_19] : memref<1x2x4x4x64xf32, #tpu.memory_space<vmem>>, vector<1x1x1x4x64xf32>
    %27 = vector.shape_cast %26 : vector<1x1x1x4x64xf32> to vector<4x64xf32>
    %28 = vector.shape_cast %22 : vector<4x64xf32> to vector<1x1x1x4x64xf32>
    tpu.vector_store %arg5[%c0_16, %c0_17, %c2, %c0_18, %c0_19], %28 {strides = array<i32>} : memref<1x2x4x4x64xf32, #tpu.memory_space<vmem>>, vector<1x1x1x4x64xf32>,
    %c96 = arith.constant 96 : index
    %c0_20 = arith.constant 0 : index
    %29 = vector.load %arg9[%c96, %c0_20] : memref<448x64xf32, #tpu.memory_space<vmem>>, vector<4x64xf32>
    %30 = arith.addf %23, %29 : vector<4x64xf32>
    %31 = arith.mulf %29, %29 : vector<4x64xf32>
    %32 = arith.addf %25, %31 : vector<4x64xf32>
    %c0_21 = arith.constant 0 : index
    %c0_22 = arith.constant 0 : index
    %c3 = arith.constant 3 : index
    %c0_23 = arith.constant 0 : index
    %c0_24 = arith.constant 0 : index
    %33 = vector.load %arg5[%c0_21, %c0_22, %c3, %c0_23, %c0_24] : memref<1x2x4x4x64xf32, #tpu.memory_space<vmem>>, vector<1x1x1x4x64xf32>
    %34 = vector.shape_cast %33 : vector<1x1x1x4x64xf32> to vector<4x64xf32>
    %35 = vector.shape_cast %29 : vector<4x64xf32> to vector<1x1x1x4x64xf32>
    tpu.vector_store %arg5[%c0_21, %c0_22, %c3, %c0_23, %c0_24], %35 {strides = array<i32>} : memref<1x2x4x4x64xf32, #tpu.memory_space<vmem>>, vector<1x1x1x4x64xf32>,
    %c224 = arith.constant 224 : index
    %c0_25 = arith.constant 0 : index
    %36 = vector.load %arg9[%c224, %c0_25] : memref<448x64xf32, #tpu.memory_space<vmem>>, vector<4x64xf32>
    %37 = arith.addf %30, %36 : vector<4x64xf32>
    %38 = arith.mulf %36, %36 : vector<4x64xf32>
    %39 = arith.addf %32, %38 : vector<4x64xf32>
    %c0_26 = arith.constant 0 : index
    %c1_27 = arith.constant 1 : index
    %c0_28 = arith.constant 0 : index
    %c0_29 = arith.constant 0 : index
    %c0_30 = arith.constant 0 : index
    %40 = vector.load %arg5[%c0_26, %c1_27, %c0_28, %c0_29, %c0_30] : memref<1x2x4x4x64xf32, #tpu.memory_space<vmem>>, vector<1x1x1x4x64xf32>
    %41 = vector.shape_cast %40 : vector<1x1x1x4x64xf32> to vector<4x64xf32>
    %42 = vector.shape_cast %36 : vector<4x64xf32> to vector<1x1x1x4x64xf32>
    tpu.vector_store %arg5[%c0_26, %c1_27, %c0_28, %c0_29, %c0_30], %42 {strides = array<i32>} : memref<1x2x4x4x64xf32, #tpu.memory_space<vmem>>, vector<1x1x1x4x64xf32>,
    %c256 = arith.constant 256 : index
    %c0_31 = arith.constant 0 : index
    %43 = vector.load %arg9[%c256, %c0_31] : memref<448x64xf32, #tpu.memory_space<vmem>>, vector<4x64xf32>
    %44 = arith.addf %37, %43 : vector<4x64xf32>
    %45 = arith.mulf %43, %43 : vector<4x64xf32>
    %46 = arith.addf %39, %45 : vector<4x64xf32>
    %c0_32 = arith.constant 0 : index
    %c1_33 = arith.constant 1 : index
    %c1_34 = arith.constant 1 : index
    %c0_35 = arith.constant 0 : index
    %c0_36 = arith.constant 0 : index
    %47 = vector.load %arg5[%c0_32, %c1_33, %c1_34, %c0_35, %c0_36] : memref<1x2x4x4x64xf32, #tpu.memory_space<vmem>>, vector<1x1x1x4x64xf32>
    %48 = vector.shape_cast %47 : vector<1x1x1x4x64xf32> to vector<4x64xf32>
    %49 = vector.shape_cast %43 : vector<4x64xf32> to vector<1x1x1x4x64xf32>
    tpu.vector_store %arg5[%c0_32, %c1_33, %c1_34, %c0_35, %c0_36], %49 {strides = array<i32>} : memref<1x2x4x4x64xf32, #tpu.memory_space<vmem>>, vector<1x1x1x4x64xf32>,
    %c288 = arith.constant 288 : index
    %c0_37 = arith.constant 0 : index
    %50 = vector.load %arg9[%c288, %c0_37] : memref<448x64xf32, #tpu.memory_space<vmem>>, vector<4x64xf32>
    %51 = arith.addf %44, %50 : vector<4x64xf32>
    %52 = arith.mulf %50, %50 : vector<4x64xf32>
    %53 = arith.addf %46, %52 : vector<4x64xf32>
    %c0_38 = arith.constant 0 : index
    %c1_39 = arith.constant 1 : index
    %c2_40 = arith.constant 2 : index
    %c0_41 = arith.constant 0 : index
    %c0_42 = arith.constant 0 : index
    %54 = vector.load %arg5[%c0_38, %c1_39, %c2_40, %c0_41, %c0_42] : memref<1x2x4x4x64xf32, #tpu.memory_space<vmem>>, vector<1x1x1x4x64xf32>
    %55 = vector.shape_cast %54 : vector<1x1x1x4x64xf32> to vector<4x64xf32>
    %56 = vector.shape_cast %50 : vector<4x64xf32> to vector<1x1x1x4x64xf32>
    tpu.vector_store %arg5[%c0_38, %c1_39, %c2_40, %c0_41, %c0_42], %56 {strides = array<i32>} : memref<1x2x4x4x64xf32, #tpu.memory_space<vmem>>, vector<1x1x1x4x64xf32>,
    %c320 = arith.constant 320 : index
    %c0_43 = arith.constant 0 : index
    %57 = vector.load %arg9[%c320, %c0_43] : memref<448x64xf32, #tpu.memory_space<vmem>>, vector<4x64xf32>
    %58 = arith.addf %51, %57 : vector<4x64xf32>
    %59 = arith.mulf %57, %57 : vector<4x64xf32>
    %60 = arith.addf %53, %59 : vector<4x64xf32>
    %c0_44 = arith.constant 0 : index
    %c1_45 = arith.constant 1 : index
    %c3_46 = arith.constant 3 : index
    %c0_47 = arith.constant 0 : index
    %c0_48 = arith.constant 0 : index
    %61 = vector.load %arg5[%c0_44, %c1_45, %c3_46, %c0_47, %c0_48] : memref<1x2x4x4x64xf32, #tpu.memory_space<vmem>>, vector<1x1x1x4x64xf32>
    %62 = vector.shape_cast %61 : vector<1x1x1x4x64xf32> to vector<4x64xf32>
    %63 = vector.shape_cast %57 : vector<4x64xf32> to vector<1x1x1x4x64xf32>
    tpu.vector_store %arg5[%c0_44, %c1_45, %c3_46, %c0_47, %c0_48], %63 {strides = array<i32>} : memref<1x2x4x4x64xf32, #tpu.memory_space<vmem>>, vector<1x1x1x4x64xf32>,
    %cst_49 = arith.constant dense<0.000000e+00> : vector<64xf32>
    %64 = vector.multi_reduction <add>, %58, %cst_49 [0] : vector<4x64xf32> to vector<64xf32>
    %65 = vector.shape_cast %64 : vector<64xf32> to vector<1x64xf32>
    %c0_50 = arith.constant 0 : index
    %c0_51 = arith.constant 0 : index
    %c0_52 = arith.constant 0 : index
    %66 = vector.load %arg6[%c0_50, %c0_51, %c0_52] : memref<1x1x64xf32, #tpu.memory_space<vmem>>, vector<1x1x64xf32>
    %67 = vector.shape_cast %66 : vector<1x1x64xf32> to vector<1x64xf32>
    %68 = vector.shape_cast %65 : vector<1x64xf32> to vector<1x1x64xf32>
    tpu.vector_store %arg6[%c0_50, %c0_51, %c0_52], %68 {strides = array<i32>} : memref<1x1x64xf32, #tpu.memory_space<vmem>>, vector<1x1x64xf32>,
    %cst_53 = arith.constant dense<0.000000e+00> : vector<64xf32>
    %69 = vector.multi_reduction <add>, %60, %cst_53 [0] : vector<4x64xf32> to vector<64xf32>
    %70 = vector.shape_cast %69 : vector<64xf32> to vector<1x64xf32>
    %c0_54 = arith.constant 0 : index
    %c0_55 = arith.constant 0 : index
    %c0_56 = arith.constant 0 : index
    %71 = vector.load %arg7[%c0_54, %c0_55, %c0_56] : memref<1x1x64xf32, #tpu.memory_space<vmem>>, vector<1x1x64xf32>
    %72 = vector.shape_cast %71 : vector<1x1x64xf32> to vector<1x64xf32>
    %73 = vector.shape_cast %70 : vector<1x64xf32> to vector<1x1x64xf32>
    tpu.vector_store %arg7[%c0_54, %c0_55, %c0_56], %73 {strides = array<i32>} : memref<1x1x64xf32, #tpu.memory_space<vmem>>, vector<1x1x64xf32>,
    return
  }
  func.func @transform_0(%arg0: i32) -> (i32, i32, i32, i32) {
    %c0_i32 = arith.constant 0 : i32
    %c0_i32_0 = arith.constant 0 : i32
    %c0_i32_1 = arith.constant 0 : i32
    %c0_i32_2 = arith.constant 0 : i32
    %c0_i32_3 = arith.constant 0 : i32
    return %c0_i32, %c0_i32_0, %c0_i32_1, %c0_i32_2 : i32, i32, i32, i32
  }
  func.func @transform_1(%arg0: i32) -> (i32, i32, i32) {
    %c0_i32 = arith.constant 0 : i32
    %c0_i32_0 = arith.constant 0 : i32
    %c0_i32_1 = arith.constant 0 : i32
    %c0_i32_2 = arith.constant 0 : i32
    return %c0_i32, %c0_i32_0, %c0_i32_1 : i32, i32, i32
  }
  func.func @transform_2(%arg0: i32) -> (i32, i32) {
    %c0_i32 = arith.constant 0 : i32
    %c0_i32_0 = arith.constant 0 : i32
    %c0_i32_1 = arith.constant 0 : i32
    return %c0_i32, %c0_i32_0 : i32, i32
  }
  func.func @transform_3(%arg0: i32) -> (i32, i32) {
    %c0_i32 = arith.constant 0 : i32
    %c0_i32_0 = arith.constant 0 : i32
    %c0_i32_1 = arith.constant 0 : i32
    return %c0_i32, %c0_i32_0 : i32, i32
  }
  func.func @transform_4(%arg0: i32) -> (i32, i32, i32, i32, i32) {
    %c0_i32 = arith.constant 0 : i32
    %c0_i32_0 = arith.constant 0 : i32
    %c0_i32_1 = arith.constant 0 : i32
    %c0_i32_2 = arith.constant 0 : i32
    %c0_i32_3 = arith.constant 0 : i32
    return %arg0, %c0_i32, %c0_i32_0, %c0_i32_1, %c0_i32_2 : i32, i32, i32, i32, i32
  }
  func.func @transform_5(%arg0: i32) -> (i32, i32, i32) {
    %c0_i32 = arith.constant 0 : i32
    %c0_i32_0 = arith.constant 0 : i32
    %c0_i32_1 = arith.constant 0 : i32
    return %arg0, %c0_i32, %c0_i32_0 : i32, i32, i32
  }
  func.func @transform_6(%arg0: i32) -> (i32, i32, i32) {
    %c0_i32 = arith.constant 0 : i32
    %c0_i32_0 = arith.constant 0 : i32
    %c0_i32_1 = arith.constant 0 : i32
    return %arg0, %c0_i32, %c0_i32_0 : i32, i32, i32
  }
}

</mosaic_0001>

<bundles_post_ra>
// kernel: tpu_custom_call.1
= control target key start
LH: loop header
LB: loop body
LE: loop exit
PB: predicated region body
PF: predicated region fallthrough
CT: control target
= control target key end

     0   :  { %12 = vsyncpa [#allocation5], 0  ;;  %s12662_s0 = inlined_call_operand.hbm [shape: f32[2,1,1,32], index: 0, kind: input, shape index: {}]   ;;  %s12663_s1 = inlined_call_operand.hbm [shape: bf16[16,32,64], index: 1, kind: input, shape index: {}]   ;;  %s12664_s2 = inlined_call_operand.vmem [shape: f32[1,32], index: 2, kind: input, shape index: {}]   ;;  %s12665_s3 = inlined_call_operand.vmem [shape: f32[1,32], index: 3, kind: input, shape index: {}]   ;;  %s12666_s4 = inlined_call_operand.hbm [shape: f32[1,2,4,4,64], index: 4, kind: output, shape index: {0}]   ;;  %s12667_s5 = inlined_call_operand.hbm [shape: f32[1,1,64], index: 5, kind: output, shape index: {1}]   ;;  %s12668_s6 = inlined_call_operand.hbm [shape: f32[1,1,64], index: 6, kind: output, shape index: {2}]  }
   0x1   :  { %13 = vsyncpa [#allocation8], 0 }
   0x2   :  { %14 = vsyncpa [#allocation6], 0 }
   0x3   :  { %15 = vsyncpa [#allocation11], 0  ;;  %s20_s2 = sshll.u32 %s12662_s0, 4  ;;  %s11474_s23 = smov [#allocation4]   ;;  %s21_s2 = int_to_ptr.hbm [resolvable:$true] %s20_s2 }
   0x4   :  { %s22_s3 = sshll.u32 %s11474_s23, 4  ;;  %s33_s26 = sshll.u32 %s12663_s1, 4  ;;  %s23_s3 = int_to_ptr.vmem [resolvable:$true] %s22_s3  ;;  %s34_s26 = int_to_ptr.hbm [resolvable:$true] %s33_s26 }
   0x5   :  { %s11475_s27 = smov 16   ;;  %s11476_s28 = smov 1  }
   0x6   :  { %28 = dma.hbm_to_vmem [thread:$0]  %s21_s2, 32, %s23_s3, [#allocation5], %s11475_s27, %s11475_s27, %s11476_s28  }
   0x7   :  { %s11477_s29 = smov [#allocation7]   ;;  %s11478_s7 = smov 64  }
   0x8   :  { %s35_s30 = sshll.u32 %s11477_s29, 4  ;;  %s11479_s8 = smov 4   ;;  %s36_s30 = int_to_ptr.vmem [resolvable:$true] %s35_s30 }
   0x9   :  { %41 = dma.hbm_to_vmem [thread:$0]  %s34_s26, 4096, %s36_s30, [#allocation8], %s11478_s7, %s11478_s7, %s11479_s8  }
   0xa   :  { %11466 = dma.done.wait [#allocation5], 32  }
   0xb   :  { %11467 = vsyncadd [#allocation5], 4294967264 }
   0xc   :  { %11468 = dma.done.wait [#allocation8], 4096  }
   0xd   :  { %11469 = vsyncadd [#allocation8], 4294963200  ;;  %vm59_vm0 = vcmask 257024   ;;  %v11480_v0 = vmov 0   ;;  %v10913_v1 = vld [vmem:[#allocation7 + $0xe8] sm:$0xff]  ;;  %v10883_v2 = vld [vmem:[#allocation7 + $0xf8] sm:$0xff] }
   0xe   :  { %62 = vst.msk [vmem:[#allocation2 + $0x8] sm:$0xf] %vm59_vm0, %v11480_v0  ;;  %v10943_v3 = vld [vmem:[#allocation7 + $0xd8] sm:$0xff]  ;;  %v10973_v4 = vld [vmem:[#allocation7 + $0xc8] sm:$0xff]  ;;  %758 = vmatpush.bf16.msra.mxu0 %v10913_v1  ;;  %1143 = vmatpush.bf16.msra.mxu1 %v10883_v2  ;;  %v10912_v5 = vld [vmem:[#allocation7 + $0xe0] sm:$0xff]  ;;  %vm667_vm1 = vcmask 261120  }
   0xf   :  { %63 = vst.msk [vmem:[#allocation2 + $0xc] sm:$0xf] %vm59_vm0, %v11480_v0  ;;  %1589 = vmatpush.bf16.msra.mxu2 %v10943_v3  ;;  %2091 = vmatpush.bf16.msra.mxu3 %v10973_v4  ;;  %v10882_v6 = vld [vmem:[#allocation7 + $0xf0] sm:$0xff]  ;;  %v10972_v8 = vld [vmem:[#allocation7 + $0xc0] sm:$0xff]  ;;  %v11063_v23 = vld [vmem:[#allocation7 + $0x98] sm:$0xff]  ;;  %vm347_vm2 = vcmask 254976  }
  0x10   :  { %64 = vst.msk [vmem:[#allocation2 + $0x10] sm:$0xf] %vm59_vm0, %v11480_v0  ;;  %v10942_v7 = vld [vmem:[#allocation7 + $0xd0] sm:$0xff]  ;;  %v11003_v24 = vld [vmem:[#allocation7 + $0xb8] sm:$0xff]  ;;  %v11093_v25 = vld [vmem:[#allocation7 + $0x88] sm:$0xff]  ;;  %vm349_vm3 = vcmask 1041408  }
  0x11   :  { %65 = vst.msk [vmem:[#allocation2 + $0x14] sm:$0xf] %vm59_vm0, %v11480_v0  ;;  %v11033_v26 = vld [vmem:[#allocation7 + $0xa8] sm:$0xff]  ;;  %v11344_v35 = vld [vmem:[#allocation4] ss:$0 sm:$0xff]  ;;  %vm344_vm5 = vcmask 1042432  }
  0x12   :  { %66 = vst.msk [vmem:[#allocation2 + $0x18] sm:$0xf] %vm59_vm0, %v11480_v0  ;;  %759 = vmatpush.bf16.msra.mxu0 %v10912_v5  ;;  %1144 = vmatpush.bf16.msra.mxu1 %v10882_v6  ;;  %vm354_vm4 = vsmask.f32 1280  ;;  %v350_v36 = vsel %vm349_vm3, 0.0, %v11344_v35  ;;  %v345_v41 = vsel %vm344_vm5, 0.0, %v11344_v35 }
  0x13   :  { %67 = vst.msk [vmem:[#allocation2 + $0x1c] sm:$0xf] %vm59_vm0, %v11480_v0  ;;  %1590 = vmatpush.bf16.msra.mxu2 %v10942_v7  ;;  %2092 = vmatpush.bf16.msra.mxu3 %v10972_v8  ;;  %v351_v37 = vpack.c.bf16 %v350_v36, %v350_v36  ;;  %v11345_v38 = vld [vmem:[#allocation4 + $0x1] ss:$0 sm:$0xff]  ;;  %vm12085_vm6 = vmand %vm347_vm2, %vm354_vm4  ;;  %vm359_vm7 = vcmask 1040384   ;;  %vm363_vm8 = vcmask 253952   ;;  %v346_v47 = vpack.c.bf16 %v345_v41, %v345_v41 }
  0x14   :  { %68 = vst.msk [vmem:[#allocation2 + $0x20] sm:$0xf] %vm59_vm0, %v11480_v0  ;;  %v340_v42 = vld [vmem:[#allocation4] sm:$0x1]  ;;  %v12091_v43 = vsel %vm349_vm3, 0.0, %v11345_v38  ;;  %v378_v44 = vsel %vm344_vm5, 0.0, %v11345_v38 }
  0x15   :  { %69 = vst.msk [vmem:[#allocation2 + $0x24] sm:$0xf] %vm59_vm0, %v11480_v0  ;;  %v360_v45 = vsel %vm359_vm7, 0.0, %v11344_v35  ;;  %v386_v48 = vsel %vm359_vm7, 0.0, %v11345_v38  ;;  %vm368_vm9 = vsmask.f32 256  ;;  %v379_v49 = vpack.c.bf16 %v378_v44, %v378_v44 }
  0x16   :  { %70 = vst.msk [vmem:[#allocation2 + $0x28] sm:$0xf] %vm59_vm0, %v11480_v0  ;;  %v10854_v10 = vld [vmem:[#allocation2 + $0x8] sm:$0xff]  ;;  %2593 = vmatpush.bf16.msrb.mxu0 %v11003_v24  ;;  %3095 = vmatpush.bf16.msrb.mxu1 %v11033_v26  ;;  %v365_v50 = vpack.c.bf16 %v340_v42, %v340_v42  ;;  %v361_v51 = vpack.c.bf16 %v360_v45, %v360_v45  ;;  %vm12104_vm10 = vmand %vm363_vm8, %vm368_vm9  ;;  %vm8313_vm11 = vcmask 523264   ;;  %vm8374_vm12 = vcmask 519168   ;;  %s11481_s0 = smov [#allocation9]  }
  0x17   :  { %71 = vst.msk [vmem:[#allocation2 + $0x2c] sm:$0xf] %vm59_vm0, %v11480_v0  ;;  %8754 = vmatmul.msk.bf16.vlgmr.msra.gmra.mxu1 %vm667_vm1, %v10854_v10  ;;  %3597 = vmatpush.bf16.msrb.mxu2 %v11063_v23  ;;  %v387_v54 = vpack.c.bf16 %v386_v48, %v386_v48  ;;  %s8439_s1 = sshll.u32 %s11481_s0, 4  ;;  %s8441_s11 = sshll.u32 %s12666_s4, 4  ;;  %vm8425_vm13 = vcmask 516096   ;;  %s8440_s1 = int_to_ptr.vmem [resolvable:$true] %s8439_s1  ;;  %s8442_s11 = int_to_ptr.hbm [resolvable:$true] %s8441_s11 }
  0x18   :  { %72 = vst.msk [vmem:[#allocation2 + $0x30] sm:$0xf] %vm59_vm0, %v11480_v0  ;;  %v10855_v13 = vld [vmem:[#allocation2 + $0x10] sm:$0xff]  ;;  %4099 = vmatpush.bf16.msrb.mxu3 %v11093_v25  ;;  %s11482_s4 = smov [#allocation10]   ;;  %s8455_s15 = sshll.u32 %s12667_s5, 4  ;;  %s8456_s15 = int_to_ptr.hbm [resolvable:$true] %s8455_s15 }
  0x19   :  { %73 = vst.msk [vmem:[#allocation2 + $0x34] sm:$0xf] %vm59_vm0, %v11480_v0  ;;  %s8453_s12 = sshll.u32 %s11482_s4, 4  ;;  %s11483_s16 = smov [#allocation12]   ;;  %s8454_s12 = int_to_ptr.vmem [resolvable:$true] %s8453_s12 }
  0x1a   :  { %74 = vst.msk [vmem:[#allocation2 + $0x38] sm:$0xf] %vm59_vm0, %v11480_v0  ;;  %v10856_v17 = vld [vmem:[#allocation2 + $0x18] sm:$0xff]  ;;  %s8464_s17 = sshll.u32 %s11483_s16, 4  ;;  %s8466_s20 = sshll.u32 %s12668_s6, 4  ;;  %s8465_s17 = int_to_ptr.vmem [resolvable:$true] %s8464_s17  ;;  %s8467_s20 = int_to_ptr.hbm [resolvable:$true] %s8466_s20 }
  0x1b   :  { %75 = vst.msk [vmem:[#allocation2 + $0x3c] sm:$0xf] %vm59_vm0, %v11480_v0 }
  0x1c   :  { %76 = vst.msk [vmem:[#allocation2 + $0x40] sm:$0xf] %vm59_vm0, %v11480_v0  ;;  %v10857_v21 = vld [vmem:[#allocation2 + $0x20] sm:$0xff] }
  0x1d   :  { %77 = vst.msk [vmem:[#allocation2 + $0x44] sm:$0xf] %vm59_vm0, %v11480_v0 }
  0x1e   :  { %78 = vst.msk [vmem:[#allocation2 + $0x48] sm:$0xf] %vm59_vm0, %v11480_v0  ;;  %v10858_v29 = vld [vmem:[#allocation2 + $0x28] sm:$0xff] }
  0x1f   :  { %79 = vst.msk [vmem:[#allocation2 + $0x4c] sm:$0xf] %vm59_vm0, %v11480_v0 }
  0x20   :  { %80 = vst.msk [vmem:[#allocation2 + $0x50] sm:$0xf] %vm59_vm0, %v11480_v0  ;;  %v10859_v33 = vld [vmem:[#allocation2 + $0x30] sm:$0xff] }
  0x21   :  { %81 = vst.msk [vmem:[#allocation2 + $0x54] sm:$0xf] %vm59_vm0, %v11480_v0 }
  0x22   :  { %82 = vst.msk [vmem:[#allocation2 + $0x58] sm:$0xf] %vm59_vm0, %v11480_v0 }
  0x23   :  { %83 = vst.msk [vmem:[#allocation2 + $0x5c] sm:$0xf] %vm59_vm0, %v11480_v0 }
  0x24   :  { %84 = vst.msk [vmem:[#allocation2 + $0x60] sm:$0xf] %vm59_vm0, %v11480_v0  ;;  %v10861_v62 = vld [vmem:[#allocation2 + $0x40] sm:$0xff] }
  0x25   :  { %85 = vst.msk [vmem:[#allocation2 + $0x64] sm:$0xf] %vm59_vm0, %v11480_v0 }
  0x26   :  { %86 = vst.msk [vmem:[#allocation2 + $0x68] sm:$0xf] %vm59_vm0, %v11480_v0  ;;  %v10862_v5 = vld [vmem:[#allocation2 + $0x48] sm:$0xff] }
  0x27   :  { %87 = vst.msk [vmem:[#allocation2 + $0x6c] sm:$0xf] %vm59_vm0, %v11480_v0  ;;  %8755 = vmatmul.msk.bf16.gmra.mxu1 %vm667_vm1, %v10855_v13 }
  0x28   :  { %88 = vst.msk [vmem:[#allocation2 + $0x70] sm:$0xf] %vm59_vm0, %v11480_v0 }
  0x29   :  { %89 = vst.msk [vmem:[#allocation2 + $0x74] sm:$0xf] %vm59_vm0, %v11480_v0 }
  0x2a   :  { %90 = vst.msk [vmem:[#allocation2 + $0x78] sm:$0xf] %vm59_vm0, %v11480_v0 }
  0x2b   :  { %91 = vst.msk [vmem:[#allocation2 + $0x7c] sm:$0xf] %vm59_vm0, %v11480_v0 }
  0x2c   :  { %92 = vst.msk [vmem:[#allocation2 + $0x80] sm:$0xf] %vm59_vm0, %v11480_v0  ;;  %v10865_v42 = vld [vmem:[#allocation2 + $0x60] sm:$0xff] }
  0x2d   :  { %93 = vst.msk [vmem:[#allocation2 + $0x84] sm:$0xf] %vm59_vm0, %v11480_v0 }
  0x2e   :  { %94 = vst.msk [vmem:[#allocation2 + $0x88] sm:$0xf] %vm59_vm0, %v11480_v0 }
  0x2f   :  { %95 = vst.msk [vmem:[#allocation2 + $0x8c] sm:$0xf] %vm59_vm0, %v11480_v0 }
  0x30   :  { %96 = vst.msk [vmem:[#allocation2 + $0x90] sm:$0xf] %vm59_vm0, %v11480_v0 }
  0x31   :  { %97 = vst.msk [vmem:[#allocation2 + $0x94] sm:$0xf] %vm59_vm0, %v11480_v0 }
  0x32   :  { %98 = vst.msk [vmem:[#allocation2 + $0x98] sm:$0xf] %vm59_vm0, %v11480_v0 }
  0x33   :  { %99 = vst.msk [vmem:[#allocation2 + $0x9c] sm:$0xf] %vm59_vm0, %v11480_v0 }
  0x34   :  { %100 = vst.msk [vmem:[#allocation2 + $0xa0] sm:$0xf] %vm59_vm0, %v11480_v0 }
  0x35   :  { %101 = vst.msk [vmem:[#allocation2 + $0xa4] sm:$0xf] %vm59_vm0, %v11480_v0 }
  0x36   :  { %102 = vst.msk [vmem:[#allocation2 + $0xa8] sm:$0xf] %vm59_vm0, %v11480_v0 }
  0x37   :  { %103 = vst.msk [vmem:[#allocation2 + $0xac] sm:$0xf] %vm59_vm0, %v11480_v0  ;;  %8756 = vmatmul.msk.bf16.gmra.mxu1 %vm667_vm1, %v10856_v17 }
  0x38   :  { %104 = vst.msk [vmem:[#allocation2 + $0xb0] sm:$0xf] %vm59_vm0, %v11480_v0 }
  0x39   :  { %105 = vst.msk [vmem:[#allocation2 + $0xb4] sm:$0xf] %vm59_vm0, %v11480_v0 }
  0x3a   :  { %106 = vst.msk [vmem:[#allocation2 + $0xb8] sm:$0xf] %vm59_vm0, %v11480_v0 }
  0x3b   :  { %107 = vst.msk [vmem:[#allocation2 + $0xbc] sm:$0xf] %vm59_vm0, %v11480_v0 }
  0x3c   :  { %108 = vst.msk [vmem:[#allocation2 + $0xc0] sm:$0xf] %vm59_vm0, %v11480_v0 }
  0x3d   :  { %109 = vst.msk [vmem:[#allocation2 + $0xc4] sm:$0xf] %vm59_vm0, %v11480_v0 }
  0x3e   :  { %110 = vst.msk [vmem:[#allocation2 + $0xc8] sm:$0xf] %vm59_vm0, %v11480_v0 }
  0x3f   :  { %111 = vst.msk [vmem:[#allocation2 + $0xcc] sm:$0xf] %vm59_vm0, %v11480_v0 }
  0x40   :  { %112 = vst.msk [vmem:[#allocation2 + $0xd0] sm:$0xf] %vm59_vm0, %v11480_v0 }
  0x41   :  { %113 = vst.msk [vmem:[#allocation2 + $0xd4] sm:$0xf] %vm59_vm0, %v11480_v0 }
  0x42   :  { %114 = vst.msk [vmem:[#allocation2 + $0xd8] sm:$0xf] %vm59_vm0, %v11480_v0 }
  0x43   :  { %115 = vst.msk [vmem:[#allocation2 + $0xdc] sm:$0xf] %vm59_vm0, %v11480_v0 }
  0x44   :  { %116 = vst.msk [vmem:[#allocation2 + $0xe0] sm:$0xf] %vm59_vm0, %v11480_v0 }
  0x45   :  { %117 = vst.msk [vmem:[#allocation2 + $0xe4] sm:$0xf] %vm59_vm0, %v11480_v0 }
  0x46   :  { %118 = vst.msk [vmem:[#allocation2 + $0xe8] sm:$0xf] %vm59_vm0, %v11480_v0 }
  0x47   :  { %119 = vst.msk [vmem:[#allocation2 + $0xec] sm:$0xf] %vm59_vm0, %v11480_v0  ;;  %8757 = vmatmul.msk.bf16.gmra.mxu1 %vm667_vm1, %v10857_v21 }
  0x48   :  { %120 = vst.msk [vmem:[#allocation2 + $0xf0] sm:$0xf] %vm59_vm0, %v11480_v0 }
  0x49   :  { %121 = vst.msk [vmem:[#allocation2 + $0xf4] sm:$0xf] %vm59_vm0, %v11480_v0 }
  0x4a   :  { %122 = vst.msk [vmem:[#allocation2 + $0xf8] sm:$0xf] %vm59_vm0, %v11480_v0 }
  0x4b   :  { %123 = vst.msk [vmem:[#allocation2 + $0xfc] sm:$0xf] %vm59_vm0, %v11480_v0 }
  0x4c   :  { %124 = vst.msk [vmem:[#allocation2 + $0x100] sm:$0xf] %vm59_vm0, %v11480_v0 }
  0x4d   :  { %125 = vst.msk [vmem:[#allocation2 + $0x104] sm:$0xf] %vm59_vm0, %v11480_v0 }
  0x4e   :  { %126 = vst.msk [vmem:[#allocation2 + $0x108] sm:$0xf] %vm59_vm0, %v11480_v0 }
  0x4f   :  { %127 = vst.msk [vmem:[#allocation2 + $0x10c] sm:$0xf] %vm59_vm0, %v11480_v0 }
  0x50   :  { %128 = vst.msk [vmem:[#allocation2 + $0x110] sm:$0xf] %vm59_vm0, %v11480_v0 }
  0x51   :  { %129 = vst.msk [vmem:[#allocation2 + $0x114] sm:$0xf] %vm59_vm0, %v11480_v0 }
  0x52   :  { %132 = vst.msk [vmem:[#allocation2 + $0x120] sm:$0xf] %vm59_vm0, %v11480_v0 }
  0x53   :  { %133 = vst.msk [vmem:[#allocation2 + $0x124] sm:$0xf] %vm59_vm0, %v11480_v0 }
  0x54   :  { %134 = vst.msk [vmem:[#allocation2 + $0x128] sm:$0xf] %vm59_vm0, %v11480_v0 }
  0x55   :  { %135 = vst.msk [vmem:[#allocation2 + $0x12c] sm:$0xf] %vm59_vm0, %v11480_v0 }
  0x56   :  { %136 = vst.msk [vmem:[#allocation2 + $0x130] sm:$0xf] %vm59_vm0, %v11480_v0 }
  0x57   :  { %137 = vst.msk [vmem:[#allocation2 + $0x134] sm:$0xf] %vm59_vm0, %v11480_v0  ;;  %8758 = vmatmul.msk.bf16.gmra.mxu1 %vm667_vm1, %v10858_v29 }
  0x58   :  { %138 = vst.msk [vmem:[#allocation2 + $0x138] sm:$0xf] %vm59_vm0, %v11480_v0 }
  0x59   :  { %139 = vst.msk [vmem:[#allocation2 + $0x13c] sm:$0xf] %vm59_vm0, %v11480_v0 }
  0x5a   :  { %140 = vst.msk [vmem:[#allocation2 + $0x140] sm:$0xf] %vm59_vm0, %v11480_v0  ;;  %v10884_v9 = vld [vmem:[#allocation2 + $0x120] sm:$0xff] }
  0x5b   :  { %141 = vst.msk [vmem:[#allocation2 + $0x144] sm:$0xf] %vm59_vm0, %v11480_v0  ;;  %8606 = vmatmul.msk.bf16.vlgmr.msra.gmra.mxu0 %vm667_vm1, %v10884_v9 }
  0x5c   :  { %142 = vst.msk [vmem:[#allocation2 + $0x148] sm:$0xf] %vm59_vm0, %v11480_v0  ;;  %v10885_v12 = vld [vmem:[#allocation2 + $0x128] sm:$0xff] }
  0x5d   :  { %143 = vst.msk [vmem:[#allocation2 + $0x14c] sm:$0xf] %vm59_vm0, %v11480_v0 }
  0x5e   :  { %144 = vst.msk [vmem:[#allocation2 + $0x150] sm:$0xf] %vm59_vm0, %v11480_v0  ;;  %v10886_v16 = vld [vmem:[#allocation2 + $0x130] sm:$0xff] }
  0x5f   :  { %145 = vst.msk [vmem:[#allocation2 + $0x154] sm:$0xf] %vm59_vm0, %v11480_v0 }
  0x60   :  { %146 = vst.msk [vmem:[#allocation2 + $0x158] sm:$0xf] %vm59_vm0, %v11480_v0  ;;  %v10887_v20 = vld [vmem:[#allocation2 + $0x138] sm:$0xff] }
  0x61   :  { %147 = vst.msk [vmem:[#allocation2 + $0x15c] sm:$0xf] %vm59_vm0, %v11480_v0 }
  0x62   :  { %148 = vst.msk [vmem:[#allocation2 + $0x160] sm:$0xf] %vm59_vm0, %v11480_v0  ;;  %v10888_v28 = vld [vmem:[#allocation2 + $0x140] sm:$0xff] }
  0x63   :  { %149 = vst.msk [vmem:[#allocation2 + $0x164] sm:$0xf] %vm59_vm0, %v11480_v0 }
  0x64   :  { %150 = vst.msk [vmem:[#allocation2 + $0x168] sm:$0xf] %vm59_vm0, %v11480_v0  ;;  %v10889_v32 = vld [vmem:[#allocation2 + $0x148] sm:$0xff] }
  0x65   :  { %151 = vst.msk [vmem:[#allocation2 + $0x16c] sm:$0xf] %vm59_vm0, %v11480_v0  ;;  %v356_v40 = vld [vmem:[#allocation2 + $0x150] sm:$0x3] }
  0x66   :  { %152 = vst.msk [vmem:[#allocation2 + $0x170] sm:$0xf] %vm59_vm0, %v11480_v0  ;;  %v357_v46 = vsel %vm12085_vm6, %v351_v37, %v356_v40 }
  0x67   :  { %153 = vst.msk [vmem:[#allocation2 + $0x174] sm:$0xf] %vm59_vm0, %v11480_v0  ;;  %8759 = vmatmul.msk.bf16.gmra.mxu1 %vm667_vm1, %v10859_v33 }
  0x68   :  { %154 = vst.msk [vmem:[#allocation2 + $0x178] sm:$0xf] %vm59_vm0, %v11480_v0  ;;  %v10891_v61 = vld [vmem:[#allocation2 + $0x158] sm:$0xff] }
  0x69   :  { %155 = vst.msk [vmem:[#allocation2 + $0x17c] sm:$0xf] %vm59_vm0, %v11480_v0 }
  0x6a   :  { %156 = vst.msk [vmem:[#allocation2 + $0x180] sm:$0xf] %vm59_vm0, %v11480_v0  ;;  %v10892_v4 = vld [vmem:[#allocation2 + $0x160] sm:$0xff] }
  0x6b   :  { %157 = vst.msk [vmem:[#allocation2 + $0x184] sm:$0xf] %vm59_vm0, %v11480_v0  ;;  %8607 = vmatmul.msk.bf16.gmra.mxu0 %vm667_vm1, %v10885_v12 }
  0x6c   :  { %158 = vst.msk [vmem:[#allocation2 + $0x188] sm:$0xf] %vm59_vm0, %v11480_v0 }
  0x6d   :  { %159 = vst.msk [vmem:[#allocation2 + $0x18c] sm:$0xf] %vm59_vm0, %v11480_v0 }
  0x6e   :  { %160 = vst.msk [vmem:[#allocation2 + $0x190] sm:$0xf] %vm59_vm0, %v11480_v0  ;;  %v10894_v26 = vld [vmem:[#allocation2 + $0x170] sm:$0xff] }
  0x6f   :  { %161 = vst.msk [vmem:[#allocation2 + $0x194] sm:$0xf] %vm59_vm0, %v11480_v0 }
  0x70   :  { %162 = vst.msk [vmem:[#allocation2 + $0x198] sm:$0xf] %vm59_vm0, %v11480_v0  ;;  %v10895_v41 = vld [vmem:[#allocation2 + $0x178] sm:$0xff] }
  0x71   :  { %163 = vst.msk [vmem:[#allocation2 + $0x19c] sm:$0xf] %vm59_vm0, %v11480_v0 }
  0x72   :  { %164 = vst.msk [vmem:[#allocation2 + $0x1a0] sm:$0xf] %vm59_vm0, %v11480_v0 }
  0x73   :  { %165 = vst.msk [vmem:[#allocation2 + $0x1a4] sm:$0xf] %vm59_vm0, %v11480_v0 }
  0x74   :  { %166 = vst.msk [vmem:[#allocation2 + $0x1a8] sm:$0xf] %vm59_vm0, %v11480_v0 }
  0x75   :  { %167 = vst.msk [vmem:[#allocation2 + $0x1ac] sm:$0xf] %vm59_vm0, %v11480_v0 }
  0x76   :  { %168 = vst.msk [vmem:[#allocation2 + $0x1b0] sm:$0xf] %vm59_vm0, %v11480_v0 }
  0x77   :  { %169 = vst.msk [vmem:[#allocation2 + $0x1b4] sm:$0xf] %vm59_vm0, %v11480_v0 }
  0x78   :  { %170 = vst.msk [vmem:[#allocation2 + $0x1b8] sm:$0xf] %vm59_vm0, %v11480_v0 }
  0x79   :  { %171 = vst.msk [vmem:[#allocation2 + $0x1bc] sm:$0xf] %vm59_vm0, %v11480_v0 }
  0x7a   :  { %172 = vst.msk [vmem:[#allocation2 + $0x1c0] sm:$0xf] %vm59_vm0, %v11480_v0 }
  0x7b   :  { %173 = vst.msk [vmem:[#allocation2 + $0x1c4] sm:$0xf] %vm59_vm0, %v11480_v0  ;;  %8608 = vmatmul.msk.bf16.gmra.mxu0 %vm667_vm1, %v10886_v16  ;;  %v10863_v16 = vld [vmem:[#allocation2 + $0x50] sm:$0xff] }
  0x7c   :  { %174 = vst.msk [vmem:[#allocation2 + $0x1c8] sm:$0xf] %vm59_vm0, %v11480_v0 }
  0x7d   :  { %175 = vst.msk [vmem:[#allocation2 + $0x1cc] sm:$0xf] %vm59_vm0, %v11480_v0 }
  0x7e   :  { %176 = vst.msk [vmem:[#allocation2 + $0x1d0] sm:$0xf] %vm59_vm0, %v11480_v0 }
  0x7f   :  { %177 = vst.msk [vmem:[#allocation2 + $0x1d4] sm:$0xf] %vm59_vm0, %v11480_v0 }
  0x80   :  { %178 = vst.msk [vmem:[#allocation2 + $0x1d8] sm:$0xf] %vm59_vm0, %v11480_v0 }
  0x81   :  { %179 = vst.msk [vmem:[#allocation2 + $0x1dc] sm:$0xf] %vm59_vm0, %v11480_v0 }
  0x82   :  { %180 = vst.msk [vmem:[#allocation2 + $0x1e0] sm:$0xf] %vm59_vm0, %v11480_v0 }
  0x83   :  { %181 = vst.msk [vmem:[#allocation2 + $0x1e4] sm:$0xf] %vm59_vm0, %v11480_v0 }
  0x84   :  { %182 = vst.msk [vmem:[#allocation2 + $0x1e8] sm:$0xf] %vm59_vm0, %v11480_v0 }
  0x85   :  { %183 = vst.msk [vmem:[#allocation2 + $0x1ec] sm:$0xf] %vm59_vm0, %v11480_v0 }
  0x86   :  { %184 = vst.msk [vmem:[#allocation2 + $0x1f0] sm:$0xf] %vm59_vm0, %v11480_v0 }
  0x87   :  { %185 = vst.msk [vmem:[#allocation2 + $0x1f4] sm:$0xf] %vm59_vm0, %v11480_v0 }
  0x88   :  { %186 = vst.msk [vmem:[#allocation2 + $0x1f8] sm:$0xf] %vm59_vm0, %v11480_v0 }
  0x89   :  { %187 = vst.msk [vmem:[#allocation2 + $0x1fc] sm:$0xf] %vm59_vm0, %v11480_v0 }
  0x8a   :  { %188 = vst.msk [vmem:[#allocation2 + $0x200] sm:$0xf] %vm59_vm0, %v11480_v0 }
  0x8b   :  { %189 = vst.msk [vmem:[#allocation2 + $0x204] sm:$0xf] %vm59_vm0, %v11480_v0  ;;  %8609 = vmatmul.msk.bf16.gmra.mxu0 %vm667_vm1, %v10887_v20 }
  0x8c   :  { %190 = vst.msk [vmem:[#allocation2 + $0x208] sm:$0xf] %vm59_vm0, %v11480_v0 }
  0x8d   :  { %191 = vst.msk [vmem:[#allocation2 + $0x20c] sm:$0xf] %vm59_vm0, %v11480_v0 }
  0x8e   :  { %192 = vst.msk [vmem:[#allocation2 + $0x210] sm:$0xf] %vm59_vm0, %v11480_v0 }
  0x8f   :  { %193 = vst.msk [vmem:[#allocation2 + $0x214] sm:$0xf] %vm59_vm0, %v11480_v0 }
  0x90   :  { %194 = vst.msk [vmem:[#allocation2 + $0x218] sm:$0xf] %vm59_vm0, %v11480_v0 }
  0x91   :  { %195 = vst.msk [vmem:[#allocation2 + $0x21c] sm:$0xf] %vm59_vm0, %v11480_v0 }
  0x92   :  { %196 = vst.msk [vmem:[#allocation2 + $0x220] sm:$0xf] %vm59_vm0, %v11480_v0 }
  0x93   :  { %197 = vst.msk [vmem:[#allocation2 + $0x224] sm:$0xf] %vm59_vm0, %v11480_v0 }
  0x94   :  { %198 = vst.msk [vmem:[#allocation2 + $0x228] sm:$0xf] %vm59_vm0, %v11480_v0  ;;  %v1146_v2 = vpop.f32.mrf.mxu1 }
  0x95   :  { %199 = vst.msk [vmem:[#allocation2 + $0x22c] sm:$0xf] %vm59_vm0, %v11480_v0 }
  0x96   :  { %202 = vst.msk [vmem:[#allocation2 + $0x238] sm:$0xf] %vm59_vm0, %v11480_v0 }
  0x97   :  { %203 = vst.msk [vmem:[#allocation2 + $0x23c] sm:$0xf] %vm59_vm0, %v11480_v0 }
  0x98   :  { %204 = vst.msk [vmem:[#allocation2 + $0x240] sm:$0xf] %vm59_vm0, %v11480_v0 }
  0x99   :  { %205 = vst.msk [vmem:[#allocation2 + $0x244] sm:$0xf] %vm59_vm0, %v11480_v0 }
  0x9a   :  { %206 = vst.msk [vmem:[#allocation2 + $0x248] sm:$0xf] %vm59_vm0, %v11480_v0 }
  0x9b   :  { %207 = vst.msk [vmem:[#allocation2 + $0x24c] sm:$0xf] %vm59_vm0, %v11480_v0  ;;  %8610 = vmatmul.msk.bf16.gmra.mxu0 %vm667_vm1, %v10888_v28 }
  0x9c   :  { %208 = vst.msk [vmem:[#allocation2 + $0x250] sm:$0xf] %vm59_vm0, %v11480_v0  ;;  %v1148_v10 = vpop.f32.mrf.mxu1 }
  0x9d   :  { %209 = vst.msk [vmem:[#allocation2 + $0x254] sm:$0xf] %vm59_vm0, %v11480_v0 }
  0x9e   :  { %210 = vst.msk [vmem:[#allocation2 + $0x258] sm:$0xf] %vm59_vm0, %v11480_v0  ;;  %v10914_v11 = vld [vmem:[#allocation2 + $0x238] sm:$0xff] }
  0x9f   :  { %211 = vst.msk [vmem:[#allocation2 + $0x25c] sm:$0xf] %vm59_vm0, %v11480_v0  ;;  %8902 = vmatmul.msk.bf16.vlgmr.msra.gmra.mxu2 %vm667_vm1, %v10914_v11 }
  0xa0   :  { %212 = vst.msk [vmem:[#allocation2 + $0x260] sm:$0xf] %vm59_vm0, %v11480_v0  ;;  %v10915_v14 = vld [vmem:[#allocation2 + $0x240] sm:$0xff] }
  0xa1   :  { %213 = vst.msk [vmem:[#allocation2 + $0x264] sm:$0xf] %vm59_vm0, %v11480_v0 }
  0xa2   :  { %214 = vst.msk [vmem:[#allocation2 + $0x268] sm:$0xf] %vm59_vm0, %v11480_v0  ;;  %v10916_v18 = vld [vmem:[#allocation2 + $0x248] sm:$0xff] }
  0xa3   :  { %215 = vst.msk [vmem:[#allocation2 + $0x26c] sm:$0xf] %vm59_vm0, %v11480_v0 }
  0xa4   :  { %216 = vst.msk [vmem:[#allocation2 + $0x270] sm:$0xf] %vm59_vm0, %v11480_v0  ;;  %v10917_v22 = vld [vmem:[#allocation2 + $0x250] sm:$0xff] }
  0xa5   :  { %217 = vst.msk [vmem:[#allocation2 + $0x274] sm:$0xf] %vm59_vm0, %v11480_v0 }
  0xa6   :  { %218 = vst.msk [vmem:[#allocation2 + $0x278] sm:$0xf] %vm59_vm0, %v11480_v0  ;;  %v10918_v30 = vld [vmem:[#allocation2 + $0x258] sm:$0xff] }
  0xa7   :  { %219 = vst.msk [vmem:[#allocation2 + $0x27c] sm:$0xf] %vm59_vm0, %v11480_v0 }
  0xa8   :  { %220 = vst.msk [vmem:[#allocation2 + $0x280] sm:$0xf] %vm59_vm0, %v11480_v0  ;;  %v10919_v34 = vld [vmem:[#allocation2 + $0x260] sm:$0xff] }
  0xa9   :  { %221 = vst.msk [vmem:[#allocation2 + $0x284] sm:$0xf] %vm59_vm0, %v11480_v0 }
  0xaa   :  { %222 = vst.msk [vmem:[#allocation2 + $0x288] sm:$0xf] %vm59_vm0, %v11480_v0 }
  0xab   :  { %223 = vst.msk [vmem:[#allocation2 + $0x28c] sm:$0xf] %vm59_vm0, %v11480_v0  ;;  %8611 = vmatmul.msk.bf16.gmra.mxu0 %vm667_vm1, %v10889_v32 }
  0xac   :  { %224 = vst.msk [vmem:[#allocation2 + $0x290] sm:$0xf] %vm59_vm0, %v11480_v0  ;;  %v10921_v63 = vld [vmem:[#allocation2 + $0x270] sm:$0xff] }
  0xad   :  { %225 = vst.msk [vmem:[#allocation2 + $0x294] sm:$0xf] %vm59_vm0, %v11480_v0 }
  0xae   :  { %226 = vst.msk [vmem:[#allocation2 + $0x298] sm:$0xf] %vm59_vm0, %v11480_v0  ;;  %v10922_v6 = vld [vmem:[#allocation2 + $0x278] sm:$0xff] }
  0xaf   :  { %227 = vst.msk [vmem:[#allocation2 + $0x29c] sm:$0xf] %vm59_vm0, %v11480_v0  ;;  %8903 = vmatmul.msk.bf16.gmra.mxu2 %vm667_vm1, %v10915_v14  ;;  %v1151_v14 = vpop.f32.mrf.mxu1 }
  0xb0   :  { %228 = vst.msk [vmem:[#allocation2 + $0x2a0] sm:$0xf] %vm59_vm0, %v11480_v0  ;;  %v10923_v17 = vld [vmem:[#allocation2 + $0x280] sm:$0xff] }
  0xb1   :  { %229 = vst.msk [vmem:[#allocation2 + $0x2a4] sm:$0xf] %vm59_vm0, %v11480_v0 }
  0xb2   :  { %230 = vst.msk [vmem:[#allocation2 + $0x2a8] sm:$0xf] %vm59_vm0, %v11480_v0  ;;  %v10924_v28 = vld [vmem:[#allocation2 + $0x288] sm:$0xff] }
  0xb3   :  { %231 = vst.msk [vmem:[#allocation2 + $0x2ac] sm:$0xf] %vm59_vm0, %v11480_v0 }
  0xb4   :  { %232 = vst.msk [vmem:[#allocation2 + $0x2b0] sm:$0xf] %vm59_vm0, %v11480_v0  ;;  %v10925_v44 = vld [vmem:[#allocation2 + $0x290] sm:$0xff] }
  0xb5   :  { %233 = vst.msk [vmem:[#allocation2 + $0x2b4] sm:$0xf] %vm59_vm0, %v11480_v0 }
  0xb6   :  { %234 = vst.msk [vmem:[#allocation2 + $0x2b8] sm:$0xf] %vm59_vm0, %v11480_v0 }
  0xb7   :  { %235 = vst.msk [vmem:[#allocation2 + $0x2bc] sm:$0xf] %vm59_vm0, %v11480_v0  ;;  %v1153_v20 = vpop.f32.mrf.mxu1 }
  0xb8   :  { %236 = vst.msk [vmem:[#allocation2 + $0x2c0] sm:$0xf] %vm59_vm0, %v11480_v0  ;;  %v11002_v20 = vld [vmem:[#allocation7 + $0xb0] sm:$0xff] }
  0xb9   :  { %237 = vst.msk [vmem:[#allocation2 + $0x2c4] sm:$0xf] %vm59_vm0, %v11480_v0  ;;  %2594 = vmatpush.bf16.msrb.mxu0 %v11002_v20 }
  0xba   :  { %238 = vst.msk [vmem:[#allocation2 + $0x2c8] sm:$0xf] %vm59_vm0, %v11480_v0 }
  0xbb   :  { %239 = vst.msk [vmem:[#allocation2 + $0x2cc] sm:$0xf] %vm59_vm0, %v11480_v0 }
  0xbc   :  { %240 = vst.msk [vmem:[#allocation2 + $0x2d0] sm:$0xf] %vm59_vm0, %v11480_v0 }
  0xbd   :  { %241 = vst.msk [vmem:[#allocation2 + $0x2d4] sm:$0xf] %vm59_vm0, %v11480_v0 }
  0xbe   :  { %242 = vst.msk [vmem:[#allocation2 + $0x2d8] sm:$0xf] %vm59_vm0, %v11480_v0 }
  0xbf   :  { %243 = vst.msk [vmem:[#allocation2 + $0x2dc] sm:$0xf] %vm59_vm0, %v11480_v0  ;;  %8904 = vmatmul.msk.bf16.gmra.mxu2 %vm667_vm1, %v10916_v18  ;;  %v1156_v24 = vpop.f32.mrf.mxu1 }
  0xc0   :  { %244 = vst.msk [vmem:[#allocation2 + $0x2e0] sm:$0xf] %vm59_vm0, %v11480_v0 }
  0xc1   :  { %245 = vst.msk [vmem:[#allocation2 + $0x2e4] sm:$0xf] %vm59_vm0, %v11480_v0 }
  0xc2   :  { %246 = vst.msk [vmem:[#allocation2 + $0x2e8] sm:$0xf] %vm59_vm0, %v11480_v0 }
  0xc3   :  { %247 = vst.msk [vmem:[#allocation2 + $0x2ec] sm:$0xf] %vm59_vm0, %v11480_v0 }
  0xc4   :  { %248 = vst.msk [vmem:[#allocation2 + $0x2f0] sm:$0xf] %vm59_vm0, %v11480_v0 }
  0xc5   :  { %249 = vst.msk [vmem:[#allocation2 + $0x2f4] sm:$0xf] %vm59_vm0, %v11480_v0 }
  0xc6   :  { %250 = vst.msk [vmem:[#allocation2 + $0x2f8] sm:$0xf] %vm59_vm0, %v11480_v0 }
  0xc7   :  { %251 = vst.msk [vmem:[#allocation2 + $0x2fc] sm:$0xf] %vm59_vm0, %v11480_v0 }
  0xc8   :  { %252 = vst.msk [vmem:[#allocation2 + $0x300] sm:$0xf] %vm59_vm0, %v11480_v0 }
  0xc9   :  { %253 = vst.msk [vmem:[#allocation2 + $0x304] sm:$0xf] %vm59_vm0, %v11480_v0 }
  0xca   :  { %254 = vst.msk [vmem:[#allocation2 + $0x308] sm:$0xf] %vm59_vm0, %v11480_v0 }
  0xcb   :  { %255 = vst.msk [vmem:[#allocation2 + $0x30c] sm:$0xf] %vm59_vm0, %v11480_v0 }
  0xcc   :  { %256 = vst.msk [vmem:[#allocation2 + $0x310] sm:$0xf] %vm59_vm0, %v11480_v0 }
  0xcd   :  { %257 = vst.msk [vmem:[#allocation2 + $0x314] sm:$0xf] %vm59_vm0, %v11480_v0 }
  0xce   :  { %258 = vst.msk [vmem:[#allocation2 + $0x318] sm:$0xf] %vm59_vm0, %v11480_v0 }
  0xcf   :  { %259 = vst.msk [vmem:[#allocation2 + $0x31c] sm:$0xf] %vm59_vm0, %v11480_v0  ;;  %8905 = vmatmul.msk.bf16.gmra.mxu2 %vm667_vm1, %v10917_v22 }
  0xd0   :  { %260 = vst.msk [vmem:[#allocation2 + $0x320] sm:$0xf] %vm59_vm0, %v11480_v0 }
  0xd1   :  { %261 = vst.msk [vmem:[#allocation2 + $0x324] sm:$0xf] %vm59_vm0, %v11480_v0 }
  0xd2   :  { %262 = vst.msk [vmem:[#allocation2 + $0x328] sm:$0xf] %vm59_vm0, %v11480_v0 }
  0xd3   :  { %263 = vst.msk [vmem:[#allocation2 + $0x32c] sm:$0xf] %vm59_vm0, %v11480_v0 }
  0xd4   :  { %264 = vst.msk [vmem:[#allocation2 + $0x330] sm:$0xf] %vm59_vm0, %v11480_v0 }
  0xd5   :  { %265 = vst.msk [vmem:[#allocation2 + $0x334] sm:$0xf] %vm59_vm0, %v11480_v0 }
  0xd6   :  { %266 = vst.msk [vmem:[#allocation2 + $0x338] sm:$0xf] %vm59_vm0, %v11480_v0 }
  0xd7   :  { %267 = vst.msk [vmem:[#allocation2 + $0x33c] sm:$0xf] %vm59_vm0, %v11480_v0 }
  0xd8   :  { %268 = vst.msk [vmem:[#allocation2 + $0x340] sm:$0xf] %vm59_vm0, %v11480_v0  ;;  %v761_v1 = vpop.f32.mrf.mxu0 }
  0xd9   :  { %269 = vst.msk [vmem:[#allocation2 + $0x344] sm:$0xf] %vm59_vm0, %v11480_v0  ;;  %v1147_v3 = vadd.f32 %v1146_v2, %v761_v1 }
  0xda   :  { %272 = vst.msk [vmem:[#allocation2 + $0x350] sm:$0xf] %vm59_vm0, %v11480_v0 }
  0xdb   :  { %273 = vst.msk [vmem:[#allocation2 + $0x354] sm:$0xf] %vm59_vm0, %v11480_v0 }
  0xdc   :  { %274 = vst.msk [vmem:[#allocation2 + $0x358] sm:$0xf] %vm59_vm0, %v11480_v0 }
  0xdd   :  { %275 = vst.msk [vmem:[#allocation2 + $0x35c] sm:$0xf] %vm59_vm0, %v11480_v0 }
  0xde   :  { %276 = vst.msk [vmem:[#allocation2 + $0x360] sm:$0xf] %vm59_vm0, %v11480_v0 }
  0xdf   :  { %277 = vst.msk [vmem:[#allocation2 + $0x364] sm:$0xf] %vm59_vm0, %v11480_v0  ;;  %8906 = vmatmul.msk.bf16.gmra.mxu2 %vm667_vm1, %v10918_v30 }
  0xe0   :  { %278 = vst.msk [vmem:[#allocation2 + $0x368] sm:$0xf] %vm59_vm0, %v11480_v0  ;;  %v763_v9 = vpop.f32.mrf.mxu0 }
  0xe1   :  { %279 = vst.msk [vmem:[#allocation2 + $0x36c] sm:$0xf] %vm59_vm0, %v11480_v0 }
  0xe2   :  { %280 = vst.msk [vmem:[#allocation2 + $0x370] sm:$0xf] %vm59_vm0, %v11480_v0  ;;  %v10944_v15 = vld [vmem:[#allocation2 + $0x350] sm:$0xff] }
  0xe3   :  { %281 = vst.msk [vmem:[#allocation2 + $0x374] sm:$0xf] %vm59_vm0, %v11480_v0  ;;  %9050 = vmatmul.msk.bf16.vlgmr.msra.gmra.mxu3 %vm667_vm1, %v10944_v15  ;;  %v10893_v15 = vld [vmem:[#allocation2 + $0x168] sm:$0xff] }
  0xe4   :  { %282 = vst.msk [vmem:[#allocation2 + $0x378] sm:$0xf] %vm59_vm0, %v11480_v0  ;;  %v10945_v19 = vld [vmem:[#allocation2 + $0x358] sm:$0xff] }
  0xe5   :  { %283 = vst.msk [vmem:[#allocation2 + $0x37c] sm:$0xf] %vm59_vm0, %v11480_v0 }
  0xe6   :  { %284 = vst.msk [vmem:[#allocation2 + $0x380] sm:$0xf] %vm59_vm0, %v11480_v0  ;;  %v10946_v27 = vld [vmem:[#allocation2 + $0x360] sm:$0xff] }
  0xe7   :  { %285 = vst.msk [vmem:[#allocation2 + $0x384] sm:$0xf] %vm59_vm0, %v11480_v0 }
  0xe8   :  { %286 = vst.msk [vmem:[#allocation2 + $0x388] sm:$0xf] %vm59_vm0, %v11480_v0  ;;  %v10947_v31 = vld [vmem:[#allocation2 + $0x368] sm:$0xff]  ;;  %v766_v13 = vpop.f32.mrf.mxu0 }
  0xe9   :  { %287 = vst.msk [vmem:[#allocation2 + $0x38c] sm:$0xf] %vm59_vm0, %v11480_v0 }
  0xea   :  { %288 = vst.msk [vmem:[#allocation2 + $0x390] sm:$0xf] %vm59_vm0, %v11480_v0  ;;  %v10948_v55 = vld [vmem:[#allocation2 + $0x370] sm:$0xff] }
  0xeb   :  { %289 = vst.msk [vmem:[#allocation2 + $0x394] sm:$0xf] %vm59_vm0, %v11480_v0 }
  0xec   :  { %290 = vst.msk [vmem:[#allocation2 + $0x398] sm:$0xf] %vm59_vm0, %v11480_v0  ;;  %v10949_v60 = vld [vmem:[#allocation2 + $0x378] sm:$0xff] }
  0xed   :  { %291 = vst.msk [vmem:[#allocation2 + $0x39c] sm:$0xf] %vm59_vm0, %v11480_v0  ;;  %v370_v53 = vld [vmem:[#allocation2 + $0x380] sm:$0x1] }
  0xee   :  { %292 = vst.msk [vmem:[#allocation2 + $0x3a0] sm:$0xf] %vm59_vm0, %v11480_v0  ;;  %v371_v56 = vsel %vm12104_vm10, %v365_v50, %v370_v53 }
  0xef   :  { %293 = vst.msk [vmem:[#allocation2 + $0x3a4] sm:$0xf] %vm59_vm0, %v11480_v0  ;;  %8907 = vmatmul.msk.bf16.gmra.mxu2 %vm667_vm1, %v10919_v34  ;;  %v1158_v34 = vpop.f32.mrf.mxu1 }
  0xf0   :  { %294 = vst.msk [vmem:[#allocation2 + $0x3a8] sm:$0xf] %vm59_vm0, %v11480_v0  ;;  %v10951_v11 = vld [vmem:[#allocation2 + $0x388] sm:$0xff] }
  0xf1   :  { %295 = vst.msk [vmem:[#allocation2 + $0x3ac] sm:$0xf] %vm59_vm0, %v11480_v0 }
  0xf2   :  { %296 = vst.msk [vmem:[#allocation2 + $0x3b0] sm:$0xf] %vm59_vm0, %v11480_v0  ;;  %v10952_v21 = vld [vmem:[#allocation2 + $0x390] sm:$0xff] }
  0xf3   :  { %297 = vst.msk [vmem:[#allocation2 + $0x3b4] sm:$0xf] %vm59_vm0, %v11480_v0  ;;  %9051 = vmatmul.msk.bf16.gmra.mxu3 %vm667_vm1, %v10945_v19  ;;  %v768_v19 = vpop.f32.mrf.mxu0 }
  0xf4   :  { %298 = vst.msk [vmem:[#allocation2 + $0x3b8] sm:$0xf] %vm59_vm0, %v11480_v0  ;;  %v10953_v36 = vld [vmem:[#allocation2 + $0x398] sm:$0xff] }
  0xf5   :  { %299 = vst.msk [vmem:[#allocation2 + $0x3bc] sm:$0xf] %vm59_vm0, %v11480_v0  ;;  %v11062_v19 = vld [vmem:[#allocation7 + $0x90] sm:$0xff] }
  0xf6   :  { %300 = vst.msk [vmem:[#allocation2 + $0x3c0] sm:$0xf] %vm59_vm0, %v11480_v0  ;;  %v10954_v50 = vld [vmem:[#allocation2 + $0x3a0] sm:$0xff]  ;;  %3598 = vmatpush.bf16.msrb.mxu2 %v11062_v19 }
  0xf7   :  { %301 = vst.msk [vmem:[#allocation2 + $0x3c4] sm:$0xf] %vm59_vm0, %v11480_v0  ;;  %v1161_v40 = vpop.f32.mrf.mxu1 }
  0xf8   :  { %302 = vst.msk [vmem:[#allocation2 + $0x3c8] sm:$0xf] %vm59_vm0, %v11480_v0  ;;  %v10955_v2 = vld [vmem:[#allocation2 + $0x3a8] sm:$0xff] }
  0xf9   :  { %303 = vst.msk [vmem:[#allocation2 + $0x3cc] sm:$0xf] %vm59_vm0, %v11480_v0 }
  0xfa   :  { %304 = vst.msk [vmem:[#allocation2 + $0x3d0] sm:$0xf] %vm59_vm0, %v11480_v0  ;;  %v10956_v14 = vld [vmem:[#allocation2 + $0x3b0] sm:$0xff] }
  0xfb   :  { %305 = vst.msk [vmem:[#allocation2 + $0x3d4] sm:$0xf] %vm59_vm0, %v11480_v0  ;;  %v771_v23 = vpop.f32.mrf.mxu0 }
  0xfc   :  { %306 = vst.msk [vmem:[#allocation2 + $0x3d8] sm:$0xf] %vm59_vm0, %v11480_v0  ;;  %v1157_v25 = vadd.f32 %v1156_v24, %v771_v23  ;;  %v10928_v24 = vld [vmem:[#allocation2 + $0x2a8] sm:$0xff]  ;;  %v10957_v34 = vld [vmem:[#allocation2 + $0x3b8] sm:$0xff] }
  0xfd   :  { %307 = vst.msk [vmem:[#allocation2 + $0x3dc] sm:$0xf] %vm59_vm0, %v11480_v0 }
  0xfe   :  { %308 = vst.msk [vmem:[#allocation2 + $0x3e0] sm:$0xf] %vm59_vm0, %v11480_v0 }
  0xff   :  { %309 = vst.msk [vmem:[#allocation2 + $0x3e4] sm:$0xf] %vm59_vm0, %v11480_v0  ;;  %v1163_v48 = vpop.f32.mrf.mxu1 }
 0x100   :  { %310 = vst.msk [vmem:[#allocation2 + $0x3e8] sm:$0xf] %vm59_vm0, %v11480_v0  ;;  %v10958_v48 = vld [vmem:[#allocation2 + $0x3c0] sm:$0xff] }
 0x101   :  { %311 = vst.msk [vmem:[#allocation2 + $0x3ec] sm:$0xf] %vm59_vm0, %v11480_v0 }
 0x102   :  { %312 = vst.msk [vmem:[#allocation2 + $0x3f0] sm:$0xf] %vm59_vm0, %v11480_v0 }
 0x103   :  { %313 = vst.msk [vmem:[#allocation2 + $0x3f4] sm:$0xf] %vm59_vm0, %v11480_v0  ;;  %9052 = vmatmul.msk.bf16.gmra.mxu3 %vm667_vm1, %v10946_v27  ;;  %v10864_v27 = vld [vmem:[#allocation2 + $0x58] sm:$0xff]  ;;  %v773_v33 = vpop.f32.mrf.mxu0 }
 0x104   :  { %314 = vst.msk [vmem:[#allocation2 + $0x3f8] sm:$0xf] %vm59_vm0, %v11480_v0 }
 0x105   :  { %315 = vst.msk [vmem:[#allocation2 + $0x3fc] sm:$0xf] %vm59_vm0, %v11480_v0 }
 0x106   :  { %316 = vst.msk [vmem:[#allocation2 + $0x400] sm:$0xf] %vm59_vm0, %v11480_v0 }
 0x107   :  { %317 = vst.msk [vmem:[#allocation2 + $0x404] sm:$0xf] %vm59_vm0, %v11480_v0 }
 0x108   :  { %318 = vst.msk [vmem:[#allocation2 + $0x408] sm:$0xf] %vm59_vm0, %v11480_v0 }
 0x109   :  { %319 = vst.msk [vmem:[#allocation2 + $0x40c] sm:$0xf] %vm59_vm0, %v11480_v0 }
 0x10a   :  { %320 = vst.msk [vmem:[#allocation2 + $0x410] sm:$0xf] %vm59_vm0, %v11480_v0 }
 0x10b   :  { %321 = vst.msk [vmem:[#allocation2 + $0x414] sm:$0xf] %vm59_vm0, %v11480_v0  ;;  %v776_v38 = vpop.f32.mrf.mxu0 }
 0x10c   :  { %322 = vst.msk [vmem:[#allocation2 + $0x418] sm:$0xf] %vm59_vm0, %v11480_v0 }
 0x10d   :  { %323 = vst.msk [vmem:[#allocation2 + $0x41c] sm:$0xf] %vm59_vm0, %v11480_v0 }
 0x10e   :  { %324 = vst.msk [vmem:[#allocation2 + $0x420] sm:$0xf] %vm59_vm0, %v11480_v0 }
 0x10f   :  { %325 = vst.msk [vmem:[#allocation2 + $0x424] sm:$0xf] %vm59_vm0, %v11480_v0 }
 0x110   :  { %326 = vst.msk [vmem:[#allocation2 + $0x428] sm:$0xf] %vm59_vm0, %v11480_v0 }
 0x111   :  { %327 = vst.msk [vmem:[#allocation2 + $0x42c] sm:$0xf] %vm59_vm0, %v11480_v0 }
 0x112   :  { %328 = vst.msk [vmem:[#allocation2 + $0x430] sm:$0xf] %vm59_vm0, %v11480_v0 }
 0x113   :  { %329 = vst.msk [vmem:[#allocation2 + $0x434] sm:$0xf] %vm59_vm0, %v11480_v0  ;;  %9053 = vmatmul.msk.bf16.gmra.mxu3 %vm667_vm1, %v10947_v31 }
 0x114   :  { %330 = vst.msk [vmem:[#allocation2 + $0x438] sm:$0xf] %vm59_vm0, %v11480_v0 }
 0x115   :  { %331 = vst.msk [vmem:[#allocation2 + $0x43c] sm:$0xf] %vm59_vm0, %v11480_v0 }
 0x116   :  { %332 = vst.msk [vmem:[#allocation2 + $0x440] sm:$0xf] %vm59_vm0, %v11480_v0 }
 0x117   :  { %333 = vst.msk [vmem:[#allocation2 + $0x444] sm:$0xf] %vm59_vm0, %v11480_v0 }
 0x118   :  { %334 = vst.msk [vmem:[#allocation2 + $0x448] sm:$0xf] %vm59_vm0, %v11480_v0 }
 0x119   :  { %335 = vst.msk [vmem:[#allocation2 + $0x44c] sm:$0xf] %vm59_vm0, %v11480_v0 }
 0x11a   :  { %336 = vst.msk [vmem:[#allocation2 + $0x450] sm:$0xf] %vm59_vm0, %v11480_v0 }
 0x11b   :  { %337 = vst.msk [vmem:[#allocation2 + $0x454] sm:$0xf] %vm59_vm0, %v11480_v0 }
 0x11c   :  { %338 = vst.msk [vmem:[#allocation2 + $0x458] sm:$0xf] %vm59_vm0, %v11480_v0 }
 0x11d   :  { %339 = vst.msk [vmem:[#allocation2 + $0x45c] sm:$0xf] %vm59_vm0, %v11480_v0 }
 0x11e   :  { %358 = vst [vmem:[#allocation2 + $0x150] sm:$0x3] %v357_v46 }
 0x11f   :  { %348 = vst.msk [vmem:[#allocation2 + $0x38] sm:$0x3] %vm347_vm2, %v346_v47  ;;  %v778_v47 = vpop.f32.mrf.mxu0 }
 0x120   :  { %380 = vst.msk [vmem:[#allocation2 + $0xa8] sm:$0x3] %vm347_vm2, %v379_v49 }
 0x121   :  { %364 = vst.msk [vmem:[#allocation2 + $0x268] sm:$0x1] %vm363_vm8, %v361_v51 }
 0x122   :  { %388 = vst.msk [vmem:[#allocation2 + $0x2d8] sm:$0x1] %vm363_vm8, %v387_v54  ;;  %v1592_v7 = vpop.f32.mrf.mxu2  ;;  %v1166_v54 = vpop.f32.mrf.mxu1 }
 0x123   :  { %372 = vst [vmem:[#allocation2 + $0x380] sm:$0x1] %v371_v56  ;;  %9054 = vmatmul.msk.bf16.gmra.mxu3 %vm667_vm1, %v10948_v55  ;;  %v1732_v8 = vadd.f32 %v1592_v7, %v1147_v3  ;;  %v10896_v56 = vld [vmem:[#allocation2 + $0x180] sm:$0xff]  ;;  %v10867_v7 = vld [vmem:[#allocation2 + $0x70] sm:$0xff] }
 0x125   :  { %v10890_v57 = vld [vmem:[#allocation2 + $0x150] sm:$0xff] }
 0x126   :  { %v10860_v58 = vld [vmem:[#allocation2 + $0x38] sm:$0xff]  ;;  %8612 = vmatmul.msk.bf16.gmra.mxu0 %vm667_vm1, %v10890_v57  ;;  %v10866_v57 = vld [vmem:[#allocation2 + $0x68] sm:$0xff] }
 0x127   :  { %8760 = vmatmul.msk.bf16.gmra.mxu1 %vm667_vm1, %v10860_v58  ;;  %v781_v53 = vpop.f32.mrf.mxu0  ;;  %v10926_v58 = vld [vmem:[#allocation2 + $0x298] sm:$0xff] }
 0x128   :  { %v10920_v59 = vld [vmem:[#allocation2 + $0x268] sm:$0xff]  ;;  %v1167_v55 = vadd.f32 %v1166_v54, %v781_v53 }
 0x129   :  { %8908 = vmatmul.msk.bf16.gmra.mxu2 %vm667_vm1, %v10920_v59 }
 0x12a   :  { %v10950_v0 = vld [vmem:[#allocation2 + $0x380] sm:$0xff]  ;;  %v1594_v12 = vpop.f32.mrf.mxu2 }
 0x132   :  { %v1597_v18 = vpop.f32.mrf.mxu2 }
 0x133   :  { %9055 = vmatmul.msk.bf16.gmra.mxu3 %vm667_vm1, %v10949_v60 }
 0x136   :  { %8613 = vmatmul.msk.bf16.gmra.mxu0 %vm667_vm1, %v10891_v61 }
 0x137   :  { %8761 = vmatmul.msk.bf16.gmra.mxu1 %vm667_vm1, %v10861_v62 }
 0x139   :  { %8909 = vmatmul.msk.bf16.gmra.mxu2 %vm667_vm1, %v10921_v63  ;;  %v783_v63 = vpop.f32.mrf.mxu0 }
 0x13a   :  { %v1599_v22 = vpop.f32.mrf.mxu2  ;;  %v10959_v63 = vld [vmem:[#allocation2 + $0x3c8] sm:$0xff] }
 0x142   :  { %v1602_v31 = vpop.f32.mrf.mxu2 }
 0x143   :  { %9056 = vmatmul.msk.bf16.gmra.mxu3 %vm667_vm1, %v10950_v0  ;;  %v1736_v32 = vadd.f32 %v1602_v31, %v1157_v25  ;;  %v1168_v0 = vpop.f32.mrf.mxu1 }
 0x144   :  { %v10901_v0 = vld [vmem:[#allocation2 + $0x1a8] sm:$0xff] }
 0x146   :  { %8614 = vmatmul.msk.bf16.gmra.mxu0 %vm667_vm1, %v10892_v4  ;;  %v786_v4 = vpop.f32.mrf.mxu0 }
 0x147   :  { %8762 = vmatmul.msk.bf16.gmra.mxu1 %vm667_vm1, %v10862_v5 }
 0x149   :  { %8910 = vmatmul.msk.bf16.gmra.mxu2 %vm667_vm1, %v10922_v6  ;;  %v10897_v6 = vld [vmem:[#allocation2 + $0x188] sm:$0xff] }
 0x14a   :  { %v1604_v37 = vpop.f32.mrf.mxu2 }
 0x14b   :  { %v1171_v5 = vpop.f32.mrf.mxu1  ;;  %v10869_v37 = vld [vmem:[#allocation2 + $0x80] sm:$0xff] }
 0x14c   :  { %v10931_v5 = vld [vmem:[#allocation2 + $0x2c0] sm:$0xff] }
 0x152   :  { %v1607_v46 = vpop.f32.mrf.mxu2 }
 0x153   :  { %9057 = vmatmul.msk.bf16.gmra.mxu3 %vm667_vm1, %v10951_v11  ;;  %v788_v11 = vpop.f32.mrf.mxu0  ;;  %v1173_v12 = vpop.f32.mrf.mxu1 }
 0x154   :  { %v10960_v11 = vld [vmem:[#allocation2 + $0x3d0] sm:$0xff] }
 0x155   :  { %v10902_v12 = vld [vmem:[#allocation2 + $0x1b0] sm:$0xff] }
 0x156   :  { %8615 = vmatmul.msk.bf16.gmra.mxu0 %vm667_vm1, %v10893_v15 }
 0x157   :  { %8763 = vmatmul.msk.bf16.gmra.mxu1 %vm667_vm1, %v10863_v16  ;;  %v10898_v16 = vld [vmem:[#allocation2 + $0x190] sm:$0xff] }
 0x159   :  { %8911 = vmatmul.msk.bf16.gmra.mxu2 %vm667_vm1, %v10923_v17  ;;  %v10868_v17 = vld [vmem:[#allocation2 + $0x78] sm:$0xff] }
 0x15a   :  { %v1609_v51 = vpop.f32.mrf.mxu2 }
 0x15b   :  { %v10870_v51 = vld [vmem:[#allocation2 + $0x88] sm:$0xff] }
 0x162   :  { %v1612_v61 = vpop.f32.mrf.mxu2 }
 0x163   :  { %9058 = vmatmul.msk.bf16.gmra.mxu3 %vm667_vm1, %v10952_v21  ;;  %v1740_v62 = vadd.f32 %v1612_v61, %v1167_v55  ;;  %v11092_v21 = vld [vmem:[#allocation7 + $0x80] sm:$0xff]  ;;  %v10930_v55 = vld [vmem:[#allocation2 + $0x2b8] sm:$0xff] }
 0x164   :  { %4100 = vmatpush.bf16.msrb.mxu3 %v11092_v21 }
 0x166   :  { %v2094_v29 = vpop.f32.mrf.mxu3  ;;  %8616 = vmatmul.msk.bf16.gmra.mxu0 %vm667_vm1, %v10894_v26 }
 0x167   :  { %v12132_v30 = vadd.f32 %v2094_v29, %v1732_v8  ;;  %8764 = vmatmul.msk.bf16.gmra.mxu1 %vm667_vm1, %v10864_v27  ;;  %v10927_v8 = vld [vmem:[#allocation2 + $0x2a0] sm:$0xff] }
 0x168   :  { %v11032_v27 = vld [vmem:[#allocation7 + $0xa0] sm:$0xff] }
 0x169   :  { %8912 = vmatmul.msk.bf16.gmra.mxu2 %vm667_vm1, %v10924_v28  ;;  %3096 = vmatpush.bf16.msrb.mxu1 %v11032_v27  ;;  %v10873_v27 = vld [vmem:[#allocation2 + $0xa0] sm:$0xff] }
 0x16a   :  { %v1614_v3 = vpop.f32.mrf.mxu2 }
 0x16e   :  { %v2096_v35 = vpop.f32.mrf.mxu3 }
 0x16f   :  { %v10899_v35 = vld [vmem:[#allocation2 + $0x198] sm:$0xff] }
 0x172   :  { %v1617_v10 = vpop.f32.mrf.mxu2 }
 0x173   :  { %9059 = vmatmul.msk.bf16.gmra.mxu3 %vm667_vm1, %v10953_v36 }
 0x176   :  { %v2099_v45 = vpop.f32.mrf.mxu3  ;;  %8617 = vmatmul.msk.bf16.gmra.mxu0 %vm667_vm1, %v10895_v41  ;;  %v10929_v41 = vld [vmem:[#allocation2 + $0x2b0] sm:$0xff] }
 0x177   :  { %8765 = vmatmul.msk.bf16.gmra.mxu1 %vm667_vm1, %v10865_v42 }
 0x179   :  { %8913 = vmatmul.msk.bf16.gmra.mxu2 %vm667_vm1, %v10925_v44 }
 0x17a   :  { %v1619_v15 = vpop.f32.mrf.mxu2 }
 0x17e   :  { %v2101_v49 = vpop.f32.mrf.mxu3 }
 0x17f   :  { %v10900_v49 = vld [vmem:[#allocation2 + $0x1a0] sm:$0xff] }
 0x183   :  { %9060 = vmatmul.msk.bf16.gmra.mxu3 %vm667_vm1, %v10954_v50 }
 0x186   :  { %v2104_v59 = vpop.f32.mrf.mxu3  ;;  %8618 = vmatmul.msk.bf16.gmra.mxu0 %vm667_vm1, %v10896_v56 }
 0x187   :  { %v12142_v60 = vadd.f32 %v2104_v59, %v1736_v32  ;;  %8766 = vmatmul.msk.bf16.gmra.mxu1 %vm667_vm1, %v10866_v57 }
 0x189   :  { %8914 = vmatmul.msk.bf16.gmra.mxu2 %vm667_vm1, %v10926_v58 }
 0x18e   :  { %v2106_v1 = vpop.f32.mrf.mxu3 }
 0x193   :  { %9061 = vmatmul.msk.bf16.gmra.mxu3 %vm667_vm1, %v10955_v2  ;;  %v10871_v2 = vld [vmem:[#allocation2 + $0x90] sm:$0xff] }
 0x196   :  { %v2109_v9 = vpop.f32.mrf.mxu3  ;;  %8619 = vmatmul.msk.bf16.gmra.mxu0 %vm667_vm1, %v10897_v6 }
 0x197   :  { %8767 = vmatmul.msk.bf16.gmra.mxu1 %vm667_vm1, %v10867_v7 }
 0x199   :  { %8915 = vmatmul.msk.bf16.gmra.mxu2 %vm667_vm1, %v10927_v8 }
 0x19e   :  { %v2111_v13 = vpop.f32.mrf.mxu3 }
 0x1a3   :  { %9062 = vmatmul.msk.bf16.gmra.mxu3 %vm667_vm1, %v10956_v14  ;;  %v791_v18 = vpop.f32.mrf.mxu0  ;;  %v10872_v14 = vld [vmem:[#allocation2 + $0x98] sm:$0xff] }
 0x1a4   :  { %v1176_v22 = vpop.f32.mrf.mxu1 }
 0x1a5   :  { %v1177_v23 = vadd.f32 %v1176_v22, %v791_v18 }
 0x1a6   :  { %v2114_v25 = vpop.f32.mrf.mxu3  ;;  %8620 = vmatmul.msk.bf16.gmra.mxu0 %vm667_vm1, %v10898_v16 }
 0x1a7   :  { %v12152_v26 = vadd.f32 %v2114_v25, %v1740_v62  ;;  %8768 = vmatmul.msk.bf16.gmra.mxu1 %vm667_vm1, %v10868_v17  ;;  %v10932_v17 = vld [vmem:[#allocation2 + $0x2c8] sm:$0xff] }
 0x1a9   :  { %8916 = vmatmul.msk.bf16.gmra.mxu2 %vm667_vm1, %v10928_v24  ;;  %v10903_v24 = vld [vmem:[#allocation2 + $0x1b8] sm:$0xff] }
 0x1ab   :  { %v793_v28 = vpop.f32.mrf.mxu0 }
 0x1ac   :  { %v1622_v29 = vpop.f32.mrf.mxu2  ;;  %v1178_v31 = vpop.f32.mrf.mxu1  ;;  %v374_v28 = vld [vmem:[#allocation4 + $0x1] sm:$0x1] }
 0x1ad   :  { %v1744_v32 = vadd.f32 %v1622_v29, %v1177_v23  ;;  %v10961_v23 = vld [vmem:[#allocation2 + $0x3d8] sm:$0xff] }
 0x1ae   :  { %v2116_v33 = vpop.f32.mrf.mxu3 }
 0x1af   :  { %v10933_v33 = vld [vmem:[#allocation2 + $0x2d0] sm:$0xff] }
 0x1b3   :  { %9063 = vmatmul.msk.bf16.gmra.mxu3 %vm667_vm1, %v10957_v34  ;;  %v796_v36 = vpop.f32.mrf.mxu0 }
 0x1b4   :  { %v1624_v38 = vpop.f32.mrf.mxu2  ;;  %v1181_v40 = vpop.f32.mrf.mxu1  ;;  %v383_v36 = vld [vmem:[#allocation2 + $0x1c0] sm:$0x3] }
 0x1b6   :  { %v2119_v42 = vpop.f32.mrf.mxu3  ;;  %8621 = vmatmul.msk.bf16.gmra.mxu0 %vm667_vm1, %v10899_v35  ;;  %v389_v35 = vpack.c.bf16 %v374_v28, %v374_v28 }
 0x1b7   :  { %8769 = vmatmul.msk.bf16.gmra.mxu1 %vm667_vm1, %v10869_v37  ;;  %v390_v37 = vld [vmem:[#allocation2 + $0x3f0] sm:$0x1] }
 0x1b8   :  { %v391_v40 = vsel %vm12104_vm10, %v389_v35, %v390_v37  ;;  %v10908_v35 = vld [vmem:[#allocation2 + $0x1e0] sm:$0xff]  ;;  %v10878_v37 = vld [vmem:[#allocation2 + $0xc8] sm:$0xff] }
 0x1b9   :  { %8917 = vmatmul.msk.bf16.gmra.mxu2 %vm667_vm1, %v10929_v41  ;;  %392 = vst [vmem:[#allocation2 + $0x3f0] sm:$0x1] %v391_v40 }
 0x1bb   :  { %v798_v44 = vpop.f32.mrf.mxu0 }
 0x1bc   :  { %v1627_v45 = vpop.f32.mrf.mxu2  ;;  %v1183_v46 = vpop.f32.mrf.mxu1 }
 0x1bd   :  { %v10962_v45 = vld [vmem:[#allocation2 + $0x3e0] sm:$0xff] }
 0x1be   :  { %v2121_v47 = vpop.f32.mrf.mxu3 }
 0x1c3   :  { %9064 = vmatmul.msk.bf16.gmra.mxu3 %vm667_vm1, %v10958_v48  ;;  %v801_v50 = vpop.f32.mrf.mxu0  ;;  %v10874_v48 = vld [vmem:[#allocation2 + $0xa8] sm:$0xff] }
 0x1c4   :  { %v1629_v53 = vpop.f32.mrf.mxu2  ;;  %v1186_v54 = vpop.f32.mrf.mxu1 }
 0x1c6   :  { %v2124_v56 = vpop.f32.mrf.mxu3  ;;  %8622 = vmatmul.msk.bf16.gmra.mxu0 %vm667_vm1, %v10900_v49 }
 0x1c7   :  { %v12162_v57 = vadd.f32 %v2124_v56, %v1744_v32  ;;  %8770 = vmatmul.msk.bf16.gmra.mxu1 %vm667_vm1, %v10870_v51  ;;  %v382_v32 = vpack.c.bf16 %v12091_v43, %v12091_v43  ;;  %v10934_v51 = vld [vmem:[#allocation2 + $0x2d8] sm:$0xff]  ;;  %v10963_v56 = vld [vmem:[#allocation2 + $0x3e8] sm:$0xff] }
 0x1c9   :  { %8918 = vmatmul.msk.bf16.gmra.mxu2 %vm667_vm1, %v10930_v55  ;;  %v384_v38 = vsel %vm12085_vm6, %v382_v32, %v383_v36 }
 0x1ca   :  { %385 = vst [vmem:[#allocation2 + $0x1c0] sm:$0x3] %v384_v38 }
 0x1cb   :  { %v803_v58 = vpop.f32.mrf.mxu0 }
 0x1cc   :  { %v1632_v59 = vpop.f32.mrf.mxu2  ;;  %v1188_v61 = vpop.f32.mrf.mxu1  ;;  %v10905_v58 = vld [vmem:[#allocation2 + $0x1c8] sm:$0xff] }
 0x1cd   :  { %v10875_v61 = vld [vmem:[#allocation2 + $0xb0] sm:$0xff] }
 0x1ce   :  { %v2126_v62 = vpop.f32.mrf.mxu3 }
 0x1d1   :  { %v10904_v46 = vld [vmem:[#allocation2 + $0x1c0] sm:$0xff] }
 0x1d3   :  { %9065 = vmatmul.msk.bf16.gmra.mxu3 %vm667_vm1, %v10959_v63  ;;  %v806_v1 = vpop.f32.mrf.mxu0 }
 0x1d4   :  { %v1634_v3 = vpop.f32.mrf.mxu2  ;;  %v1191_v4 = vpop.f32.mrf.mxu1 }
 0x1d6   :  { %v2129_v6 = vpop.f32.mrf.mxu3  ;;  %8623 = vmatmul.msk.bf16.gmra.mxu0 %vm667_vm1, %v10901_v0  ;;  %v10935_v0 = vld [vmem:[#allocation2 + $0x2e0] sm:$0xff] }
 0x1d7   :  { %8771 = vmatmul.msk.bf16.gmra.mxu1 %vm667_vm1, %v10871_v2  ;;  %v10964_v6 = vld [vmem:[#allocation2 + $0x3f0] sm:$0xff] }
 0x1d9   :  { %8919 = vmatmul.msk.bf16.gmra.mxu2 %vm667_vm1, %v10931_v5 }
 0x1db   :  { %v808_v7 = vpop.f32.mrf.mxu0 }
 0x1dc   :  { %v1637_v8 = vpop.f32.mrf.mxu2  ;;  %v1193_v9 = vpop.f32.mrf.mxu1  ;;  %v10906_v7 = vld [vmem:[#allocation2 + $0x1d0] sm:$0xff] }
 0x1dd   :  { %v10876_v9 = vld [vmem:[#allocation2 + $0xb8] sm:$0xff] }
 0x1de   :  { %v2131_v10 = vpop.f32.mrf.mxu3 }
 0x1e3   :  { %9066 = vmatmul.msk.bf16.gmra.mxu3 %vm667_vm1, %v10960_v11  ;;  %v811_v13 = vpop.f32.mrf.mxu0 }
 0x1e4   :  { %v1639_v15 = vpop.f32.mrf.mxu2  ;;  %v1196_v16 = vpop.f32.mrf.mxu1  ;;  %v10936_v13 = vld [vmem:[#allocation2 + $0x2e8] sm:$0xff] }
 0x1e6   :  { %v2134_v18 = vpop.f32.mrf.mxu3  ;;  %8624 = vmatmul.msk.bf16.gmra.mxu0 %vm667_vm1, %v10902_v12 }
 0x1e7   :  { %8772 = vmatmul.msk.bf16.gmra.mxu1 %vm667_vm1, %v10872_v14 }
 0x1e9   :  { %8920 = vmatmul.msk.bf16.gmra.mxu2 %vm667_vm1, %v10932_v17 }
 0x1eb   :  { %v813_v19 = vpop.f32.mrf.mxu0 }
 0x1ec   :  { %v1642_v20 = vpop.f32.mrf.mxu2  ;;  %v1198_v21 = vpop.f32.mrf.mxu1 }
 0x1ed   :  { %v10965_v20 = vld [vmem:[#allocation2 + $0x3f8] sm:$0xff] }
 0x1ee   :  { %v2136_v22 = vpop.f32.mrf.mxu3  ;;  %v10907_v21 = vld [vmem:[#allocation2 + $0x1d8] sm:$0xff] }
 0x1f3   :  { %9067 = vmatmul.msk.bf16.gmra.mxu3 %vm667_vm1, %v10961_v23  ;;  %v816_v25 = vpop.f32.mrf.mxu0  ;;  %v10877_v23 = vld [vmem:[#allocation2 + $0xc0] sm:$0xff] }
 0x1f4   :  { %v1644_v29 = vpop.f32.mrf.mxu2  ;;  %v1201_v31 = vpop.f32.mrf.mxu1 }
 0x1f6   :  { %v2139_v34 = vpop.f32.mrf.mxu3  ;;  %8625 = vmatmul.msk.bf16.gmra.mxu0 %vm667_vm1, %v10903_v24 }
 0x1f7   :  { %8773 = vmatmul.msk.bf16.gmra.mxu1 %vm667_vm1, %v10873_v27  ;;  %v10937_v27 = vld [vmem:[#allocation2 + $0x2f0] sm:$0xff]  ;;  %v10966_v34 = vld [vmem:[#allocation2 + $0x400] sm:$0xff] }
 0x1f9   :  { %8921 = vmatmul.msk.bf16.gmra.mxu2 %vm667_vm1, %v10933_v33 }
 0x1fb   :  { %v818_v41 = vpop.f32.mrf.mxu0 }
 0x1fc   :  { %v1647_v43 = vpop.f32.mrf.mxu2  ;;  %v1203_v42 = vpop.f32.mrf.mxu1 }
 0x1fd   :  { %v10938_v43 = vld [vmem:[#allocation2 + $0x2f8] sm:$0xff] }
 0x1fe   :  { %v2141_v44 = vpop.f32.mrf.mxu3 }
 0x203   :  { %9068 = vmatmul.msk.bf16.gmra.mxu3 %vm667_vm1, %v10962_v45  ;;  %v821_v47 = vpop.f32.mrf.mxu0 }
 0x204   :  { %v1649_v49 = vpop.f32.mrf.mxu2  ;;  %v1206_v50 = vpop.f32.mrf.mxu1 }
 0x205   :  { %v10967_v50 = vld [vmem:[#allocation2 + $0x408] sm:$0xff] }
 0x206   :  { %v2144_v39 = vpop.f32.mrf.mxu3  ;;  %8626 = vmatmul.msk.bf16.gmra.mxu0 %vm667_vm1, %v10904_v46 }
 0x207   :  { %8774 = vmatmul.msk.bf16.gmra.mxu1 %vm667_vm1, %v10874_v48 }
 0x209   :  { %8922 = vmatmul.msk.bf16.gmra.mxu2 %vm667_vm1, %v10934_v51  ;;  %v10909_v51 = vld [vmem:[#allocation2 + $0x1e8] sm:$0xff] }
 0x20b   :  { %v823_v52 = vpop.f32.mrf.mxu0 }
 0x20c   :  { %v1652_v53 = vpop.f32.mrf.mxu2  ;;  %v1208_v54 = vpop.f32.mrf.mxu1  ;;  %v10879_v52 = vld [vmem:[#allocation2 + $0xd0] sm:$0xff] }
 0x20e   :  { %v2146_v55 = vpop.f32.mrf.mxu3 }
 0x20f   :  { %v10939_v55 = vld [vmem:[#allocation2 + $0x300] sm:$0xff] }
 0x213   :  { %9069 = vmatmul.msk.bf16.gmra.mxu3 %vm667_vm1, %v10963_v56  ;;  %v826_v59 = vpop.f32.mrf.mxu0 }
 0x214   :  { %v1654_v62 = vpop.f32.mrf.mxu2  ;;  %v1211_v63 = vpop.f32.mrf.mxu1 }
 0x215   :  { %v10968_v63 = vld [vmem:[#allocation2 + $0x410] sm:$0xff] }
 0x216   :  { %v2149_v1 = vpop.f32.mrf.mxu3  ;;  %8627 = vmatmul.msk.bf16.gmra.mxu0 %vm667_vm1, %v10905_v58 }
 0x217   :  { %8775 = vmatmul.msk.bf16.gmra.mxu1 %vm667_vm1, %v10875_v61 }
 0x219   :  { %8923 = vmatmul.msk.bf16.gmra.mxu2 %vm667_vm1, %v10935_v0  ;;  %v10910_v0 = vld [vmem:[#allocation2 + $0x1f0] sm:$0xff] }
 0x21b   :  { %v828_v2 = vpop.f32.mrf.mxu0 }
 0x21c   :  { %v1657_v3 = vpop.f32.mrf.mxu2  ;;  %v1213_v4 = vpop.f32.mrf.mxu1  ;;  %v10880_v2 = vld [vmem:[#allocation2 + $0xd8] sm:$0xff] }
 0x21e   :  { %v2151_v5 = vpop.f32.mrf.mxu3 }
 0x223   :  { %9070 = vmatmul.msk.bf16.gmra.mxu3 %vm667_vm1, %v10964_v6  ;;  %v831_v8 = vpop.f32.mrf.mxu0  ;;  %v10940_v6 = vld [vmem:[#allocation2 + $0x308] sm:$0xff] }
 0x224   :  { %v1659_v10 = vpop.f32.mrf.mxu2  ;;  %v1216_v11 = vpop.f32.mrf.mxu1 }
 0x225   :  { %v1217_v12 = vadd.f32 %v1216_v11, %v831_v8 }
 0x226   :  { %v2154_v14 = vpop.f32.mrf.mxu3  ;;  %8628 = vmatmul.msk.bf16.gmra.mxu0 %vm667_vm1, %v10906_v7 }
 0x227   :  { %8776 = vmatmul.msk.bf16.gmra.mxu1 %vm667_vm1, %v10876_v9  ;;  %v10969_v14 = vld [vmem:[#allocation2 + $0x418] sm:$0xff] }
 0x229   :  { %8924 = vmatmul.msk.bf16.gmra.mxu2 %vm667_vm1, %v10936_v13 }
 0x22b   :  { %v833_v15 = vpop.f32.mrf.mxu0 }
 0x22c   :  { %v1662_v16 = vpop.f32.mrf.mxu2  ;;  %v1218_v17 = vpop.f32.mrf.mxu1  ;;  %v10911_v15 = vld [vmem:[#allocation2 + $0x1f8] sm:$0xff] }
 0x22d   :  { %v1760_v18 = vadd.f32 %v1662_v16, %v1217_v12  ;;  %v10881_v17 = vld [vmem:[#allocation2 + $0xe0] sm:$0xff] }
 0x22e   :  { %v2156_v19 = vpop.f32.mrf.mxu3 }
 0x233   :  { %9071 = vmatmul.msk.bf16.gmra.mxu3 %vm667_vm1, %v10965_v20  ;;  %v836_v22 = vpop.f32.mrf.mxu0  ;;  %v10941_v20 = vld [vmem:[#allocation2 + $0x310] sm:$0xff] }
 0x234   :  { %v1664_v24 = vpop.f32.mrf.mxu2  ;;  %v1221_v25 = vpop.f32.mrf.mxu1 }
 0x236   :  { %v2159_v28 = vpop.f32.mrf.mxu3  ;;  %8629 = vmatmul.msk.bf16.gmra.mxu0 %vm667_vm1, %v10907_v21 }
 0x237   :  { %8777 = vmatmul.msk.bf16.gmra.mxu1 %vm667_vm1, %v10877_v23  ;;  %v10974_v28 = vld [vmem:[#allocation2 + $0x18] sm:$0xff] }
 0x239   :  { %8925 = vmatmul.msk.bf16.gmra.mxu2 %vm667_vm1, %v10937_v27  ;;  %v10970_v27 = vld [vmem:[#allocation2 + $0x420] sm:$0xff] }
 0x23b   :  { %v838_v29 = vpop.f32.mrf.mxu0 }
 0x23c   :  { %v1667_v31 = vpop.f32.mrf.mxu2  ;;  %v1223_v32 = vpop.f32.mrf.mxu1  ;;  %v11004_v29 = vld [vmem:[#allocation2 + $0x130] sm:$0xff] }
 0x23d   :  { %v11183_v32 = vld [vmem:[#allocation7 + $0x58] sm:$0xff] }
 0x23e   :  { %v2161_v33 = vpop.f32.mrf.mxu3  ;;  %5605 = vmatpush.bf16.msra.mxu2 %v11183_v32  ;;  %v11038_v32 = vld [vmem:[#allocation2 + $0x268] sm:$0xff] }
 0x23f   :  { %v11123_v33 = vld [vmem:[#allocation7 + $0x78] sm:$0xff] }
 0x240   :  { %4601 = vmatpush.bf16.msra.mxu0 %v11123_v33 }
 0x243   :  { %9072 = vmatmul.msk.bf16.gmra.mxu3 %vm667_vm1, %v10966_v34  ;;  %v841_v36 = vpop.f32.mrf.mxu0  ;;  %v11213_v34 = vld [vmem:[#allocation7 + $0x48] sm:$0xff] }
 0x244   :  { %v1669_v38 = vpop.f32.mrf.mxu2  ;;  %v1226_v40 = vpop.f32.mrf.mxu1  ;;  %6107 = vmatpush.bf16.msra.mxu3 %v11213_v34 }
 0x245   :  { %v1227_v41 = vadd.f32 %v1226_v40, %v841_v36  ;;  %v11034_v38 = vld [vmem:[#allocation2 + $0x248] sm:$0xff] }
 0x246   :  { %v2164_v42 = vpop.f32.mrf.mxu3  ;;  %8630 = vmatmul.msk.bf16.gmra.mxu0 %vm667_vm1, %v10908_v35 }
 0x247   :  { %v12202_v44 = vadd.f32 %v2164_v42, %v1760_v18  ;;  %8778 = vmatmul.msk.bf16.gmra.mxu1 %vm667_vm1, %v10878_v37 }
 0x249   :  { %8926 = vmatmul.msk.bf16.gmra.mxu2 %vm667_vm1, %v10938_v43  ;;  %v11153_v43 = vld [vmem:[#allocation7 + $0x68] sm:$0xff] }
 0x24a   :  { %5103 = vmatpush.bf16.msra.mxu1 %v11153_v43 }
 0x24b   :  { %v843_v45 = vpop.f32.mrf.mxu0 }
 0x24c   :  { %v1672_v46 = vpop.f32.mrf.mxu2  ;;  %v1228_v47 = vpop.f32.mrf.mxu1 }
 0x24d   :  { %v1764_v48 = vadd.f32 %v1672_v46, %v1227_v41 }
 0x24e   :  { %v2166_v49 = vpop.f32.mrf.mxu3 }
 0x24f   :  { %v10971_v49 = vld [vmem:[#allocation2 + $0x428] sm:$0xff] }
 0x253   :  { %9073 = vmatmul.msk.bf16.gmra.mxu3 %vm667_vm1, %v10967_v50  ;;  %v846_v39 = vpop.f32.mrf.mxu0  ;;  %v10975_v50 = vld [vmem:[#allocation2 + $0x20] sm:$0xff] }
 0x254   :  { %v1674_v53 = vpop.f32.mrf.mxu2  ;;  %v1231_v54 = vpop.f32.mrf.mxu1  ;;  %v11005_v39 = vld [vmem:[#allocation2 + $0x138] sm:$0xff] }
 0x255   :  { %v11035_v54 = vld [vmem:[#allocation2 + $0x250] sm:$0xff] }
 0x256   :  { %v2169_v56 = vpop.f32.mrf.mxu3  ;;  %8631 = vmatmul.msk.bf16.gmra.mxu0 %vm667_vm1, %v10909_v51 }
 0x257   :  { %8779 = vmatmul.msk.bf16.gmra.mxu1 %vm667_vm1, %v10879_v52 }
 0x259   :  { %8927 = vmatmul.msk.bf16.gmra.mxu2 %vm667_vm1, %v10939_v55 }
 0x25b   :  { %v848_v58 = vpop.f32.mrf.mxu0 }
 0x25c   :  { %v1677_v59 = vpop.f32.mrf.mxu2  ;;  %v1233_v61 = vpop.f32.mrf.mxu1 }
 0x25e   :  { %v2171_v62 = vpop.f32.mrf.mxu3 }
 0x25f   :  { %v11064_v62 = vld [vmem:[#allocation2 + $0x360] sm:$0xff] }
 0x263   :  { %9074 = vmatmul.msk.bf16.gmra.mxu3 %vm667_vm1, %v10968_v63  ;;  %v851_v1 = vpop.f32.mrf.mxu0  ;;  %v10976_v63 = vld [vmem:[#allocation2 + $0x28] sm:$0xff] }
 0x264   :  { %v1679_v3 = vpop.f32.mrf.mxu2  ;;  %v1236_v4 = vpop.f32.mrf.mxu1 }
 0x265   :  { %v1237_v5 = vadd.f32 %v1236_v4, %v851_v1  ;;  %v11006_v1 = vld [vmem:[#allocation2 + $0x140] sm:$0xff]  ;;  %v11036_v4 = vld [vmem:[#allocation2 + $0x258] sm:$0xff] }
 0x266   :  { %v2174_v7 = vpop.f32.mrf.mxu3  ;;  %8632 = vmatmul.msk.bf16.gmra.mxu0 %vm667_vm1, %v10910_v0 }
 0x267   :  { %v12212_v8 = vadd.f32 %v2174_v7, %v1764_v48  ;;  %8780 = vmatmul.msk.bf16.gmra.mxu1 %vm667_vm1, %v10880_v2 }
 0x269   :  { %8928 = vmatmul.msk.bf16.gmra.mxu2 %vm667_vm1, %v10940_v6 }
 0x26b   :  { %v853_v9 = vpop.f32.mrf.mxu0 }
 0x26c   :  { %v1682_v10 = vpop.f32.mrf.mxu2  ;;  %v1238_v11 = vpop.f32.mrf.mxu1 }
 0x26d   :  { %v1768_v12 = vadd.f32 %v1682_v10, %v1237_v5 }
 0x26e   :  { %v2176_v13 = vpop.f32.mrf.mxu3 }
 0x26f   :  { %v10977_v13 = vld [vmem:[#allocation2 + $0x30] sm:$0xff] }
 0x273   :  { %9075 = vmatmul.msk.bf16.gmra.mxu3 %vm667_vm1, %v10969_v14  ;;  %v856_v16 = vpop.f32.mrf.mxu0 }
 0x274   :  { %v1684_v18 = vpop.f32.mrf.mxu2  ;;  %v1241_v19 = vpop.f32.mrf.mxu1 }
 0x275   :  { %v11037_v18 = vld [vmem:[#allocation2 + $0x260] sm:$0xff] }
 0x276   :  { %v2179_v21 = vpop.f32.mrf.mxu3  ;;  %8633 = vmatmul.msk.bf16.gmra.mxu0 %vm667_vm1, %v10911_v15  ;;  %v11007_v15 = vld [vmem:[#allocation2 + $0x148] sm:$0xff] }
 0x277   :  { %8781 = vmatmul.msk.bf16.gmra.mxu1 %vm667_vm1, %v10881_v17 }
 0x279   :  { %8929 = vmatmul.msk.bf16.gmra.mxu2 %vm667_vm1, %v10941_v20 }
 0x27b   :  { %v858_v22 = vpop.f32.mrf.mxu0 }
 0x27c   :  { %v1687_v23 = vpop.f32.mrf.mxu2  ;;  %v1243_v24 = vpop.f32.mrf.mxu1 }
 0x27d   :  { %v11066_v24 = vld [vmem:[#allocation2 + $0x370] sm:$0xff] }
 0x27e   :  { %v2181_v25 = vpop.f32.mrf.mxu3 }
 0x27f   :  { %v10978_v25 = vld [vmem:[#allocation2 + $0x38] sm:$0xff] }
 0x283   :  { %9076 = vmatmul.msk.bf16.gmra.mxu3 %vm667_vm1, %v10970_v27  ;;  %v861_v31 = vpop.f32.mrf.mxu0 }
 0x284   :  { %v1689_v35 = vpop.f32.mrf.mxu2  ;;  %v1246_v36 = vpop.f32.mrf.mxu1 }
 0x285   :  { %v1247_v37 = vadd.f32 %v1246_v36, %v861_v31 }
 0x286   :  { %v2184_v40 = vpop.f32.mrf.mxu3  ;;  %9198 = vmatmul.msk.bf16.vlgmr.msrb.gmra.mxu0 %vm667_vm1, %v10974_v28  ;;  %v11008_v28 = vld [vmem:[#allocation2 + $0x150] sm:$0xff] }
 0x287   :  { %v12222_v41 = vadd.f32 %v2184_v40, %v1768_v12  ;;  %9346 = vmatmul.msk.bf16.vlgmr.msrb.gmra.mxu1 %vm667_vm1, %v11004_v29  ;;  %v11065_v12 = vld [vmem:[#allocation2 + $0x368] sm:$0xff]  ;;  %v10979_v40 = vld [vmem:[#allocation2 + $0x40] sm:$0xff] }
 0x289   :  { %9494 = vmatmul.msk.bf16.vlgmr.msrb.gmra.mxu2 %vm667_vm1, %v11034_v38  ;;  %v11067_v38 = vld [vmem:[#allocation2 + $0x378] sm:$0xff] }
 0x28b   :  { %v863_v42 = vpop.f32.mrf.mxu0 }
 0x28c   :  { %v1692_v45 = vpop.f32.mrf.mxu2  ;;  %v1248_v46 = vpop.f32.mrf.mxu1  ;;  %v11009_v42 = vld [vmem:[#allocation2 + $0x158] sm:$0xff] }
 0x28d   :  { %v1772_v47 = vadd.f32 %v1692_v45, %v1247_v37 }
 0x28e   :  { %v2186_v48 = vpop.f32.mrf.mxu3 }
 0x293   :  { %9077 = vmatmul.msk.bf16.gmra.mxu3 %vm667_vm1, %v10971_v49  ;;  %v866_v51 = vpop.f32.mrf.mxu0 }
 0x294   :  { %v1694_v52 = vpop.f32.mrf.mxu2  ;;  %v1251_v53 = vpop.f32.mrf.mxu1 }
 0x295   :  { %v11068_v52 = vld [vmem:[#allocation2 + $0x380] sm:$0xff]  ;;  %v10980_v53 = vld [vmem:[#allocation2 + $0x48] sm:$0xff] }
 0x296   :  { %v2189_v55 = vpop.f32.mrf.mxu3  ;;  %9199 = vmatmul.msk.bf16.gmra.mxu0 %vm667_vm1, %v10975_v50 }
 0x297   :  { %9347 = vmatmul.msk.bf16.gmra.mxu1 %vm667_vm1, %v11005_v39  ;;  %v11010_v55 = vld [vmem:[#allocation2 + $0x160] sm:$0xff] }
 0x299   :  { %9495 = vmatmul.msk.bf16.gmra.mxu2 %vm667_vm1, %v11035_v54 }
 0x29b   :  { %v868_v56 = vpop.f32.mrf.mxu0 }
 0x29c   :  { %v1697_v58 = vpop.f32.mrf.mxu2  ;;  %v1253_v59 = vpop.f32.mrf.mxu1 }
 0x29d   :  { %v11040_v59 = vld [vmem:[#allocation2 + $0x278] sm:$0xff] }
 0x29e   :  { %v2191_v61 = vpop.f32.mrf.mxu3 }
 0x2a3   :  { %9642 = vmatmul.msk.bf16.vlgmr.msrb.gmra.mxu3 %vm667_vm1, %v11064_v62  ;;  %v871_v0 = vpop.f32.mrf.mxu0 }
 0x2a4   :  { %v1699_v2 = vpop.f32.mrf.mxu2  ;;  %v1256_v3 = vpop.f32.mrf.mxu1 }
 0x2a5   :  { %v11069_v2 = vld [vmem:[#allocation2 + $0x388] sm:$0xff]  ;;  %v10981_v3 = vld [vmem:[#allocation2 + $0x50] sm:$0xff] }
 0x2a6   :  { %v2194_v5 = vpop.f32.mrf.mxu3  ;;  %9200 = vmatmul.msk.bf16.gmra.mxu0 %vm667_vm1, %v10976_v63 }
 0x2a7   :  { %v12232_v6 = vadd.f32 %v2194_v5, %v1772_v47  ;;  %9348 = vmatmul.msk.bf16.gmra.mxu1 %vm667_vm1, %v11006_v1  ;;  %v11039_v47 = vld [vmem:[#allocation2 + $0x270] sm:$0xff]  ;;  %v11011_v5 = vld [vmem:[#allocation2 + $0x168] sm:$0xff] }
 0x2a9   :  { %9496 = vmatmul.msk.bf16.gmra.mxu2 %vm667_vm1, %v11036_v4 }
 0x2ab   :  { %v873_v7 = vpop.f32.mrf.mxu0 }
 0x2ac   :  { %v1702_v9 = vpop.f32.mrf.mxu2  ;;  %v1258_v10 = vpop.f32.mrf.mxu1 }
 0x2ad   :  { %v11041_v10 = vld [vmem:[#allocation2 + $0x280] sm:$0xff] }
 0x2ae   :  { %v2196_v11 = vpop.f32.mrf.mxu3 }
 0x2b3   :  { %9643 = vmatmul.msk.bf16.gmra.mxu3 %vm667_vm1, %v11065_v12  ;;  %v876_v14 = vpop.f32.mrf.mxu0 }
 0x2b4   :  { %v1704_v16 = vpop.f32.mrf.mxu2  ;;  %v1261_v17 = vpop.f32.mrf.mxu1 }
 0x2b5   :  { %v11070_v16 = vld [vmem:[#allocation2 + $0x390] sm:$0xff]  ;;  %v10982_v17 = vld [vmem:[#allocation2 + $0x58] sm:$0xff] }
 0x2b6   :  { %v2199_v19 = vpop.f32.mrf.mxu3  ;;  %9201 = vmatmul.msk.bf16.gmra.mxu0 %vm667_vm1, %v10977_v13 }
 0x2b7   :  { %9349 = vmatmul.msk.bf16.gmra.mxu1 %vm667_vm1, %v11007_v15  ;;  %v11012_v19 = vld [vmem:[#allocation2 + $0x170] sm:$0xff] }
 0x2b9   :  { %9497 = vmatmul.msk.bf16.gmra.mxu2 %vm667_vm1, %v11037_v18 }
 0x2bb   :  { %v878_v20 = vpop.f32.mrf.mxu0 }
 0x2bc   :  { %v1707_v21 = vpop.f32.mrf.mxu2  ;;  %v1263_v22 = vpop.f32.mrf.mxu1 }
 0x2be   :  { %v2201_v23 = vpop.f32.mrf.mxu3 }
 0x2bf   :  { %v11042_v23 = vld [vmem:[#allocation2 + $0x288] sm:$0xff] }
 0x2c3   :  { %9644 = vmatmul.msk.bf16.gmra.mxu3 %vm667_vm1, %v11066_v24  ;;  %v881_v27 = vpop.f32.mrf.mxu0 }
 0x2c4   :  { %v1709_v29 = vpop.f32.mrf.mxu2  ;;  %v1266_v31 = vpop.f32.mrf.mxu1 }
 0x2c6   :  { %v2204_v33 = vpop.f32.mrf.mxu3  ;;  %9202 = vmatmul.msk.bf16.gmra.mxu0 %vm667_vm1, %v10978_v25 }
 0x2c7   :  { %9350 = vmatmul.msk.bf16.gmra.mxu1 %vm667_vm1, %v11008_v28  ;;  %v11071_v33 = vld [vmem:[#allocation2 + $0x398] sm:$0xff] }
 0x2c9   :  { %9498 = vmatmul.msk.bf16.gmra.mxu2 %vm667_vm1, %v11038_v32 }
 0x2cb   :  { %v883_v34 = vpop.f32.mrf.mxu0 }
 0x2cc   :  { %v1712_v35 = vpop.f32.mrf.mxu2  ;;  %v1268_v36 = vpop.f32.mrf.mxu1  ;;  %v10983_v34 = vld [vmem:[#allocation2 + $0x60] sm:$0xff] }
 0x2cd   :  { %v11013_v35 = vld [vmem:[#allocation2 + $0x178] sm:$0xff] }
 0x2ce   :  { %v2206_v37 = vpop.f32.mrf.mxu3 }
 0x2d3   :  { %9645 = vmatmul.msk.bf16.gmra.mxu3 %vm667_vm1, %v11067_v38  ;;  %v886_v43 = vpop.f32.mrf.mxu0  ;;  %v11043_v38 = vld [vmem:[#allocation2 + $0x290] sm:$0xff] }
 0x2d4   :  { %v1714_v45 = vpop.f32.mrf.mxu2  ;;  %v1271_v46 = vpop.f32.mrf.mxu1 }
 0x2d6   :  { %v2209_v48 = vpop.f32.mrf.mxu3  ;;  %9203 = vmatmul.msk.bf16.gmra.mxu0 %vm667_vm1, %v10979_v40 }
 0x2d7   :  { %9351 = vmatmul.msk.bf16.gmra.mxu1 %vm667_vm1, %v11009_v42  ;;  %v10984_v48 = vld [vmem:[#allocation2 + $0x68] sm:$0xff] }
 0x2d9   :  { %9499 = vmatmul.msk.bf16.gmra.mxu2 %vm667_vm1, %v11039_v47  ;;  %v11072_v47 = vld [vmem:[#allocation2 + $0x3a0] sm:$0xff] }
 0x2db   :  { %v888_v49 = vpop.f32.mrf.mxu0 }
 0x2dc   :  { %v1717_v50 = vpop.f32.mrf.mxu2  ;;  %v1273_v51 = vpop.f32.mrf.mxu1 }
 0x2dd   :  { %v11014_v50 = vld [vmem:[#allocation2 + $0x180] sm:$0xff] }
 0x2de   :  { %v2211_v39 = vpop.f32.mrf.mxu3 }
 0x2e3   :  { %9646 = vmatmul.msk.bf16.gmra.mxu3 %vm667_vm1, %v11068_v52  ;;  %v891_v54 = vpop.f32.mrf.mxu0 }
 0x2e4   :  { %v1719_v56 = vpop.f32.mrf.mxu2  ;;  %v1276_v58 = vpop.f32.mrf.mxu1 }
 0x2e6   :  { %v2214_v61 = vpop.f32.mrf.mxu3  ;;  %9204 = vmatmul.msk.bf16.gmra.mxu0 %vm667_vm1, %v10980_v53  ;;  %v11044_v53 = vld [vmem:[#allocation2 + $0x298] sm:$0xff] }
 0x2e7   :  { %9352 = vmatmul.msk.bf16.gmra.mxu1 %vm667_vm1, %v11010_v55 }
 0x2e9   :  { %9500 = vmatmul.msk.bf16.gmra.mxu2 %vm667_vm1, %v11040_v59 }
 0x2eb   :  { %v893_v62 = vpop.f32.mrf.mxu0 }
 0x2ec   :  { %v1722_v63 = vpop.f32.mrf.mxu2  ;;  %v1278_v0 = vpop.f32.mrf.mxu1 }
 0x2ed   :  { %v11073_v0 = vld [vmem:[#allocation2 + $0x3a8] sm:$0xff] }
 0x2ee   :  { %v2216_v1 = vpop.f32.mrf.mxu3 }
 0x2ef   :  { %v10985_v1 = vld [vmem:[#allocation2 + $0x70] sm:$0xff] }
 0x2f3   :  { %9647 = vmatmul.msk.bf16.gmra.mxu3 %vm667_vm1, %v11069_v2  ;;  %v896_v4 = vpop.f32.mrf.mxu0  ;;  %v11015_v2 = vld [vmem:[#allocation2 + $0x188] sm:$0xff] }
 0x2f4   :  { %v1724_v7 = vpop.f32.mrf.mxu2  ;;  %v1281_v9 = vpop.f32.mrf.mxu1 }
 0x2f6   :  { %v2219_v11 = vpop.f32.mrf.mxu3  ;;  %9205 = vmatmul.msk.bf16.gmra.mxu0 %vm667_vm1, %v10981_v3 }
 0x2f7   :  { %9353 = vmatmul.msk.bf16.gmra.mxu1 %vm667_vm1, %v11011_v5  ;;  %v11045_v5 = vld [vmem:[#allocation2 + $0x2a0] sm:$0xff] }
 0x2f9   :  { %9501 = vmatmul.msk.bf16.gmra.mxu2 %vm667_vm1, %v11041_v10 }
 0x2fb   :  { %v898_v12 = vpop.f32.mrf.mxu0 }
 0x2fc   :  { %v1727_v13 = vpop.f32.mrf.mxu2  ;;  %v1283_v14 = vpop.f32.mrf.mxu1 }
 0x2fd   :  { %v11074_v13 = vld [vmem:[#allocation2 + $0x3b0] sm:$0xff]  ;;  %v10986_v14 = vld [vmem:[#allocation2 + $0x78] sm:$0xff] }
 0x2fe   :  { %v2221_v15 = vpop.f32.mrf.mxu3 }
 0x303   :  { %9648 = vmatmul.msk.bf16.gmra.mxu3 %vm667_vm1, %v11070_v16  ;;  %v2596_v18 = vpop.f32.mrf.mxu0  ;;  %v11016_v16 = vld [vmem:[#allocation2 + $0x190] sm:$0xff] }
 0x304   :  { %v1729_v20 = vpop.f32.mrf.mxu2  ;;  %v2736_v21 = vadd.f32 %v2596_v18, %v12132_v30  ;;  %v3098_v22 = vpop.f32.mrf.mxu1 }
 0x305   :  { %v11046_v20 = vld [vmem:[#allocation2 + $0x2a8] sm:$0xff] }
 0x306   :  { %v2224_v24 = vpop.f32.mrf.mxu3  ;;  %v3238_v25 = vadd.f32 %v3098_v22, %v2736_v21  ;;  %9206 = vmatmul.msk.bf16.gmra.mxu0 %vm667_vm1, %v10982_v17 }
 0x307   :  { %9354 = vmatmul.msk.bf16.gmra.mxu1 %vm667_vm1, %v11012_v19 }
 0x309   :  { %9502 = vmatmul.msk.bf16.gmra.mxu2 %vm667_vm1, %v11042_v23 }
 0x30b   :  { %v2598_v27 = vpop.f32.mrf.mxu0 }
 0x30c   :  { %v3600_v28 = vpop.f32.mrf.mxu2  ;;  %v3100_v29 = vpop.f32.mrf.mxu1 }
 0x30d   :  { %v3740_v31 = vadd.f32 %v3600_v28, %v3238_v25 }
 0x30e   :  { %v2226_v32 = vpop.f32.mrf.mxu3 }
 0x30f   :  { %v10987_v32 = vld [vmem:[#allocation2 + $0x80] sm:$0xff] }
 0x313   :  { %9649 = vmatmul.msk.bf16.gmra.mxu3 %vm667_vm1, %v11071_v33  ;;  %v2601_v30 = vpop.f32.mrf.mxu0  ;;  %v11017_v33 = vld [vmem:[#allocation2 + $0x198] sm:$0xff] }
 0x314   :  { %v3602_v36 = vpop.f32.mrf.mxu2  ;;  %v3103_v37 = vpop.f32.mrf.mxu1 }
 0x316   :  { %v2229_v40 = vpop.f32.mrf.mxu3  ;;  %9207 = vmatmul.msk.bf16.gmra.mxu0 %vm667_vm1, %v10983_v34 }
 0x317   :  { %9355 = vmatmul.msk.bf16.gmra.mxu1 %vm667_vm1, %v11013_v35  ;;  %v11047_v35 = vld [vmem:[#allocation2 + $0x2b0] sm:$0xff] }
 0x319   :  { %9503 = vmatmul.msk.bf16.gmra.mxu2 %vm667_vm1, %v11043_v38 }
 0x31b   :  { %v2603_v43 = vpop.f32.mrf.mxu0 }
 0x31c   :  { %v3605_v42 = vpop.f32.mrf.mxu2  ;;  %v3105_v45 = vpop.f32.mrf.mxu1 }
 0x31d   :  { %v11076_v42 = vld [vmem:[#allocation2 + $0x3c0] sm:$0xff]  ;;  %v10988_v45 = vld [vmem:[#allocation2 + $0x88] sm:$0xff] }
 0x31e   :  { %v2231_v46 = vpop.f32.mrf.mxu3 }
 0x31f   :  { %v11018_v46 = vld [vmem:[#allocation2 + $0x1a0] sm:$0xff] }
 0x323   :  { %9650 = vmatmul.msk.bf16.gmra.mxu3 %vm667_vm1, %v11072_v47  ;;  %v2606_v49 = vpop.f32.mrf.mxu0 }
 0x324   :  { %v3607_v51 = vpop.f32.mrf.mxu2  ;;  %v2740_v39 = vadd.f32 %v2606_v49, %v12142_v60  ;;  %v3108_v52 = vpop.f32.mrf.mxu1  ;;  %v11122_v49 = vld [vmem:[#allocation7 + $0x70] sm:$0xff] }
 0x325   :  { %4602 = vmatpush.bf16.msra.mxu0 %v11122_v49  ;;  %v11052_v49 = vld [vmem:[#allocation2 + $0x2d8] sm:$0xff] }
 0x326   :  { %v4102_v54 = vpop.f32.mrf.mxu3  ;;  %v3242_v55 = vadd.f32 %v3108_v52, %v2740_v39  ;;  %9208 = vmatmul.msk.bf16.gmra.mxu0 %vm667_vm1, %v10984_v48  ;;  %v11182_v48 = vld [vmem:[#allocation7 + $0x50] sm:$0xff] }
 0x327   :  { %v12268_v56 = vadd.f32 %v4102_v54, %v3740_v31  ;;  %9356 = vmatmul.msk.bf16.gmra.mxu1 %vm667_vm1, %v11014_v50  ;;  %v11075_v31 = vld [vmem:[#allocation2 + $0x3b8] sm:$0xff]  ;;  %v11212_v50 = vld [vmem:[#allocation7 + $0x40] sm:$0xff]  ;;  %5606 = vmatpush.bf16.msra.mxu2 %v11182_v48 }
 0x328   :  { %6108 = vmatpush.bf16.msra.mxu3 %v11212_v50 }
 0x329   :  { %9504 = vmatmul.msk.bf16.gmra.mxu2 %vm667_vm1, %v11044_v53  ;;  %v11048_v53 = vld [vmem:[#allocation2 + $0x2b8] sm:$0xff] }
 0x32b   :  { %v2608_v58 = vpop.f32.mrf.mxu0 }
 0x32c   :  { %v3610_v59 = vpop.f32.mrf.mxu2  ;;  %v3110_v61 = vpop.f32.mrf.mxu1 }
 0x32d   :  { %v3744_v62 = vadd.f32 %v3610_v59, %v3242_v55  ;;  %v11152_v59 = vld [vmem:[#allocation7 + $0x60] sm:$0xff] }
 0x32e   :  { %v4104_v63 = vpop.f32.mrf.mxu3  ;;  %5104 = vmatpush.bf16.msra.mxu1 %v11152_v59 }
 0x333   :  { %9651 = vmatmul.msk.bf16.gmra.mxu3 %vm667_vm1, %v11073_v0  ;;  %v2611_v60 = vpop.f32.mrf.mxu0 }
 0x334   :  { %v3612_v3 = vpop.f32.mrf.mxu2  ;;  %v3113_v4 = vpop.f32.mrf.mxu1  ;;  %v10989_v60 = vld [vmem:[#allocation2 + $0x90] sm:$0xff] }
 0x335   :  { %v11019_v3 = vld [vmem:[#allocation2 + $0x1a8] sm:$0xff] }
 0x336   :  { %v4107_v7 = vpop.f32.mrf.mxu3  ;;  %9209 = vmatmul.msk.bf16.gmra.mxu0 %vm667_vm1, %v10985_v1  ;;  %v11077_v1 = vld [vmem:[#allocation2 + $0x3c8] sm:$0xff] }
 0x337   :  { %9357 = vmatmul.msk.bf16.gmra.mxu1 %vm667_vm1, %v11015_v2  ;;  %v11049_v7 = vld [vmem:[#allocation2 + $0x2c0] sm:$0xff] }
 0x339   :  { %9505 = vmatmul.msk.bf16.gmra.mxu2 %vm667_vm1, %v11045_v5 }
 0x33b   :  { %v2613_v9 = vpop.f32.mrf.mxu0 }
 0x33c   :  { %v3615_v10 = vpop.f32.mrf.mxu2  ;;  %v3115_v11 = vpop.f32.mrf.mxu1 }
 0x33e   :  { %v4109_v12 = vpop.f32.mrf.mxu3 }
 0x343   :  { %9652 = vmatmul.msk.bf16.gmra.mxu3 %vm667_vm1, %v11074_v13  ;;  %v2616_v15 = vpop.f32.mrf.mxu0 }
 0x344   :  { %v3617_v17 = vpop.f32.mrf.mxu2  ;;  %v2744_v18 = vadd.f32 %v2616_v15, %v12152_v26  ;;  %v3118_v19 = vpop.f32.mrf.mxu1  ;;  %v10990_v15 = vld [vmem:[#allocation2 + $0x98] sm:$0xff] }
 0x345   :  { %v11020_v17 = vld [vmem:[#allocation2 + $0x1b0] sm:$0xff] }
 0x346   :  { %v4112_v21 = vpop.f32.mrf.mxu3  ;;  %v3246_v22 = vadd.f32 %v3118_v19, %v2744_v18  ;;  %9210 = vmatmul.msk.bf16.gmra.mxu0 %vm667_vm1, %v10986_v14  ;;  %v11078_v14 = vld [vmem:[#allocation2 + $0x3d0] sm:$0xff] }
 0x347   :  { %v12279_v23 = vadd.f32 %v4112_v21, %v3744_v62  ;;  %9358 = vmatmul.msk.bf16.gmra.mxu1 %vm667_vm1, %v11016_v16 }
 0x349   :  { %9506 = vmatmul.msk.bf16.gmra.mxu2 %vm667_vm1, %v11046_v20  ;;  %v11050_v20 = vld [vmem:[#allocation2 + $0x2c8] sm:$0xff] }
 0x34b   :  { %v2618_v24 = vpop.f32.mrf.mxu0 }
 0x34c   :  { %v3620_v25 = vpop.f32.mrf.mxu2  ;;  %v3120_v27 = vpop.f32.mrf.mxu1 }
 0x34d   :  { %v3748_v28 = vadd.f32 %v3620_v25, %v3246_v22 }
 0x34e   :  { %v4114_v29 = vpop.f32.mrf.mxu3 }
 0x34f   :  { %v11079_v29 = vld [vmem:[#allocation2 + $0x3d8] sm:$0xff] }
 0x353   :  { %9653 = vmatmul.msk.bf16.gmra.mxu3 %vm667_vm1, %v11075_v31  ;;  %v2621_v26 = vpop.f32.mrf.mxu0  ;;  %v10991_v31 = vld [vmem:[#allocation2 + $0xa0] sm:$0xff] }
 0x354   :  { %v3622_v34 = vpop.f32.mrf.mxu2  ;;  %v3123_v30 = vpop.f32.mrf.mxu1  ;;  %v11021_v26 = vld [vmem:[#allocation2 + $0x1b8] sm:$0xff] }
 0x355   :  { %v11051_v30 = vld [vmem:[#allocation2 + $0x2d0] sm:$0xff] }
 0x356   :  { %v4117_v36 = vpop.f32.mrf.mxu3  ;;  %9211 = vmatmul.msk.bf16.gmra.mxu0 %vm667_vm1, %v10987_v32 }
 0x357   :  { %9359 = vmatmul.msk.bf16.gmra.mxu1 %vm667_vm1, %v11017_v33 }
 0x359   :  { %9507 = vmatmul.msk.bf16.gmra.mxu2 %vm667_vm1, %v11047_v35 }
 0x35b   :  { %v2623_v37 = vpop.f32.mrf.mxu0 }
 0x35c   :  { %v3625_v38 = vpop.f32.mrf.mxu2  ;;  %v3125_v40 = vpop.f32.mrf.mxu1 }
 0x35e   :  { %v4119_v43 = vpop.f32.mrf.mxu3 }
 0x35f   :  { %v11080_v43 = vld [vmem:[#allocation2 + $0x3e0] sm:$0xff] }
 0x363   :  { %9654 = vmatmul.msk.bf16.gmra.mxu3 %vm667_vm1, %v11076_v42  ;;  %v2626_v47 = vpop.f32.mrf.mxu0  ;;  %v10992_v42 = vld [vmem:[#allocation2 + $0xa8] sm:$0xff] }
 0x364   :  { %v3627_v51 = vpop.f32.mrf.mxu2  ;;  %v2748_v39 = vadd.f32 %v2626_v47, %v12162_v57  ;;  %v3128_v52 = vpop.f32.mrf.mxu1 }
 0x366   :  { %v4122_v54 = vpop.f32.mrf.mxu3  ;;  %v3250_v55 = vadd.f32 %v3128_v52, %v2748_v39  ;;  %9212 = vmatmul.msk.bf16.gmra.mxu0 %vm667_vm1, %v10988_v45 }
 0x367   :  { %v12290_v58 = vadd.f32 %v4122_v54, %v3748_v28  ;;  %9360 = vmatmul.msk.bf16.gmra.mxu1 %vm667_vm1, %v11018_v46  ;;  %v11022_v46 = vld [vmem:[#allocation2 + $0x1c0] sm:$0xff]  ;;  %v11081_v54 = vld [vmem:[#allocation2 + $0x3e8] sm:$0xff] }
 0x369   :  { %9508 = vmatmul.msk.bf16.gmra.mxu2 %vm667_vm1, %v11048_v53 }
 0x36b   :  { %v2628_v61 = vpop.f32.mrf.mxu0 }
 0x36c   :  { %v3630_v62 = vpop.f32.mrf.mxu2  ;;  %v3130_v57 = vpop.f32.mrf.mxu1  ;;  %v11023_v61 = vld [vmem:[#allocation2 + $0x1c8] sm:$0xff] }
 0x36d   :  { %v3752_v63 = vadd.f32 %v3630_v62, %v3250_v55  ;;  %v10993_v55 = vld [vmem:[#allocation2 + $0xb0] sm:$0xff] }
 0x36e   :  { %v4124_v0 = vpop.f32.mrf.mxu3 }
 0x373   :  { %9655 = vmatmul.msk.bf16.gmra.mxu3 %vm667_vm1, %v11077_v1  ;;  %v2631_v2 = vpop.f32.mrf.mxu0 }
 0x374   :  { %v3632_v4 = vpop.f32.mrf.mxu2  ;;  %v3133_v5 = vpop.f32.mrf.mxu1 }
 0x375   :  { %v11082_v4 = vld [vmem:[#allocation2 + $0x3f0] sm:$0xff]  ;;  %v10994_v5 = vld [vmem:[#allocation2 + $0xb8] sm:$0xff] }
 0x376   :  { %v4127_v9 = vpop.f32.mrf.mxu3  ;;  %9213 = vmatmul.msk.bf16.gmra.mxu0 %vm667_vm1, %v10989_v60 }
 0x377   :  { %9361 = vmatmul.msk.bf16.gmra.mxu1 %vm667_vm1, %v11019_v3  ;;  %v11024_v9 = vld [vmem:[#allocation2 + $0x1d0] sm:$0xff] }
 0x379   :  { %9509 = vmatmul.msk.bf16.gmra.mxu2 %vm667_vm1, %v11049_v7 }
 0x37b   :  { %v2633_v10 = vpop.f32.mrf.mxu0 }
 0x37c   :  { %v3635_v11 = vpop.f32.mrf.mxu2  ;;  %v3135_v12 = vpop.f32.mrf.mxu1 }
 0x37d   :  { %v11054_v12 = vld [vmem:[#allocation2 + $0x2e8] sm:$0xff] }
 0x37e   :  { %v4129_v13 = vpop.f32.mrf.mxu3 }
 0x383   :  { %9656 = vmatmul.msk.bf16.gmra.mxu3 %vm667_vm1, %v11078_v14  ;;  %v2636_v16 = vpop.f32.mrf.mxu0 }
 0x384   :  { %v3637_v18 = vpop.f32.mrf.mxu2  ;;  %v3138_v19 = vpop.f32.mrf.mxu1 }
 0x385   :  { %v11083_v18 = vld [vmem:[#allocation2 + $0x3f8] sm:$0xff]  ;;  %v10995_v19 = vld [vmem:[#allocation2 + $0xc0] sm:$0xff] }
 0x386   :  { %v4132_v21 = vpop.f32.mrf.mxu3  ;;  %9214 = vmatmul.msk.bf16.gmra.mxu0 %vm667_vm1, %v10990_v15 }
 0x387   :  { %v12300_v22 = vadd.f32 %v4132_v21, %v3752_v63  ;;  %9362 = vmatmul.msk.bf16.gmra.mxu1 %vm667_vm1, %v11020_v17  ;;  %v11053_v63 = vld [vmem:[#allocation2 + $0x2e0] sm:$0xff]  ;;  %v11025_v21 = vld [vmem:[#allocation2 + $0x1d8] sm:$0xff] }
 0x389   :  { %9510 = vmatmul.msk.bf16.gmra.mxu2 %vm667_vm1, %v11050_v20 }
 0x38b   :  { %v2638_v24 = vpop.f32.mrf.mxu0 }
 0x38c   :  { %v3640_v25 = vpop.f32.mrf.mxu2  ;;  %v3140_v27 = vpop.f32.mrf.mxu1 }
 0x38d   :  { %v11055_v27 = vld [vmem:[#allocation2 + $0x2f0] sm:$0xff] }
 0x38e   :  { %v4134_v28 = vpop.f32.mrf.mxu3 }
 0x393   :  { %9657 = vmatmul.msk.bf16.gmra.mxu3 %vm667_vm1, %v11079_v29  ;;  %v2641_v32 = vpop.f32.mrf.mxu0 }
 0x394   :  { %v3642_v33 = vpop.f32.mrf.mxu2  ;;  %v3143_v34 = vpop.f32.mrf.mxu1 }
 0x395   :  { %v11084_v33 = vld [vmem:[#allocation2 + $0x400] sm:$0xff]  ;;  %v10996_v34 = vld [vmem:[#allocation2 + $0xc8] sm:$0xff] }
 0x396   :  { %v4137_v35 = vpop.f32.mrf.mxu3  ;;  %9215 = vmatmul.msk.bf16.gmra.mxu0 %vm667_vm1, %v10991_v31 }
 0x397   :  { %9363 = vmatmul.msk.bf16.gmra.mxu1 %vm667_vm1, %v11021_v26  ;;  %v11026_v35 = vld [vmem:[#allocation2 + $0x1e0] sm:$0xff] }
 0x399   :  { %9511 = vmatmul.msk.bf16.gmra.mxu2 %vm667_vm1, %v11051_v30 }
 0x39b   :  { %v2643_v36 = vpop.f32.mrf.mxu0 }
 0x39c   :  { %v3645_v37 = vpop.f32.mrf.mxu2  ;;  %v3145_v38 = vpop.f32.mrf.mxu1 }
 0x39e   :  { %v4139_v40 = vpop.f32.mrf.mxu3 }
 0x39f   :  { %v11056_v40 = vld [vmem:[#allocation2 + $0x2f8] sm:$0xff] }
 0x3a3   :  { %9658 = vmatmul.msk.bf16.gmra.mxu3 %vm667_vm1, %v11080_v43  ;;  %v2646_v45 = vpop.f32.mrf.mxu0 }
 0x3a4   :  { %v3647_v47 = vpop.f32.mrf.mxu2  ;;  %v3148_v48 = vpop.f32.mrf.mxu1 }
 0x3a6   :  { %v4142_v50 = vpop.f32.mrf.mxu3  ;;  %9216 = vmatmul.msk.bf16.gmra.mxu0 %vm667_vm1, %v10992_v42 }
 0x3a7   :  { %9364 = vmatmul.msk.bf16.gmra.mxu1 %vm667_vm1, %v11022_v46  ;;  %v11085_v50 = vld [vmem:[#allocation2 + $0x408] sm:$0xff] }
 0x3a9   :  { %9512 = vmatmul.msk.bf16.gmra.mxu2 %vm667_vm1, %v11052_v49 }
 0x3ab   :  { %v2648_v51 = vpop.f32.mrf.mxu0 }
 0x3ac   :  { %v3650_v39 = vpop.f32.mrf.mxu2  ;;  %v3150_v52 = vpop.f32.mrf.mxu1  ;;  %v10997_v51 = vld [vmem:[#allocation2 + $0xd0] sm:$0xff] }
 0x3ad   :  { %v11027_v39 = vld [vmem:[#allocation2 + $0x1e8] sm:$0xff] }
 0x3ae   :  { %v4144_v53 = vpop.f32.mrf.mxu3 }
 0x3b3   :  { %9659 = vmatmul.msk.bf16.gmra.mxu3 %vm667_vm1, %v11081_v54  ;;  %v2651_v59 = vpop.f32.mrf.mxu0  ;;  %v11057_v54 = vld [vmem:[#allocation2 + $0x300] sm:$0xff] }
 0x3b4   :  { %v3652_v62 = vpop.f32.mrf.mxu2  ;;  %v3153_v57 = vpop.f32.mrf.mxu1 }
 0x3b6   :  { %v4147_v0 = vpop.f32.mrf.mxu3  ;;  %9217 = vmatmul.msk.bf16.gmra.mxu0 %vm667_vm1, %v10993_v55 }
 0x3b7   :  { %9365 = vmatmul.msk.bf16.gmra.mxu1 %vm667_vm1, %v11023_v61  ;;  %v10998_v0 = vld [vmem:[#allocation2 + $0xd8] sm:$0xff] }
 0x3b9   :  { %9513 = vmatmul.msk.bf16.gmra.mxu2 %vm667_vm1, %v11053_v63  ;;  %v11086_v63 = vld [vmem:[#allocation2 + $0x410] sm:$0xff] }
 0x3bb   :  { %v2653_v1 = vpop.f32.mrf.mxu0 }
 0x3bc   :  { %v3655_v60 = vpop.f32.mrf.mxu2  ;;  %v3155_v2 = vpop.f32.mrf.mxu1 }
 0x3bd   :  { %v11028_v60 = vld [vmem:[#allocation2 + $0x1f0] sm:$0xff] }
 0x3be   :  { %v4149_v3 = vpop.f32.mrf.mxu3 }
 0x3c3   :  { %9660 = vmatmul.msk.bf16.gmra.mxu3 %vm667_vm1, %v11082_v4  ;;  %v2656_v7 = vpop.f32.mrf.mxu0 }
 0x3c4   :  { %v3657_v10 = vpop.f32.mrf.mxu2  ;;  %v3158_v11 = vpop.f32.mrf.mxu1 }
 0x3c6   :  { %v4152_v13 = vpop.f32.mrf.mxu3  ;;  %9218 = vmatmul.msk.bf16.gmra.mxu0 %vm667_vm1, %v10994_v5  ;;  %v11058_v5 = vld [vmem:[#allocation2 + $0x308] sm:$0xff] }
 0x3c7   :  { %9366 = vmatmul.msk.bf16.gmra.mxu1 %vm667_vm1, %v11024_v9 }
 0x3c9   :  { %9514 = vmatmul.msk.bf16.gmra.mxu2 %vm667_vm1, %v11054_v12 }
 0x3cb   :  { %v2658_v14 = vpop.f32.mrf.mxu0 }
 0x3cc   :  { %v3660_v15 = vpop.f32.mrf.mxu2  ;;  %v3160_v16 = vpop.f32.mrf.mxu1 }
 0x3cd   :  { %v11087_v16 = vld [vmem:[#allocation2 + $0x418] sm:$0xff] }
 0x3ce   :  { %v4154_v17 = vpop.f32.mrf.mxu3 }
 0x3cf   :  { %v10999_v17 = vld [vmem:[#allocation2 + $0xe0] sm:$0xff] }
 0x3d3   :  { %9661 = vmatmul.msk.bf16.gmra.mxu3 %vm667_vm1, %v11083_v18  ;;  %v2661_v20 = vpop.f32.mrf.mxu0  ;;  %v11029_v18 = vld [vmem:[#allocation2 + $0x1f8] sm:$0xff] }
 0x3d4   :  { %v3662_v24 = vpop.f32.mrf.mxu2  ;;  %v3163_v25 = vpop.f32.mrf.mxu1 }
 0x3d6   :  { %v4157_v28 = vpop.f32.mrf.mxu3  ;;  %9219 = vmatmul.msk.bf16.gmra.mxu0 %vm667_vm1, %v10995_v19 }
 0x3d7   :  { %9367 = vmatmul.msk.bf16.gmra.mxu1 %vm667_vm1, %v11025_v21  ;;  %v11059_v21 = vld [vmem:[#allocation2 + $0x310] sm:$0xff] }
 0x3d9   :  { %9515 = vmatmul.msk.bf16.gmra.mxu2 %vm667_vm1, %v11055_v27 }
 0x3db   :  { %v2663_v29 = vpop.f32.mrf.mxu0 }
 0x3dc   :  { %v3665_v31 = vpop.f32.mrf.mxu2  ;;  %v3165_v32 = vpop.f32.mrf.mxu1 }
 0x3dd   :  { %v11088_v31 = vld [vmem:[#allocation2 + $0x420] sm:$0xff]  ;;  %v11000_v32 = vld [vmem:[#allocation2 + $0xe8] sm:$0xff] }
 0x3de   :  { %v4159_v26 = vpop.f32.mrf.mxu3 }
 0x3e3   :  { %9662 = vmatmul.msk.bf16.gmra.mxu3 %vm667_vm1, %v11084_v33  ;;  %v2666_v30 = vpop.f32.mrf.mxu0  ;;  %v11030_v33 = vld [vmem:[#allocation2 + $0x200] sm:$0xff] }
 0x3e4   :  { %v3667_v36 = vpop.f32.mrf.mxu2  ;;  %v2764_v37 = vadd.f32 %v2666_v30, %v12202_v44  ;;  %v3168_v38 = vpop.f32.mrf.mxu1 }
 0x3e5   :  { %v11060_v36 = vld [vmem:[#allocation2 + $0x318] sm:$0xff] }
 0x3e6   :  { %v4162_v43 = vpop.f32.mrf.mxu3  ;;  %v3266_v42 = vadd.f32 %v3168_v38, %v2764_v37  ;;  %9220 = vmatmul.msk.bf16.gmra.mxu0 %vm667_vm1, %v10996_v34 }
 0x3e7   :  { %9368 = vmatmul.msk.bf16.gmra.mxu1 %vm667_vm1, %v11026_v35 }
 0x3e9   :  { %9516 = vmatmul.msk.bf16.gmra.mxu2 %vm667_vm1, %v11056_v40 }
 0x3eb   :  { %v2668_v45 = vpop.f32.mrf.mxu0 }
 0x3ec   :  { %v3670_v46 = vpop.f32.mrf.mxu2  ;;  %v3170_v47 = vpop.f32.mrf.mxu1 }
 0x3ed   :  { %v3768_v48 = vadd.f32 %v3670_v46, %v3266_v42 }
 0x3ee   :  { %v4164_v49 = vpop.f32.mrf.mxu3 }
 0x3ef   :  { %v11001_v49 = vld [vmem:[#allocation2 + $0xf0] sm:$0xff] }
 0x3f3   :  { %9663 = vmatmul.msk.bf16.gmra.mxu3 %vm667_vm1, %v11085_v50  ;;  %v2671_v44 = vpop.f32.mrf.mxu0  ;;  %v11031_v50 = vld [vmem:[#allocation2 + $0x208] sm:$0xff] }
 0x3f4   :  { %v3672_v52 = vpop.f32.mrf.mxu2  ;;  %v3173_v53 = vpop.f32.mrf.mxu1 }
 0x3f6   :  { %v4167_v55 = vpop.f32.mrf.mxu3  ;;  %9221 = vmatmul.msk.bf16.gmra.mxu0 %vm667_vm1, %v10997_v51 }
 0x3f7   :  { %9369 = vmatmul.msk.bf16.gmra.mxu1 %vm667_vm1, %v11027_v39  ;;  %v11061_v39 = vld [vmem:[#allocation2 + $0x320] sm:$0xff] }
 0x3f9   :  { %9517 = vmatmul.msk.bf16.gmra.mxu2 %vm667_vm1, %v11057_v54 }
 0x3fb   :  { %v2673_v59 = vpop.f32.mrf.mxu0 }
 0x3fc   :  { %v3675_v61 = vpop.f32.mrf.mxu2  ;;  %v3175_v62 = vpop.f32.mrf.mxu1 }
 0x3fd   :  { %v11090_v61 = vld [vmem:[#allocation2 + $0x430] sm:$0xff]  ;;  %v11094_v62 = vld [vmem:[#allocation2 + $0x28] sm:$0xff] }
 0x3fe   :  { %v4169_v57 = vpop.f32.mrf.mxu3 }
 0x3ff   :  { %v11124_v57 = vld [vmem:[#allocation2 + $0x140] sm:$0xff] }
 0x403   :  { %9664 = vmatmul.msk.bf16.gmra.mxu3 %vm667_vm1, %v11086_v63  ;;  %v2676_v1 = vpop.f32.mrf.mxu0 }
 0x404   :  { %v3677_v2 = vpop.f32.mrf.mxu2  ;;  %v2768_v3 = vadd.f32 %v2676_v1, %v12212_v8  ;;  %v3178_v4 = vpop.f32.mrf.mxu1  ;;  %v11243_v1 = vld [vmem:[#allocation7 + $0x38] sm:$0xff] }
 0x405   :  { %6609 = vmatpush.bf16.msrb.mxu0 %v11243_v1  ;;  %v11158_v1 = vld [vmem:[#allocation2 + $0x278] sm:$0xff] }
 0x406   :  { %v4172_v7 = vpop.f32.mrf.mxu3  ;;  %v3270_v9 = vadd.f32 %v3178_v4, %v2768_v3  ;;  %9222 = vmatmul.msk.bf16.gmra.mxu0 %vm667_vm1, %v10998_v0  ;;  %v11303_v0 = vld [vmem:[#allocation7 + $0x18] sm:$0xff] }
 0x407   :  { %v12336_v10 = vadd.f32 %v4172_v7, %v3768_v48  ;;  %9370 = vmatmul.msk.bf16.gmra.mxu1 %vm667_vm1, %v11028_v60  ;;  %v11089_v48 = vld [vmem:[#allocation2 + $0x428] sm:$0xff]  ;;  %7613 = vmatpush.bf16.msrb.mxu2 %v11303_v0 }
 0x408   :  { %v11333_v60 = vld [vmem:[#allocation7 + $0x8] sm:$0xff] }
 0x409   :  { %9518 = vmatmul.msk.bf16.gmra.mxu2 %vm667_vm1, %v11058_v5  ;;  %v11154_v5 = vld [vmem:[#allocation2 + $0x258] sm:$0xff]  ;;  %8114 = vmatpush.bf16.msrb.mxu3 %v11333_v60 }
 0x40b   :  { %v2678_v11 = vpop.f32.mrf.mxu0 }
 0x40c   :  { %v3680_v12 = vpop.f32.mrf.mxu2  ;;  %v3180_v13 = vpop.f32.mrf.mxu1 }
 0x40d   :  { %v3772_v14 = vadd.f32 %v3680_v12, %v3270_v9  ;;  %v11273_v12 = vld [vmem:[#allocation7 + $0x28] sm:$0xff] }
 0x40e   :  { %v4174_v15 = vpop.f32.mrf.mxu3  ;;  %7111 = vmatpush.bf16.msrb.mxu1 %v11273_v12 }
 0x413   :  { %9665 = vmatmul.msk.bf16.gmra.mxu3 %vm667_vm1, %v11087_v16  ;;  %v2681_v8 = vpop.f32.mrf.mxu0 }
 0x414   :  { %v3682_v19 = vpop.f32.mrf.mxu2  ;;  %v3183_v20 = vpop.f32.mrf.mxu1  ;;  %v11095_v8 = vld [vmem:[#allocation2 + $0x30] sm:$0xff] }
 0x415   :  { %v11125_v19 = vld [vmem:[#allocation2 + $0x148] sm:$0xff] }
 0x416   :  { %v4177_v24 = vpop.f32.mrf.mxu3  ;;  %9223 = vmatmul.msk.bf16.gmra.mxu0 %vm667_vm1, %v10999_v17  ;;  %v11091_v17 = vld [vmem:[#allocation2 + $0x438] sm:$0xff] }
 0x417   :  { %9371 = vmatmul.msk.bf16.gmra.mxu1 %vm667_vm1, %v11029_v18  ;;  %v11155_v24 = vld [vmem:[#allocation2 + $0x260] sm:$0xff] }
 0x419   :  { %9519 = vmatmul.msk.bf16.gmra.mxu2 %vm667_vm1, %v11059_v21 }
 0x41b   :  { %v2683_v25 = vpop.f32.mrf.mxu0 }
 0x41c   :  { %v3685_v27 = vpop.f32.mrf.mxu2  ;;  %v3185_v28 = vpop.f32.mrf.mxu1 }
 0x41e   :  { %v4179_v29 = vpop.f32.mrf.mxu3 }
 0x423   :  { %9666 = vmatmul.msk.bf16.gmra.mxu3 %vm667_vm1, %v11088_v31  ;;  %v2686_v26 = vpop.f32.mrf.mxu0 }
 0x424   :  { %v3687_v34 = vpop.f32.mrf.mxu2  ;;  %v2772_v30 = vadd.f32 %v2686_v26, %v12222_v41  ;;  %v3188_v35 = vpop.f32.mrf.mxu1  ;;  %v11096_v26 = vld [vmem:[#allocation2 + $0x38] sm:$0xff] }
 0x425   :  { %v11126_v34 = vld [vmem:[#allocation2 + $0x150] sm:$0xff] }
 0x426   :  { %v4182_v37 = vpop.f32.mrf.mxu3  ;;  %v3274_v38 = vadd.f32 %v3188_v35, %v2772_v30  ;;  %9224 = vmatmul.msk.bf16.gmra.mxu0 %vm667_vm1, %v11000_v32  ;;  %v11184_v32 = vld [vmem:[#allocation2 + $0x370] sm:$0xff] }
 0x427   :  { %v12347_v40 = vadd.f32 %v4182_v37, %v3772_v14  ;;  %9372 = vmatmul.msk.bf16.gmra.mxu1 %vm667_vm1, %v11030_v33 }
 0x429   :  { %9520 = vmatmul.msk.bf16.gmra.mxu2 %vm667_vm1, %v11060_v36  ;;  %v11156_v36 = vld [vmem:[#allocation2 + $0x268] sm:$0xff] }
 0x42b   :  { %v2688_v43 = vpop.f32.mrf.mxu0 }
 0x42c   :  { %v3690_v42 = vpop.f32.mrf.mxu2  ;;  %v3190_v45 = vpop.f32.mrf.mxu1 }
 0x42d   :  { %v3776_v46 = vadd.f32 %v3690_v42, %v3274_v38 }
 0x42e   :  { %v4184_v47 = vpop.f32.mrf.mxu3 }
 0x42f   :  { %v11185_v47 = vld [vmem:[#allocation2 + $0x378] sm:$0xff] }
 0x433   :  { %9667 = vmatmul.msk.bf16.gmra.mxu3 %vm667_vm1, %v11089_v48  ;;  %v2691_v41 = vpop.f32.mrf.mxu0  ;;  %v11097_v48 = vld [vmem:[#allocation2 + $0x40] sm:$0xff] }
 0x434   :  { %v3692_v51 = vpop.f32.mrf.mxu2  ;;  %v3193_v44 = vpop.f32.mrf.mxu1  ;;  %v11127_v41 = vld [vmem:[#allocation2 + $0x158] sm:$0xff] }
 0x435   :  { %v11157_v44 = vld [vmem:[#allocation2 + $0x270] sm:$0xff] }
 0x436   :  { %v4187_v52 = vpop.f32.mrf.mxu3  ;;  %9225 = vmatmul.msk.bf16.gmra.mxu0 %vm667_vm1, %v11001_v49 }
 0x437   :  { %9373 = vmatmul.msk.bf16.gmra.mxu1 %vm667_vm1, %v11031_v50 }
 0x439   :  { %9521 = vmatmul.msk.bf16.gmra.mxu2 %vm667_vm1, %v11061_v39 }
 0x43b   :  { %v2693_v53 = vpop.f32.mrf.mxu0 }
 0x43c   :  { %v3695_v54 = vpop.f32.mrf.mxu2  ;;  %v3195_v55 = vpop.f32.mrf.mxu1 }
 0x43e   :  { %v4189_v59 = vpop.f32.mrf.mxu3 }
 0x43f   :  { %v11186_v59 = vld [vmem:[#allocation2 + $0x380] sm:$0xff] }
 0x443   :  { %9668 = vmatmul.msk.bf16.gmra.mxu3 %vm667_vm1, %v11090_v61  ;;  %v2696_v63 = vpop.f32.mrf.mxu0  ;;  %v11098_v61 = vld [vmem:[#allocation2 + $0x48] sm:$0xff] }
 0x444   :  { %v3697_v2 = vpop.f32.mrf.mxu2  ;;  %v2776_v3 = vadd.f32 %v2696_v63, %v12232_v6  ;;  %v3198_v4 = vpop.f32.mrf.mxu1 }
 0x446   :  { %v4192_v7 = vpop.f32.mrf.mxu3  ;;  %v3278_v9 = vadd.f32 %v3198_v4, %v2776_v3  ;;  %9790 = vmatmul.msk.bf16.vlgmr.msra.gmra.mxu0 %vm667_vm1, %v11094_v62 }
 0x447   :  { %v12358_v11 = vadd.f32 %v4192_v7, %v3776_v46  ;;  %9938 = vmatmul.msk.bf16.vlgmr.msra.gmra.mxu1 %vm667_vm1, %v11124_v57  ;;  %v11128_v57 = vld [vmem:[#allocation2 + $0x160] sm:$0xff]  ;;  %v11187_v7 = vld [vmem:[#allocation2 + $0x388] sm:$0xff] }
 0x449   :  { %10086 = vmatmul.msk.bf16.vlgmr.msra.gmra.mxu2 %vm667_vm1, %v11154_v5 }
 0x44b   :  { %v2698_v13 = vpop.f32.mrf.mxu0 }
 0x44c   :  { %v3700_v14 = vpop.f32.mrf.mxu2  ;;  %v3200_v6 = vpop.f32.mrf.mxu1  ;;  %v11129_v13 = vld [vmem:[#allocation2 + $0x168] sm:$0xff] }
 0x44d   :  { %v3780_v15 = vadd.f32 %v3700_v14, %v3278_v9  ;;  %v11099_v9 = vld [vmem:[#allocation2 + $0x50] sm:$0xff] }
 0x44e   :  { %v4194_v16 = vpop.f32.mrf.mxu3 }
 0x453   :  { %9669 = vmatmul.msk.bf16.gmra.mxu3 %vm667_vm1, %v11091_v17  ;;  %v2701_v18 = vpop.f32.mrf.mxu0 }
 0x454   :  { %v3702_v20 = vpop.f32.mrf.mxu2  ;;  %v3203_v21 = vpop.f32.mrf.mxu1 }
 0x455   :  { %v11188_v20 = vld [vmem:[#allocation2 + $0x390] sm:$0xff]  ;;  %v11100_v21 = vld [vmem:[#allocation2 + $0x58] sm:$0xff] }
 0x456   :  { %v4197_v25 = vpop.f32.mrf.mxu3  ;;  %9791 = vmatmul.msk.bf16.gmra.mxu0 %vm667_vm1, %v11095_v8 }
 0x457   :  { %9939 = vmatmul.msk.bf16.gmra.mxu1 %vm667_vm1, %v11125_v19  ;;  %v11130_v25 = vld [vmem:[#allocation2 + $0x170] sm:$0xff] }
 0x459   :  { %10087 = vmatmul.msk.bf16.gmra.mxu2 %vm667_vm1, %v11155_v24 }
 0x45b   :  { %v2703_v27 = vpop.f32.mrf.mxu0 }
 0x45c   :  { %v3705_v28 = vpop.f32.mrf.mxu2  ;;  %v3205_v29 = vpop.f32.mrf.mxu1 }
 0x45d   :  { %v11160_v29 = vld [vmem:[#allocation2 + $0x288] sm:$0xff] }
 0x45e   :  { %v4199_v31 = vpop.f32.mrf.mxu3 }
 0x463   :  { %10234 = vmatmul.msk.bf16.vlgmr.msra.gmra.mxu3 %vm667_vm1, %v11184_v32  ;;  %v2706_v33 = vpop.f32.mrf.mxu0 }
 0x464   :  { %v3707_v30 = vpop.f32.mrf.mxu2  ;;  %v3208_v35 = vpop.f32.mrf.mxu1 }
 0x465   :  { %v11189_v30 = vld [vmem:[#allocation2 + $0x398] sm:$0xff]  ;;  %v11101_v35 = vld [vmem:[#allocation2 + $0x60] sm:$0xff] }
 0x466   :  { %v4202_v37 = vpop.f32.mrf.mxu3  ;;  %9792 = vmatmul.msk.bf16.gmra.mxu0 %vm667_vm1, %v11096_v26 }
 0x467   :  { %v12368_v38 = vadd.f32 %v4202_v37, %v3780_v15  ;;  %9940 = vmatmul.msk.bf16.gmra.mxu1 %vm667_vm1, %v11126_v34  ;;  %v11159_v15 = vld [vmem:[#allocation2 + $0x280] sm:$0xff]  ;;  %v11131_v37 = vld [vmem:[#allocation2 + $0x178] sm:$0xff] }
 0x469   :  { %10088 = vmatmul.msk.bf16.gmra.mxu2 %vm667_vm1, %v11156_v36 }
 0x46b   :  { %v2708_v43 = vpop.f32.mrf.mxu0 }
 0x46c   :  { %v3710_v42 = vpop.f32.mrf.mxu2  ;;  %v3210_v45 = vpop.f32.mrf.mxu1 }
 0x46d   :  { %v11161_v45 = vld [vmem:[#allocation2 + $0x290] sm:$0xff] }
 0x46e   :  { %v4204_v46 = vpop.f32.mrf.mxu3 }
 0x473   :  { %10235 = vmatmul.msk.bf16.gmra.mxu3 %vm667_vm1, %v11185_v47  ;;  %v2711_v49 = vpop.f32.mrf.mxu0 }
 0x474   :  { %v3712_v50 = vpop.f32.mrf.mxu2  ;;  %v3213_v51 = vpop.f32.mrf.mxu1 }
 0x475   :  { %v11190_v50 = vld [vmem:[#allocation2 + $0x3a0] sm:$0xff]  ;;  %v11102_v51 = vld [vmem:[#allocation2 + $0x68] sm:$0xff] }
 0x476   :  { %v4207_v39 = vpop.f32.mrf.mxu3  ;;  %9793 = vmatmul.msk.bf16.gmra.mxu0 %vm667_vm1, %v11097_v48 }
 0x477   :  { %9941 = vmatmul.msk.bf16.gmra.mxu1 %vm667_vm1, %v11127_v41  ;;  %v11132_v39 = vld [vmem:[#allocation2 + $0x180] sm:$0xff] }
 0x479   :  { %10089 = vmatmul.msk.bf16.gmra.mxu2 %vm667_vm1, %v11157_v44 }
 0x47b   :  { %v2713_v52 = vpop.f32.mrf.mxu0 }
 0x47c   :  { %v3715_v53 = vpop.f32.mrf.mxu2  ;;  %v3215_v54 = vpop.f32.mrf.mxu1 }
 0x47e   :  { %v4209_v55 = vpop.f32.mrf.mxu3 }
 0x47f   :  { %v11162_v55 = vld [vmem:[#allocation2 + $0x298] sm:$0xff] }
 0x483   :  { %10236 = vmatmul.msk.bf16.gmra.mxu3 %vm667_vm1, %v11186_v59  ;;  %v2716_v62 = vpop.f32.mrf.mxu0 }
 0x484   :  { %v3717_v63 = vpop.f32.mrf.mxu2  ;;  %v3218_v0 = vpop.f32.mrf.mxu1 }
 0x486   :  { %v4212_v60 = vpop.f32.mrf.mxu3  ;;  %9794 = vmatmul.msk.bf16.gmra.mxu0 %vm667_vm1, %v11098_v61 }
 0x487   :  { %9942 = vmatmul.msk.bf16.gmra.mxu1 %vm667_vm1, %v11128_v57  ;;  %v11191_v60 = vld [vmem:[#allocation2 + $0x3a8] sm:$0xff] }
 0x489   :  { %10090 = vmatmul.msk.bf16.gmra.mxu2 %vm667_vm1, %v11158_v1 }
 0x48b   :  { %v2718_v2 = vpop.f32.mrf.mxu0 }
 0x48c   :  { %v3720_v3 = vpop.f32.mrf.mxu2  ;;  %v3220_v4 = vpop.f32.mrf.mxu1  ;;  %v11103_v2 = vld [vmem:[#allocation2 + $0x70] sm:$0xff] }
 0x48d   :  { %v11133_v3 = vld [vmem:[#allocation2 + $0x188] sm:$0xff] }
 0x48e   :  { %v4214_v5 = vpop.f32.mrf.mxu3 }
 0x493   :  { %10237 = vmatmul.msk.bf16.gmra.mxu3 %vm667_vm1, %v11187_v7  ;;  %v2721_v12 = vpop.f32.mrf.mxu0  ;;  %v11163_v7 = vld [vmem:[#allocation2 + $0x2a0] sm:$0xff] }
 0x494   :  { %v3722_v14 = vpop.f32.mrf.mxu2  ;;  %v3223_v6 = vpop.f32.mrf.mxu1 }
 0x496   :  { %v4217_v16 = vpop.f32.mrf.mxu3  ;;  %9795 = vmatmul.msk.bf16.gmra.mxu0 %vm667_vm1, %v11099_v9 }
 0x497   :  { %9943 = vmatmul.msk.bf16.gmra.mxu1 %vm667_vm1, %v11129_v13  ;;  %v11104_v16 = vld [vmem:[#allocation2 + $0x78] sm:$0xff] }
 0x499   :  { %10091 = vmatmul.msk.bf16.gmra.mxu2 %vm667_vm1, %v11159_v15  ;;  %v11192_v15 = vld [vmem:[#allocation2 + $0x3b0] sm:$0xff] }
 0x49b   :  { %v2723_v17 = vpop.f32.mrf.mxu0 }
 0x49c   :  { %v3725_v8 = vpop.f32.mrf.mxu2  ;;  %v3225_v18 = vpop.f32.mrf.mxu1 }
 0x49d   :  { %v11134_v8 = vld [vmem:[#allocation2 + $0x190] sm:$0xff] }
 0x49e   :  { %v4219_v19 = vpop.f32.mrf.mxu3 }
 0x4a3   :  { %10238 = vmatmul.msk.bf16.gmra.mxu3 %vm667_vm1, %v11188_v20  ;;  %v2726_v24 = vpop.f32.mrf.mxu0 }
 0x4a4   :  { %v3727_v27 = vpop.f32.mrf.mxu2  ;;  %v3228_v28 = vpop.f32.mrf.mxu1 }
 0x4a6   :  { %v4222_v31 = vpop.f32.mrf.mxu3  ;;  %9796 = vmatmul.msk.bf16.gmra.mxu0 %vm667_vm1, %v11100_v21  ;;  %v11164_v21 = vld [vmem:[#allocation2 + $0x2a8] sm:$0xff] }
 0x4a7   :  { %9944 = vmatmul.msk.bf16.gmra.mxu1 %vm667_vm1, %v11130_v25 }
 0x4a9   :  { %10092 = vmatmul.msk.bf16.gmra.mxu2 %vm667_vm1, %v11160_v29 }
 0x4ab   :  { %v2728_v32 = vpop.f32.mrf.mxu0 }
 0x4ac   :  { %v3730_v26 = vpop.f32.mrf.mxu2  ;;  %v3230_v33 = vpop.f32.mrf.mxu1 }
 0x4ad   :  { %v11193_v33 = vld [vmem:[#allocation2 + $0x3b8] sm:$0xff] }
 0x4ae   :  { %v4224_v34 = vpop.f32.mrf.mxu3 }
 0x4af   :  { %v11105_v34 = vld [vmem:[#allocation2 + $0x80] sm:$0xff] }
 0x4b3   :  { %10239 = vmatmul.msk.bf16.gmra.mxu3 %vm667_vm1, %v11189_v30  ;;  %v2731_v36 = vpop.f32.mrf.mxu0  ;;  %v11135_v30 = vld [vmem:[#allocation2 + $0x198] sm:$0xff] }
 0x4b4   :  { %v3732_v43 = vpop.f32.mrf.mxu2  ;;  %v3233_v42 = vpop.f32.mrf.mxu1 }
 0x4b6   :  { %v4227_v46 = vpop.f32.mrf.mxu3  ;;  %9797 = vmatmul.msk.bf16.gmra.mxu0 %vm667_vm1, %v11101_v35 }
 0x4b7   :  { %9945 = vmatmul.msk.bf16.gmra.mxu1 %vm667_vm1, %v11131_v37  ;;  %v11165_v37 = vld [vmem:[#allocation2 + $0x2b0] sm:$0xff] }
 0x4b9   :  { %10093 = vmatmul.msk.bf16.gmra.mxu2 %vm667_vm1, %v11161_v45 }
 0x4bb   :  { %v2733_v47 = vpop.f32.mrf.mxu0 }
 0x4bc   :  { %v3735_v48 = vpop.f32.mrf.mxu2  ;;  %v3235_v49 = vpop.f32.mrf.mxu1 }
 0x4bd   :  { %v11194_v48 = vld [vmem:[#allocation2 + $0x3c0] sm:$0xff]  ;;  %v11106_v49 = vld [vmem:[#allocation2 + $0x88] sm:$0xff] }
 0x4be   :  { %v4229_v41 = vpop.f32.mrf.mxu3 }
 0x4c3   :  { %10240 = vmatmul.msk.bf16.gmra.mxu3 %vm667_vm1, %v11190_v50  ;;  %v4604_v44 = vpop.f32.mrf.mxu0  ;;  %v11136_v50 = vld [vmem:[#allocation2 + $0x1a0] sm:$0xff] }
 0x4c4   :  { %v3737_v52 = vpop.f32.mrf.mxu2  ;;  %v4744_v53 = vadd.f32 %v4604_v44, %v12268_v56  ;;  %v5106_v54 = vpop.f32.mrf.mxu1 }
 0x4c5   :  { %v11166_v52 = vld [vmem:[#allocation2 + $0x2b8] sm:$0xff] }
 0x4c6   :  { %v4232_v59 = vpop.f32.mrf.mxu3  ;;  %v5246_v61 = vadd.f32 %v5106_v54, %v4744_v53  ;;  %9798 = vmatmul.msk.bf16.gmra.mxu0 %vm667_vm1, %v11102_v51 }
 0x4c7   :  { %9946 = vmatmul.msk.bf16.gmra.mxu1 %vm667_vm1, %v11132_v39 }
 0x4c9   :  { %10094 = vmatmul.msk.bf16.gmra.mxu2 %vm667_vm1, %v11162_v55 }
 0x4cb   :  { %v4606_v62 = vpop.f32.mrf.mxu0 }
 0x4cc   :  { %v5608_v57 = vpop.f32.mrf.mxu2  ;;  %v5108_v63 = vpop.f32.mrf.mxu1 }
 0x4cd   :  { %v5748_v0 = vadd.f32 %v5608_v57, %v5246_v61 }
 0x4ce   :  { %v4234_v1 = vpop.f32.mrf.mxu3 }
 0x4cf   :  { %v11107_v1 = vld [vmem:[#allocation2 + $0x90] sm:$0xff] }
 0x4d3   :  { %10241 = vmatmul.msk.bf16.gmra.mxu3 %vm667_vm1, %v11191_v60  ;;  %v4609_v56 = vpop.f32.mrf.mxu0  ;;  %v11137_v60 = vld [vmem:[#allocation2 + $0x1a8] sm:$0xff] }
 0x4d4   :  { %v5610_v4 = vpop.f32.mrf.mxu2  ;;  %v5111_v5 = vpop.f32.mrf.mxu1 }
 0x4d6   :  { %v4237_v9 = vpop.f32.mrf.mxu3  ;;  %9799 = vmatmul.msk.bf16.gmra.mxu0 %vm667_vm1, %v11103_v2 }
 0x4d7   :  { %9947 = vmatmul.msk.bf16.gmra.mxu1 %vm667_vm1, %v11133_v3  ;;  %v11167_v3 = vld [vmem:[#allocation2 + $0x2c0] sm:$0xff] }
 0x4d9   :  { %10095 = vmatmul.msk.bf16.gmra.mxu2 %vm667_vm1, %v11163_v7 }
 0x4db   :  { %v4611_v12 = vpop.f32.mrf.mxu0 }
 0x4dc   :  { %v5613_v13 = vpop.f32.mrf.mxu2  ;;  %v5113_v14 = vpop.f32.mrf.mxu1 }
 0x4dd   :  { %v11196_v13 = vld [vmem:[#allocation2 + $0x3d0] sm:$0xff]  ;;  %v11108_v14 = vld [vmem:[#allocation2 + $0x98] sm:$0xff] }
 0x4de   :  { %v4239_v6 = vpop.f32.mrf.mxu3 }
 0x4df   :  { %v11138_v6 = vld [vmem:[#allocation2 + $0x1b0] sm:$0xff] }
 0x4e3   :  { %10242 = vmatmul.msk.bf16.gmra.mxu3 %vm667_vm1, %v11192_v15  ;;  %v4614_v17 = vpop.f32.mrf.mxu0 }
 0x4e4   :  { %v5615_v18 = vpop.f32.mrf.mxu2  ;;  %v4748_v19 = vadd.f32 %v4614_v17, %v12279_v23  ;;  %v5116_v20 = vpop.f32.mrf.mxu1  ;;  %v11242_v17 = vld [vmem:[#allocation7 + $0x30] sm:$0xff] }
 0x4e5   :  { %6610 = vmatpush.bf16.msrb.mxu0 %v11242_v17  ;;  %v11172_v17 = vld [vmem:[#allocation2 + $0x2e8] sm:$0xff] }
 0x4e6   :  { %v6110_v24 = vpop.f32.mrf.mxu3  ;;  %v5250_v25 = vadd.f32 %v5116_v20, %v4748_v19  ;;  %9800 = vmatmul.msk.bf16.gmra.mxu0 %vm667_vm1, %v11104_v16  ;;  %v11302_v16 = vld [vmem:[#allocation7 + $0x10] sm:$0xff] }
 0x4e7   :  { %v12404_v27 = vadd.f32 %v6110_v24, %v5748_v0  ;;  %9948 = vmatmul.msk.bf16.gmra.mxu1 %vm667_vm1, %v11134_v8  ;;  %v11195_v0 = vld [vmem:[#allocation2 + $0x3c8] sm:$0xff]  ;;  %7614 = vmatpush.bf16.msrb.mxu2 %v11302_v16 }
 0x4e8   :  { %v11332_v8 = vld [vmem:[#allocation7] sm:$0xff] }
 0x4e9   :  { %10096 = vmatmul.msk.bf16.gmra.mxu2 %vm667_vm1, %v11164_v21  ;;  %v11168_v21 = vld [vmem:[#allocation2 + $0x2c8] sm:$0xff]  ;;  %8115 = vmatpush.bf16.msrb.mxu3 %v11332_v8 }
 0x4eb   :  { %v4616_v28 = vpop.f32.mrf.mxu0 }
 0x4ec   :  { %v5618_v29 = vpop.f32.mrf.mxu2  ;;  %v5118_v31 = vpop.f32.mrf.mxu1 }
 0x4ed   :  { %v5752_v32 = vadd.f32 %v5618_v29, %v5250_v25  ;;  %v11272_v29 = vld [vmem:[#allocation7 + $0x20] sm:$0xff] }
 0x4ee   :  { %v6112_v26 = vpop.f32.mrf.mxu3  ;;  %7112 = vmatpush.bf16.msrb.mxu1 %v11272_v29 }
 0x4f3   :  { %10243 = vmatmul.msk.bf16.gmra.mxu3 %vm667_vm1, %v11193_v33  ;;  %v4619_v23 = vpop.f32.mrf.mxu0 }
 0x4f4   :  { %v5620_v35 = vpop.f32.mrf.mxu2  ;;  %v5121_v36 = vpop.f32.mrf.mxu1  ;;  %v11109_v23 = vld [vmem:[#allocation2 + $0xa0] sm:$0xff] }
 0x4f5   :  { %v11139_v35 = vld [vmem:[#allocation2 + $0x1b8] sm:$0xff] }
 0x4f6   :  { %v6115_v43 = vpop.f32.mrf.mxu3  ;;  %9801 = vmatmul.msk.bf16.gmra.mxu0 %vm667_vm1, %v11105_v34  ;;  %v11197_v34 = vld [vmem:[#allocation2 + $0x3d8] sm:$0xff] }
 0x4f7   :  { %9949 = vmatmul.msk.bf16.gmra.mxu1 %vm667_vm1, %v11135_v30  ;;  %v11169_v43 = vld [vmem:[#allocation2 + $0x2d0] sm:$0xff] }
 0x4f9   :  { %10097 = vmatmul.msk.bf16.gmra.mxu2 %vm667_vm1, %v11165_v37 }
 0x4fb   :  { %v4621_v42 = vpop.f32.mrf.mxu0 }
 0x4fc   :  { %v5623_v45 = vpop.f32.mrf.mxu2  ;;  %v5123_v46 = vpop.f32.mrf.mxu1 }
 0x4fe   :  { %v6117_v47 = vpop.f32.mrf.mxu3 }
 0x503   :  { %10244 = vmatmul.msk.bf16.gmra.mxu3 %vm667_vm1, %v11194_v48  ;;  %v4624_v41 = vpop.f32.mrf.mxu0 }
 0x504   :  { %v5625_v51 = vpop.f32.mrf.mxu2  ;;  %v4752_v44 = vadd.f32 %v4624_v41, %v12290_v58  ;;  %v5126_v39 = vpop.f32.mrf.mxu1  ;;  %v11110_v41 = vld [vmem:[#allocation2 + $0xa8] sm:$0xff] }
 0x505   :  { %v11140_v51 = vld [vmem:[#allocation2 + $0x1c0] sm:$0xff] }
 0x506   :  { %v6120_v53 = vpop.f32.mrf.mxu3  ;;  %v5254_v54 = vadd.f32 %v5126_v39, %v4752_v44  ;;  %9802 = vmatmul.msk.bf16.gmra.mxu0 %vm667_vm1, %v11106_v49  ;;  %v11198_v49 = vld [vmem:[#allocation2 + $0x3e0] sm:$0xff] }
 0x507   :  { %v12415_v55 = vadd.f32 %v6120_v53, %v5752_v32  ;;  %9950 = vmatmul.msk.bf16.gmra.mxu1 %vm667_vm1, %v11136_v50 }
 0x509   :  { %10098 = vmatmul.msk.bf16.gmra.mxu2 %vm667_vm1, %v11166_v52  ;;  %v11170_v52 = vld [vmem:[#allocation2 + $0x2d8] sm:$0xff] }
 0x50b   :  { %v4626_v59 = vpop.f32.mrf.mxu0 }
 0x50c   :  { %v5628_v61 = vpop.f32.mrf.mxu2  ;;  %v5128_v62 = vpop.f32.mrf.mxu1 }
 0x50d   :  { %v5756_v57 = vadd.f32 %v5628_v61, %v5254_v54 }
 0x50e   :  { %v6122_v63 = vpop.f32.mrf.mxu3 }
 0x50f   :  { %v11199_v63 = vld [vmem:[#allocation2 + $0x3e8] sm:$0xff] }
 0x513   :  { %10245 = vmatmul.msk.bf16.gmra.mxu3 %vm667_vm1, %v11195_v0  ;;  %v4629_v58 = vpop.f32.mrf.mxu0  ;;  %v11111_v0 = vld [vmem:[#allocation2 + $0xb0] sm:$0xff] }
 0x514   :  { %v5630_v2 = vpop.f32.mrf.mxu2  ;;  %v5131_v56 = vpop.f32.mrf.mxu1  ;;  %v11141_v58 = vld [vmem:[#allocation2 + $0x1c8] sm:$0xff] }
 0x515   :  { %v11171_v56 = vld [vmem:[#allocation2 + $0x2e0] sm:$0xff] }
 0x516   :  { %v6125_v4 = vpop.f32.mrf.mxu3  ;;  %9803 = vmatmul.msk.bf16.gmra.mxu0 %vm667_vm1, %v11107_v1 }
 0x517   :  { %9951 = vmatmul.msk.bf16.gmra.mxu1 %vm667_vm1, %v11137_v60 }
 0x519   :  { %10099 = vmatmul.msk.bf16.gmra.mxu2 %vm667_vm1, %v11167_v3 }
 0x51b   :  { %v4631_v5 = vpop.f32.mrf.mxu0 }
 0x51c   :  { %v5633_v7 = vpop.f32.mrf.mxu2  ;;  %v5133_v9 = vpop.f32.mrf.mxu1 }
 0x51e   :  { %v6127_v12 = vpop.f32.mrf.mxu3 }
 0x51f   :  { %v11200_v12 = vld [vmem:[#allocation2 + $0x3f0] sm:$0xff] }
 0x523   :  { %10246 = vmatmul.msk.bf16.gmra.mxu3 %vm667_vm1, %v11196_v13  ;;  %v4634_v15 = vpop.f32.mrf.mxu0  ;;  %v11112_v13 = vld [vmem:[#allocation2 + $0xb8] sm:$0xff] }
 0x524   :  { %v5635_v18 = vpop.f32.mrf.mxu2  ;;  %v4756_v19 = vadd.f32 %v4634_v15, %v12300_v22  ;;  %v5136_v20 = vpop.f32.mrf.mxu1 }
 0x526   :  { %v6130_v24 = vpop.f32.mrf.mxu3  ;;  %v5258_v25 = vadd.f32 %v5136_v20, %v4756_v19  ;;  %9804 = vmatmul.msk.bf16.gmra.mxu0 %vm667_vm1, %v11108_v14 }
 0x527   :  { %v12426_v28 = vadd.f32 %v6130_v24, %v5756_v57  ;;  %9952 = vmatmul.msk.bf16.gmra.mxu1 %vm667_vm1, %v11138_v6  ;;  %v11142_v6 = vld [vmem:[#allocation2 + $0x1d0] sm:$0xff]  ;;  %v11201_v24 = vld [vmem:[#allocation2 + $0x3f8] sm:$0xff] }
 0x529   :  { %10100 = vmatmul.msk.bf16.gmra.mxu2 %vm667_vm1, %v11168_v21 }
 0x52b   :  { %v4636_v31 = vpop.f32.mrf.mxu0 }
 0x52c   :  { %v5638_v32 = vpop.f32.mrf.mxu2  ;;  %v5138_v22 = vpop.f32.mrf.mxu1  ;;  %v11143_v31 = vld [vmem:[#allocation2 + $0x1d8] sm:$0xff] }
 0x52d   :  { %v5760_v26 = vadd.f32 %v5638_v32, %v5258_v25  ;;  %v11113_v25 = vld [vmem:[#allocation2 + $0xc0] sm:$0xff] }
 0x52e   :  { %v6132_v33 = vpop.f32.mrf.mxu3 }
 0x533   :  { %10247 = vmatmul.msk.bf16.gmra.mxu3 %vm667_vm1, %v11197_v34  ;;  %v4639_v30 = vpop.f32.mrf.mxu0 }
 0x534   :  { %v5640_v36 = vpop.f32.mrf.mxu2  ;;  %v5141_v37 = vpop.f32.mrf.mxu1 }
 0x535   :  { %v11202_v36 = vld [vmem:[#allocation2 + $0x400] sm:$0xff]  ;;  %v11114_v37 = vld [vmem:[#allocation2 + $0xc8] sm:$0xff] }
 0x536   :  { %v6135_v42 = vpop.f32.mrf.mxu3  ;;  %9805 = vmatmul.msk.bf16.gmra.mxu0 %vm667_vm1, %v11109_v23 }
 0x537   :  { %9953 = vmatmul.msk.bf16.gmra.mxu1 %vm667_vm1, %v11139_v35  ;;  %v11144_v42 = vld [vmem:[#allocation2 + $0x1e0] sm:$0xff] }
 0x539   :  { %10101 = vmatmul.msk.bf16.gmra.mxu2 %vm667_vm1, %v11169_v43 }
 0x53b   :  { %v4641_v45 = vpop.f32.mrf.mxu0 }
 0x53c   :  { %v5643_v46 = vpop.f32.mrf.mxu2  ;;  %v5143_v47 = vpop.f32.mrf.mxu1 }
 0x53d   :  { %v11174_v47 = vld [vmem:[#allocation2 + $0x2f8] sm:$0xff] }
 0x53e   :  { %v6137_v48 = vpop.f32.mrf.mxu3 }
 0x543   :  { %10248 = vmatmul.msk.bf16.gmra.mxu3 %vm667_vm1, %v11198_v49  ;;  %v4644_v50 = vpop.f32.mrf.mxu0 }
 0x544   :  { %v5645_v44 = vpop.f32.mrf.mxu2  ;;  %v5146_v39 = vpop.f32.mrf.mxu1 }
 0x545   :  { %v11203_v44 = vld [vmem:[#allocation2 + $0x408] sm:$0xff]  ;;  %v11115_v39 = vld [vmem:[#allocation2 + $0xd0] sm:$0xff] }
 0x546   :  { %v6140_v53 = vpop.f32.mrf.mxu3  ;;  %9806 = vmatmul.msk.bf16.gmra.mxu0 %vm667_vm1, %v11110_v41 }
 0x547   :  { %v12436_v54 = vadd.f32 %v6140_v53, %v5760_v26  ;;  %9954 = vmatmul.msk.bf16.gmra.mxu1 %vm667_vm1, %v11140_v51  ;;  %v11173_v26 = vld [vmem:[#allocation2 + $0x2f0] sm:$0xff]  ;;  %v11145_v53 = vld [vmem:[#allocation2 + $0x1e8] sm:$0xff] }
 0x549   :  { %10102 = vmatmul.msk.bf16.gmra.mxu2 %vm667_vm1, %v11170_v52 }
 0x54b   :  { %v4646_v59 = vpop.f32.mrf.mxu0 }
 0x54c   :  { %v5648_v61 = vpop.f32.mrf.mxu2  ;;  %v5148_v62 = vpop.f32.mrf.mxu1 }
 0x54d   :  { %v11175_v62 = vld [vmem:[#allocation2 + $0x300] sm:$0xff] }
 0x54e   :  { %v6142_v57 = vpop.f32.mrf.mxu3 }
 0x553   :  { %10249 = vmatmul.msk.bf16.gmra.mxu3 %vm667_vm1, %v11199_v63  ;;  %v4649_v1 = vpop.f32.mrf.mxu0 }
 0x554   :  { %v5650_v60 = vpop.f32.mrf.mxu2  ;;  %v5151_v2 = vpop.f32.mrf.mxu1 }
 0x555   :  { %v11204_v60 = vld [vmem:[#allocation2 + $0x410] sm:$0xff]  ;;  %v11116_v2 = vld [vmem:[#allocation2 + $0xd8] sm:$0xff] }
 0x556   :  { %v6145_v3 = vpop.f32.mrf.mxu3  ;;  %9807 = vmatmul.msk.bf16.gmra.mxu0 %vm667_vm1, %v11111_v0 }
 0x557   :  { %9955 = vmatmul.msk.bf16.gmra.mxu1 %vm667_vm1, %v11141_v58  ;;  %v11146_v3 = vld [vmem:[#allocation2 + $0x1f0] sm:$0xff] }
 0x559   :  { %10103 = vmatmul.msk.bf16.gmra.mxu2 %vm667_vm1, %v11171_v56 }
 0x55b   :  { %v4651_v4 = vpop.f32.mrf.mxu0 }
 0x55c   :  { %v5653_v5 = vpop.f32.mrf.mxu2  ;;  %v5153_v7 = vpop.f32.mrf.mxu1 }
 0x55e   :  { %v6147_v9 = vpop.f32.mrf.mxu3 }
 0x55f   :  { %v11176_v9 = vld [vmem:[#allocation2 + $0x308] sm:$0xff] }
 0x563   :  { %10250 = vmatmul.msk.bf16.gmra.mxu3 %vm667_vm1, %v11200_v12  ;;  %v4654_v14 = vpop.f32.mrf.mxu0 }
 0x564   :  { %v5655_v15 = vpop.f32.mrf.mxu2  ;;  %v5156_v16 = vpop.f32.mrf.mxu1 }
 0x566   :  { %v6150_v8 = vpop.f32.mrf.mxu3  ;;  %9808 = vmatmul.msk.bf16.gmra.mxu0 %vm667_vm1, %v11112_v13 }
 0x567   :  { %9956 = vmatmul.msk.bf16.gmra.mxu1 %vm667_vm1, %v11142_v6  ;;  %v11205_v8 = vld [vmem:[#allocation2 + $0x418] sm:$0xff] }
 0x569   :  { %10104 = vmatmul.msk.bf16.gmra.mxu2 %vm667_vm1, %v11172_v17 }
 0x56b   :  { %v4656_v18 = vpop.f32.mrf.mxu0 }
 0x56c   :  { %v5658_v19 = vpop.f32.mrf.mxu2  ;;  %v5158_v20 = vpop.f32.mrf.mxu1  ;;  %v11117_v18 = vld [vmem:[#allocation2 + $0xe0] sm:$0xff] }
 0x56d   :  { %v11147_v19 = vld [vmem:[#allocation2 + $0x1f8] sm:$0xff] }
 0x56e   :  { %v6152_v21 = vpop.f32.mrf.mxu3 }
 0x573   :  { %10251 = vmatmul.msk.bf16.gmra.mxu3 %vm667_vm1, %v11201_v24  ;;  %v4659_v29 = vpop.f32.mrf.mxu0  ;;  %v11177_v24 = vld [vmem:[#allocation2 + $0x310] sm:$0xff] }
 0x574   :  { %v5660_v32 = vpop.f32.mrf.mxu2  ;;  %v5161_v22 = vpop.f32.mrf.mxu1 }
 0x576   :  { %v6155_v33 = vpop.f32.mrf.mxu3  ;;  %9809 = vmatmul.msk.bf16.gmra.mxu0 %vm667_vm1, %v11113_v25 }
 0x577   :  { %9957 = vmatmul.msk.bf16.gmra.mxu1 %vm667_vm1, %v11143_v31  ;;  %v11118_v33 = vld [vmem:[#allocation2 + $0xe8] sm:$0xff] }
 0x579   :  { %10105 = vmatmul.msk.bf16.gmra.mxu2 %vm667_vm1, %v11173_v26  ;;  %v11206_v26 = vld [vmem:[#allocation2 + $0x420] sm:$0xff] }
 0x57b   :  { %v4661_v34 = vpop.f32.mrf.mxu0 }
 0x57c   :  { %v5663_v23 = vpop.f32.mrf.mxu2  ;;  %v5163_v30 = vpop.f32.mrf.mxu1 }
 0x57d   :  { %v11148_v23 = vld [vmem:[#allocation2 + $0x200] sm:$0xff] }
 0x57e   :  { %v6157_v35 = vpop.f32.mrf.mxu3 }
 0x583   :  { %10252 = vmatmul.msk.bf16.gmra.mxu3 %vm667_vm1, %v11202_v36  ;;  %v4664_v43 = vpop.f32.mrf.mxu0 }
 0x584   :  { %v5665_v45 = vpop.f32.mrf.mxu2  ;;  %v5166_v46 = vpop.f32.mrf.mxu1 }
 0x586   :  { %v6160_v48 = vpop.f32.mrf.mxu3  ;;  %9810 = vmatmul.msk.bf16.gmra.mxu0 %vm667_vm1, %v11114_v37  ;;  %v11178_v37 = vld [vmem:[#allocation2 + $0x318] sm:$0xff] }
 0x587   :  { %9958 = vmatmul.msk.bf16.gmra.mxu1 %vm667_vm1, %v11144_v42 }
 0x589   :  { %10106 = vmatmul.msk.bf16.gmra.mxu2 %vm667_vm1, %v11174_v47 }
 0x58b   :  { %v4666_v49 = vpop.f32.mrf.mxu0 }
 0x58c   :  { %v5668_v41 = vpop.f32.mrf.mxu2  ;;  %v5168_v50 = vpop.f32.mrf.mxu1 }
 0x58d   :  { %v11207_v50 = vld [vmem:[#allocation2 + $0x428] sm:$0xff] }
 0x58e   :  { %v6162_v51 = vpop.f32.mrf.mxu3 }
 0x58f   :  { %v11119_v51 = vld [vmem:[#allocation2 + $0xf0] sm:$0xff] }
 0x593   :  { %10253 = vmatmul.msk.bf16.gmra.mxu3 %vm667_vm1, %v11203_v44  ;;  %v4669_v52 = vpop.f32.mrf.mxu0  ;;  %v11149_v44 = vld [vmem:[#allocation2 + $0x208] sm:$0xff] }
 0x594   :  { %v5670_v59 = vpop.f32.mrf.mxu2  ;;  %v5171_v61 = vpop.f32.mrf.mxu1 }
 0x596   :  { %v6165_v57 = vpop.f32.mrf.mxu3  ;;  %9811 = vmatmul.msk.bf16.gmra.mxu0 %vm667_vm1, %v11115_v39 }
 0x597   :  { %9959 = vmatmul.msk.bf16.gmra.mxu1 %vm667_vm1, %v11145_v53  ;;  %v11179_v53 = vld [vmem:[#allocation2 + $0x320] sm:$0xff] }
 0x599   :  { %10107 = vmatmul.msk.bf16.gmra.mxu2 %vm667_vm1, %v11175_v62 }
 0x59b   :  { %v4671_v63 = vpop.f32.mrf.mxu0 }
 0x59c   :  { %v5673_v0 = vpop.f32.mrf.mxu2  ;;  %v5173_v1 = vpop.f32.mrf.mxu1 }
 0x59d   :  { %v11208_v0 = vld [vmem:[#allocation2 + $0x430] sm:$0xff]  ;;  %v11120_v1 = vld [vmem:[#allocation2 + $0xf8] sm:$0xff] }
 0x59e   :  { %v6167_v58 = vpop.f32.mrf.mxu3 }
 0x5a3   :  { %10254 = vmatmul.msk.bf16.gmra.mxu3 %vm667_vm1, %v11204_v60  ;;  %v4674_v56 = vpop.f32.mrf.mxu0  ;;  %v11150_v60 = vld [vmem:[#allocation2 + $0x210] sm:$0xff] }
 0x5a4   :  { %v5675_v4 = vpop.f32.mrf.mxu2  ;;  %v4772_v5 = vadd.f32 %v4674_v56, %v12336_v10  ;;  %v5176_v7 = vpop.f32.mrf.mxu1 }
 0x5a5   :  { %v11180_v4 = vld [vmem:[#allocation2 + $0x328] sm:$0xff] }
 0x5a6   :  { %v6170_v12 = vpop.f32.mrf.mxu3  ;;  %v5274_v13 = vadd.f32 %v5176_v7, %v4772_v5  ;;  %9812 = vmatmul.msk.bf16.gmra.mxu0 %vm667_vm1, %v11116_v2 }
 0x5a7   :  { %9960 = vmatmul.msk.bf16.gmra.mxu1 %vm667_vm1, %v11146_v3 }
 0x5a9   :  { %10108 = vmatmul.msk.bf16.gmra.mxu2 %vm667_vm1, %v11176_v9 }
 0x5ab   :  { %v4676_v14 = vpop.f32.mrf.mxu0 }
 0x5ac   :  { %v5678_v6 = vpop.f32.mrf.mxu2  ;;  %v5178_v15 = vpop.f32.mrf.mxu1 }
 0x5ad   :  { %v5776_v16 = vadd.f32 %v5678_v6, %v5274_v13 }
 0x5ae   :  { %v6172_v17 = vpop.f32.mrf.mxu3 }
 0x5af   :  { %v11121_v17 = vld [vmem:[#allocation2 + $0x100] sm:$0xff] }
 0x5b3   :  { %10255 = vmatmul.msk.bf16.gmra.mxu3 %vm667_vm1, %v11205_v8  ;;  %v4679_v10 = vpop.f32.mrf.mxu0  ;;  %v11151_v8 = vld [vmem:[#allocation2 + $0x218] sm:$0xff] }
 0x5b4   :  { %v5680_v20 = vpop.f32.mrf.mxu2  ;;  %v5181_v21 = vpop.f32.mrf.mxu1 }
 0x5b6   :  { %v6175_v25 = vpop.f32.mrf.mxu3  ;;  %9813 = vmatmul.msk.bf16.gmra.mxu0 %vm667_vm1, %v11117_v18 }
 0x5b7   :  { %9961 = vmatmul.msk.bf16.gmra.mxu1 %vm667_vm1, %v11147_v19  ;;  %v11181_v19 = vld [vmem:[#allocation2 + $0x330] sm:$0xff] }
 0x5b9   :  { %10109 = vmatmul.msk.bf16.gmra.mxu2 %vm667_vm1, %v11177_v24 }
 0x5bb   :  { %v4681_v29 = vpop.f32.mrf.mxu0 }
 0x5bc   :  { %v5683_v31 = vpop.f32.mrf.mxu2  ;;  %v5183_v32 = vpop.f32.mrf.mxu1 }
 0x5bd   :  { %v11210_v31 = vld [vmem:[#allocation2 + $0x440] sm:$0xff]  ;;  %v11214_v32 = vld [vmem:[#allocation2 + $0x38] sm:$0xff] }
 0x5be   :  { %v6177_v22 = vpop.f32.mrf.mxu3 }
 0x5c3   :  { %10256 = vmatmul.msk.bf16.gmra.mxu3 %vm667_vm1, %v11206_v26  ;;  %v4684_v34 = vpop.f32.mrf.mxu0  ;;  %v11244_v26 = vld [vmem:[#allocation2 + $0x150] sm:$0xff] }
 0x5c4   :  { %v5685_v30 = vpop.f32.mrf.mxu2  ;;  %v4776_v35 = vadd.f32 %v4684_v34, %v12347_v40  ;;  %v5186_v36 = vpop.f32.mrf.mxu1 }
 0x5c5   :  { %v11274_v30 = vld [vmem:[#allocation2 + $0x268] sm:$0xff] }
 0x5c6   :  { %v6180_v43 = vpop.f32.mrf.mxu3  ;;  %v5278_v42 = vadd.f32 %v5186_v36, %v4776_v35  ;;  %9814 = vmatmul.msk.bf16.gmra.mxu0 %vm667_vm1, %v11118_v33 }
 0x5c7   :  { %v12472_v45 = vadd.f32 %v6180_v43, %v5776_v16  ;;  %9962 = vmatmul.msk.bf16.gmra.mxu1 %vm667_vm1, %v11148_v23  ;;  %v11209_v16 = vld [vmem:[#allocation2 + $0x438] sm:$0xff] }
 0x5c9   :  { %10110 = vmatmul.msk.bf16.gmra.mxu2 %vm667_vm1, %v11178_v37 }
 0x5cb   :  { %v4686_v46 = vpop.f32.mrf.mxu0 }
 0x5cc   :  { %v5688_v47 = vpop.f32.mrf.mxu2  ;;  %v5188_v48 = vpop.f32.mrf.mxu1 }
 0x5cd   :  { %v5780_v49 = vadd.f32 %v5688_v47, %v5278_v42 }
 0x5ce   :  { %v6182_v41 = vpop.f32.mrf.mxu3 }
 0x5cf   :  { %v11215_v41 = vld [vmem:[#allocation2 + $0x40] sm:$0xff] }
 0x5d3   :  { %10257 = vmatmul.msk.bf16.gmra.mxu3 %vm667_vm1, %v11207_v50  ;;  %v4689_v40 = vpop.f32.mrf.mxu0  ;;  %v11245_v50 = vld [vmem:[#allocation2 + $0x158] sm:$0xff] }
 0x5d4   :  { %v5690_v39 = vpop.f32.mrf.mxu2  ;;  %v5191_v52 = vpop.f32.mrf.mxu1 }
 0x5d6   :  { %v6185_v59 = vpop.f32.mrf.mxu3  ;;  %9815 = vmatmul.msk.bf16.gmra.mxu0 %vm667_vm1, %v11119_v51 }
 0x5d7   :  { %9963 = vmatmul.msk.bf16.gmra.mxu1 %vm667_vm1, %v11149_v44  ;;  %v11275_v44 = vld [vmem:[#allocation2 + $0x270] sm:$0xff] }
 0x5d9   :  { %10111 = vmatmul.msk.bf16.gmra.mxu2 %vm667_vm1, %v11179_v53 }
 0x5db   :  { %v4691_v61 = vpop.f32.mrf.mxu0 }
 0x5dc   :  { %v5693_v62 = vpop.f32.mrf.mxu2  ;;  %v5193_v57 = vpop.f32.mrf.mxu1 }
 0x5dd   :  { %v11304_v62 = vld [vmem:[#allocation2 + $0x380] sm:$0xff]  ;;  %v11216_v57 = vld [vmem:[#allocation2 + $0x48] sm:$0xff] }
 0x5de   :  { %v6187_v63 = vpop.f32.mrf.mxu3 }
 0x5e3   :  { %10258 = vmatmul.msk.bf16.gmra.mxu3 %vm667_vm1, %v11208_v0  ;;  %v4694_v58 = vpop.f32.mrf.mxu0  ;;  %v11246_v0 = vld [vmem:[#allocation2 + $0x160] sm:$0xff] }
 0x5e4   :  { %v5695_v2 = vpop.f32.mrf.mxu2  ;;  %v4780_v56 = vadd.f32 %v4694_v58, %v12358_v11  ;;  %v5196_v3 = vpop.f32.mrf.mxu1 }
 0x5e6   :  { %v6190_v5 = vpop.f32.mrf.mxu3  ;;  %v5282_v7 = vadd.f32 %v5196_v3, %v4780_v56  ;;  %9816 = vmatmul.msk.bf16.gmra.mxu0 %vm667_vm1, %v11120_v1 }
 0x5e7   :  { %v12483_v9 = vadd.f32 %v6190_v5, %v5780_v49  ;;  %9964 = vmatmul.msk.bf16.gmra.mxu1 %vm667_vm1, %v11150_v60  ;;  %v11211_v49 = vld [vmem:[#allocation2 + $0x448] sm:$0xff]  ;;  %v11276_v60 = vld [vmem:[#allocation2 + $0x278] sm:$0xff] }
 0x5e9   :  { %10112 = vmatmul.msk.bf16.gmra.mxu2 %vm667_vm1, %v11180_v4 }
 0x5eb   :  { %v4696_v12 = vpop.f32.mrf.mxu0 }
 0x5ec   :  { %v5698_v13 = vpop.f32.mrf.mxu2  ;;  %v5198_v14 = vpop.f32.mrf.mxu1  ;;  %v11305_v12 = vld [vmem:[#allocation2 + $0x388] sm:$0xff] }
 0x5ed   :  { %v5784_v6 = vadd.f32 %v5698_v13, %v5282_v7  ;;  %v11217_v13 = vld [vmem:[#allocation2 + $0x50] sm:$0xff] }
 0x5ee   :  { %v6192_v15 = vpop.f32.mrf.mxu3 }
 0x5f3   :  { %10259 = vmatmul.msk.bf16.gmra.mxu3 %vm667_vm1, %v11209_v16  ;;  %v4699_v11 = vpop.f32.mrf.mxu0 }
 0x5f4   :  { %v5700_v18 = vpop.f32.mrf.mxu2  ;;  %v5201_v10 = vpop.f32.mrf.mxu1 }
 0x5f6   :  { %v6195_v20 = vpop.f32.mrf.mxu3  ;;  %9817 = vmatmul.msk.bf16.gmra.mxu0 %vm667_vm1, %v11121_v17  ;;  %v11277_v17 = vld [vmem:[#allocation2 + $0x280] sm:$0xff] }
 0x5f7   :  { %9965 = vmatmul.msk.bf16.gmra.mxu1 %vm667_vm1, %v11151_v8  ;;  %v11306_v20 = vld [vmem:[#allocation2 + $0x390] sm:$0xff] }
 0x5f9   :  { %10113 = vmatmul.msk.bf16.gmra.mxu2 %vm667_vm1, %v11181_v19 }
 0x5fb   :  { %v4701_v21 = vpop.f32.mrf.mxu0 }
 0x5fc   :  { %v5703_v24 = vpop.f32.mrf.mxu2  ;;  %v5203_v25 = vpop.f32.mrf.mxu1  ;;  %v11218_v21 = vld [vmem:[#allocation2 + $0x58] sm:$0xff] }
 0x5fd   :  { %v11248_v25 = vld [vmem:[#allocation2 + $0x170] sm:$0xff] }
 0x5fe   :  { %v6197_v29 = vpop.f32.mrf.mxu3 }
 0x603   :  { %10260 = vmatmul.msk.bf16.gmra.mxu3 %vm667_vm1, %v11210_v31  ;;  %v4704_v22 = vpop.f32.mrf.mxu0 }
 0x604   :  { %v5705_v33 = vpop.f32.mrf.mxu2  ;;  %v4784_v34 = vadd.f32 %v4704_v22, %v12368_v38  ;;  %v5206_v23 = vpop.f32.mrf.mxu1 }
 0x606   :  { %v6200_v35 = vpop.f32.mrf.mxu3  ;;  %v5286_v36 = vadd.f32 %v5206_v23, %v4784_v34  ;;  %10382 = vmatmul.msk.bf16.vlgmr.msrb.gmra.mxu0 %vm667_vm1, %v11214_v32  ;;  %v11278_v32 = vld [vmem:[#allocation2 + $0x288] sm:$0xff] }
 0x607   :  { %v12494_v37 = vadd.f32 %v6200_v35, %v5784_v6  ;;  %10530 = vmatmul.msk.bf16.vlgmr.msrb.gmra.mxu1 %vm667_vm1, %v11244_v26  ;;  %v11247_v6 = vld [vmem:[#allocation2 + $0x168] sm:$0xff]  ;;  %v11219_v35 = vld [vmem:[#allocation2 + $0x60] sm:$0xff] }
 0x609   :  { %10678 = vmatmul.msk.bf16.vlgmr.msrb.gmra.mxu2 %vm667_vm1, %v11274_v30  ;;  %v11307_v30 = vld [vmem:[#allocation2 + $0x398] sm:$0xff] }
 0x60b   :  { %v4706_v43 = vpop.f32.mrf.mxu0 }
 0x60c   :  { %v5708_v42 = vpop.f32.mrf.mxu2  ;;  %v5208_v46 = vpop.f32.mrf.mxu1  ;;  %v11249_v43 = vld [vmem:[#allocation2 + $0x178] sm:$0xff] }
 0x60d   :  { %v5788_v47 = vadd.f32 %v5708_v42, %v5286_v36 }
 0x60e   :  { %v6202_v48 = vpop.f32.mrf.mxu3 }
 0x613   :  { %10261 = vmatmul.msk.bf16.gmra.mxu3 %vm667_vm1, %v11211_v49  ;;  %v4709_v38 = vpop.f32.mrf.mxu0 }
 0x614   :  { %v5710_v51 = vpop.f32.mrf.mxu2  ;;  %v5211_v40 = vpop.f32.mrf.mxu1 }
 0x615   :  { %v11308_v51 = vld [vmem:[#allocation2 + $0x3a0] sm:$0xff]  ;;  %v11220_v40 = vld [vmem:[#allocation2 + $0x68] sm:$0xff] }
 0x616   :  { %v6205_v39 = vpop.f32.mrf.mxu3  ;;  %10383 = vmatmul.msk.bf16.gmra.mxu0 %vm667_vm1, %v11215_v41 }
 0x617   :  { %10531 = vmatmul.msk.bf16.gmra.mxu1 %vm667_vm1, %v11245_v50  ;;  %v11250_v39 = vld [vmem:[#allocation2 + $0x180] sm:$0xff] }
 0x619   :  { %10679 = vmatmul.msk.bf16.gmra.mxu2 %vm667_vm1, %v11275_v44 }
 0x61b   :  { %v4711_v52 = vpop.f32.mrf.mxu0 }
 0x61c   :  { %v5713_v53 = vpop.f32.mrf.mxu2  ;;  %v5213_v59 = vpop.f32.mrf.mxu1 }
 0x61d   :  { %v11280_v59 = vld [vmem:[#allocation2 + $0x298] sm:$0xff] }
 0x61e   :  { %v6207_v61 = vpop.f32.mrf.mxu3 }
 0x623   :  { %10826 = vmatmul.msk.bf16.vlgmr.msrb.gmra.mxu3 %vm667_vm1, %v11304_v62  ;;  %v4714_v63 = vpop.f32.mrf.mxu0 }
 0x624   :  { %v5715_v1 = vpop.f32.mrf.mxu2  ;;  %v5216_v58 = vpop.f32.mrf.mxu1 }
 0x625   :  { %v11309_v1 = vld [vmem:[#allocation2 + $0x3a8] sm:$0xff]  ;;  %v11221_v58 = vld [vmem:[#allocation2 + $0x70] sm:$0xff] }
 0x626   :  { %v6210_v2 = vpop.f32.mrf.mxu3  ;;  %10384 = vmatmul.msk.bf16.gmra.mxu0 %vm667_vm1, %v11216_v57 }
 0x627   :  { %v12504_v56 = vadd.f32 %v6210_v2, %v5788_v47  ;;  %10532 = vmatmul.msk.bf16.gmra.mxu1 %vm667_vm1, %v11246_v0  ;;  %v11279_v47 = vld [vmem:[#allocation2 + $0x290] sm:$0xff]  ;;  %v11251_v2 = vld [vmem:[#allocation2 + $0x188] sm:$0xff] }
 0x629   :  { %10680 = vmatmul.msk.bf16.gmra.mxu2 %vm667_vm1, %v11276_v60 }
 0x62b   :  { %v4716_v3 = vpop.f32.mrf.mxu0 }
 0x62c   :  { %v5718_v4 = vpop.f32.mrf.mxu2  ;;  %v5218_v5 = vpop.f32.mrf.mxu1 }
 0x62d   :  { %v11281_v5 = vld [vmem:[#allocation2 + $0x2a0] sm:$0xff] }
 0x62e   :  { %v6212_v7 = vpop.f32.mrf.mxu3 }
 0x633   :  { %10827 = vmatmul.msk.bf16.gmra.mxu3 %vm667_vm1, %v11305_v12  ;;  %v4719_v14 = vpop.f32.mrf.mxu0 }
 0x634   :  { %v5720_v15 = vpop.f32.mrf.mxu2  ;;  %v5221_v16 = vpop.f32.mrf.mxu1 }
 0x635   :  { %v11310_v15 = vld [vmem:[#allocation2 + $0x3b0] sm:$0xff]  ;;  %v11222_v16 = vld [vmem:[#allocation2 + $0x78] sm:$0xff] }
 0x636   :  { %v6215_v11 = vpop.f32.mrf.mxu3  ;;  %10385 = vmatmul.msk.bf16.gmra.mxu0 %vm667_vm1, %v11217_v13 }
 0x637   :  { %10533 = vmatmul.msk.bf16.gmra.mxu1 %vm667_vm1, %v11247_v6  ;;  %v11252_v11 = vld [vmem:[#allocation2 + $0x190] sm:$0xff] }
 0x639   :  { %10681 = vmatmul.msk.bf16.gmra.mxu2 %vm667_vm1, %v11277_v17 }
 0x63b   :  { %v4721_v8 = vpop.f32.mrf.mxu0 }
 0x63c   :  { %v5723_v18 = vpop.f32.mrf.mxu2  ;;  %v5223_v10 = vpop.f32.mrf.mxu1 }
 0x63d   :  { %v11282_v10 = vld [vmem:[#allocation2 + $0x2a8] sm:$0xff] }
 0x63e   :  { %v6217_v19 = vpop.f32.mrf.mxu3 }
 0x643   :  { %10828 = vmatmul.msk.bf16.gmra.mxu3 %vm667_vm1, %v11306_v20  ;;  %v4724_v24 = vpop.f32.mrf.mxu0 }
 0x644   :  { %v5725_v29 = vpop.f32.mrf.mxu2  ;;  %v5226_v31 = vpop.f32.mrf.mxu1 }
 0x645   :  { %v11311_v29 = vld [vmem:[#allocation2 + $0x3b8] sm:$0xff]  ;;  %v11223_v31 = vld [vmem:[#allocation2 + $0x80] sm:$0xff] }
 0x646   :  { %v6220_v22 = vpop.f32.mrf.mxu3  ;;  %10386 = vmatmul.msk.bf16.gmra.mxu0 %vm667_vm1, %v11218_v21 }
 0x647   :  { %10534 = vmatmul.msk.bf16.gmra.mxu1 %vm667_vm1, %v11248_v25  ;;  %v11253_v22 = vld [vmem:[#allocation2 + $0x198] sm:$0xff] }
 0x649   :  { %10682 = vmatmul.msk.bf16.gmra.mxu2 %vm667_vm1, %v11278_v32 }
 0x64b   :  { %v4726_v26 = vpop.f32.mrf.mxu0 }
 0x64c   :  { %v5728_v33 = vpop.f32.mrf.mxu2  ;;  %v5228_v34 = vpop.f32.mrf.mxu1 }
 0x64d   :  { %v11283_v34 = vld [vmem:[#allocation2 + $0x2b0] sm:$0xff] }
 0x64e   :  { %v6222_v23 = vpop.f32.mrf.mxu3 }
 0x653   :  { %10829 = vmatmul.msk.bf16.gmra.mxu3 %vm667_vm1, %v11307_v30  ;;  %v4729_v36 = vpop.f32.mrf.mxu0 }
 0x654   :  { %v5730_v42 = vpop.f32.mrf.mxu2  ;;  %v5231_v46 = vpop.f32.mrf.mxu1 }
 0x655   :  { %v11312_v46 = vld [vmem:[#allocation2 + $0x3c0] sm:$0xff] }
 0x656   :  { %v6225_v48 = vpop.f32.mrf.mxu3  ;;  %10387 = vmatmul.msk.bf16.gmra.mxu0 %vm667_vm1, %v11219_v35 }
 0x657   :  { %10535 = vmatmul.msk.bf16.gmra.mxu1 %vm667_vm1, %v11249_v43  ;;  %v11224_v48 = vld [vmem:[#allocation2 + $0x88] sm:$0xff] }
 0x659   :  { %10683 = vmatmul.msk.bf16.gmra.mxu2 %vm667_vm1, %v11279_v47 }
 0x65b   :  { %v4731_v49 = vpop.f32.mrf.mxu0 }
 0x65c   :  { %v5733_v41 = vpop.f32.mrf.mxu2  ;;  %v5233_v38 = vpop.f32.mrf.mxu1 }
 0x65d   :  { %v11254_v38 = vld [vmem:[#allocation2 + $0x1a0] sm:$0xff] }
 0x65e   :  { %v6227_v50 = vpop.f32.mrf.mxu3 }
 0x663   :  { %10830 = vmatmul.msk.bf16.gmra.mxu3 %vm667_vm1, %v11308_v51  ;;  %v4734_v44 = vpop.f32.mrf.mxu0 }
 0x664   :  { %v5735_v52 = vpop.f32.mrf.mxu2  ;;  %v5236_v53 = vpop.f32.mrf.mxu1 }
 0x666   :  { %v6230_v61 = vpop.f32.mrf.mxu3  ;;  %10388 = vmatmul.msk.bf16.gmra.mxu0 %vm667_vm1, %v11220_v40  ;;  %v11284_v40 = vld [vmem:[#allocation2 + $0x2b8] sm:$0xff] }
 0x667   :  { %10536 = vmatmul.msk.bf16.gmra.mxu1 %vm667_vm1, %v11250_v39  ;;  %v11313_v61 = vld [vmem:[#allocation2 + $0x3c8] sm:$0xff] }
 0x669   :  { %10684 = vmatmul.msk.bf16.gmra.mxu2 %vm667_vm1, %v11280_v59 }
 0x66b   :  { %v4736_v62 = vpop.f32.mrf.mxu0 }
 0x66c   :  { %v5738_v57 = vpop.f32.mrf.mxu2  ;;  %v5238_v63 = vpop.f32.mrf.mxu1 }
 0x66d   :  { %v11225_v57 = vld [vmem:[#allocation2 + $0x90] sm:$0xff] }
 0x66e   :  { %v6232_v0 = vpop.f32.mrf.mxu3 }
 0x66f   :  { %v11255_v0 = vld [vmem:[#allocation2 + $0x1a8] sm:$0xff] }
 0x673   :  { %10831 = vmatmul.msk.bf16.gmra.mxu3 %vm667_vm1, %v11309_v1  ;;  %v4739_v60 = vpop.f32.mrf.mxu0 }
 0x674   :  { %v5740_v3 = vpop.f32.mrf.mxu2  ;;  %v5241_v4 = vpop.f32.mrf.mxu1  ;;  %v11285_v60 = vld [vmem:[#allocation2 + $0x2c0] sm:$0xff] }
 0x676   :  { %v6235_v7 = vpop.f32.mrf.mxu3  ;;  %10389 = vmatmul.msk.bf16.gmra.mxu0 %vm667_vm1, %v11221_v58 }
 0x677   :  { %10537 = vmatmul.msk.bf16.gmra.mxu1 %vm667_vm1, %v11251_v2 }
 0x679   :  { %10685 = vmatmul.msk.bf16.gmra.mxu2 %vm667_vm1, %v11281_v5 }
 0x67b   :  { %v4741_v12 = vpop.f32.mrf.mxu0 }
 0x67c   :  { %v5743_v13 = vpop.f32.mrf.mxu2  ;;  %v5243_v14 = vpop.f32.mrf.mxu1 }
 0x67d   :  { %v11314_v13 = vld [vmem:[#allocation2 + $0x3d0] sm:$0xff] }
 0x67e   :  { %v6237_v6 = vpop.f32.mrf.mxu3 }
 0x67f   :  { %v11226_v6 = vld [vmem:[#allocation2 + $0x98] sm:$0xff] }
 0x683   :  { %10832 = vmatmul.msk.bf16.gmra.mxu3 %vm667_vm1, %v11310_v15  ;;  %v6612_v17 = vpop.f32.mrf.mxu0 }
 0x684   :  { %v5745_v8 = vpop.f32.mrf.mxu2  ;;  %v7114_v18 = vpop.f32.mrf.mxu1  ;;  %v6752_v43 = vadd.f32 %v6612_v17, %v12404_v27  ;;  %v11256_v17 = vld [vmem:[#allocation2 + $0x1b0] sm:$0xff] }
 0x686   :  { %v6240_v19 = vpop.f32.mrf.mxu3  ;;  %10390 = vmatmul.msk.bf16.gmra.mxu0 %vm667_vm1, %v11222_v16  ;;  %v7254_v47 = vadd.f32 %v7114_v18, %v6752_v43  ;;  %v11286_v18 = vld [vmem:[#allocation2 + $0x2c8] sm:$0xff] }
 0x687   :  { %10538 = vmatmul.msk.bf16.gmra.mxu1 %vm667_vm1, %v11252_v11 }
 0x689   :  { %10686 = vmatmul.msk.bf16.gmra.mxu2 %vm667_vm1, %v11282_v10 }
 0x68b   :  { %v6614_v20 = vpop.f32.mrf.mxu0 }
 0x68c   :  { %v7616_v21 = vpop.f32.mrf.mxu2  ;;  %v7116_v24 = vpop.f32.mrf.mxu1 }
 0x68d   :  { %v7756_v49 = vadd.f32 %v7616_v21, %v7254_v47 }
 0x68e   :  { %v6242_v25 = vpop.f32.mrf.mxu3 }
 0x68f   :  { %v11315_v25 = vld [vmem:[#allocation2 + $0x3d8] sm:$0xff] }
 0x693   :  { %10833 = vmatmul.msk.bf16.gmra.mxu3 %vm667_vm1, %v11311_v29  ;;  %v6617_v32 = vpop.f32.mrf.mxu0 }
 0x694   :  { %v7618_v26 = vpop.f32.mrf.mxu2  ;;  %v7119_v33 = vpop.f32.mrf.mxu1 }
 0x695   :  { %v11227_v26 = vld [vmem:[#allocation2 + $0xa0] sm:$0xff] }
 0x696   :  { %v6245_v23 = vpop.f32.mrf.mxu3  ;;  %10391 = vmatmul.msk.bf16.gmra.mxu0 %vm667_vm1, %v11223_v31 }
 0x697   :  { %10539 = vmatmul.msk.bf16.gmra.mxu1 %vm667_vm1, %v11253_v22 }
 0x699   :  { %10687 = vmatmul.msk.bf16.gmra.mxu2 %vm667_vm1, %v11283_v34  ;;  %v11257_v34 = vld [vmem:[#allocation2 + $0x1b8] sm:$0xff] }
 0x69b   :  { %v6619_v30 = vpop.f32.mrf.mxu0 }
 0x69c   :  { %v7621_v35 = vpop.f32.mrf.mxu2  ;;  %v7121_v36 = vpop.f32.mrf.mxu1 }
 0x69d   :  { %v11287_v36 = vld [vmem:[#allocation2 + $0x2d0] sm:$0xff] }
 0x69e   :  { %v6247_v42 = vpop.f32.mrf.mxu3 }
 0x6a3   :  { %10834 = vmatmul.msk.bf16.gmra.mxu3 %vm667_vm1, %v11312_v46  ;;  %v6622_v41 = vpop.f32.mrf.mxu0 }
 0x6a4   :  { %v7623_v50 = vpop.f32.mrf.mxu2  ;;  %v7124_v51 = vpop.f32.mrf.mxu1  ;;  %v6756_v7 = vadd.f32 %v6622_v41, %v12415_v55  ;;  %v11316_v41 = vld [vmem:[#allocation2 + $0x3e0] sm:$0xff] }
 0x6a5   :  { %v11228_v50 = vld [vmem:[#allocation2 + $0xa8] sm:$0xff] }
 0x6a6   :  { %v8117_v44 = vpop.f32.mrf.mxu3  ;;  %10392 = vmatmul.msk.bf16.gmra.mxu0 %vm667_vm1, %v11224_v48  ;;  %v7258_v14 = vadd.f32 %v7124_v51, %v6756_v7 }
 0x6a7   :  { %v8257_v39 = vadd.f32 %v8117_v44, %v7756_v49  ;;  %10540 = vmatmul.msk.bf16.gmra.mxu1 %vm667_vm1, %v11254_v38  ;;  %v11258_v44 = vld [vmem:[#allocation2 + $0x1c0] sm:$0xff] }
 0x6a9   :  { %8314 = vst.msk [vmem:[#allocation3] sm:$0xff] %vm8313_vm11, %v8257_v39  ;;  %10688 = vmatmul.msk.bf16.gmra.mxu2 %vm667_vm1, %v11284_v40 }
 0x6ab   :  { %v6624_v27 = vpop.f32.mrf.mxu0 }
 0x6ac   :  { %v7626_v52 = vpop.f32.mrf.mxu2  ;;  %v7126_v53 = vpop.f32.mrf.mxu1 }
 0x6ad   :  { %v7760_v15 = vadd.f32 %v7626_v52, %v7258_v14  ;;  %v11288_v52 = vld [vmem:[#allocation2 + $0x2d8] sm:$0xff] }
 0x6ae   :  { %v8119_v59 = vpop.f32.mrf.mxu3 }
 0x6b0   :  { %v8370_v62 = vld [vmem:[#allocation3] sm:$0xf] }
 0x6b1   :  { %8375 = vst.msk [vmem:[#allocation9] sm:$0xf] %vm8374_vm12, %v8370_v62  ;;  %v8372_v32 = vmul.f32 %v8370_v62, %v8370_v62 }
 0x6b3   :  { %10835 = vmatmul.msk.bf16.gmra.mxu3 %vm667_vm1, %v11313_v61  ;;  %v6627_v63 = vpop.f32.mrf.mxu0 }
 0x6b4   :  { %v7628_v1 = vpop.f32.mrf.mxu2  ;;  %v7129_v58 = vpop.f32.mrf.mxu1  ;;  %v11317_v63 = vld [vmem:[#allocation2 + $0x3e8] sm:$0xff] }
 0x6b6   :  { %v8122_v2 = vpop.f32.mrf.mxu3  ;;  %10393 = vmatmul.msk.bf16.gmra.mxu0 %vm667_vm1, %v11225_v57 }
 0x6b7   :  { %10541 = vmatmul.msk.bf16.gmra.mxu1 %vm667_vm1, %v11255_v0 }
 0x6b9   :  { %10689 = vmatmul.msk.bf16.gmra.mxu2 %vm667_vm1, %v11285_v60  ;;  %v11229_v60 = vld [vmem:[#allocation2 + $0xb0] sm:$0xff] }
 0x6bb   :  { %v6629_v3 = vpop.f32.mrf.mxu0 }
 0x6bc   :  { %v7631_v4 = vpop.f32.mrf.mxu2  ;;  %v7131_v5 = vpop.f32.mrf.mxu1  ;;  %v11259_v3 = vld [vmem:[#allocation2 + $0x1c8] sm:$0xff] }
 0x6be   :  { %v8124_v12 = vpop.f32.mrf.mxu3 }
 0x6bf   :  { %v11289_v12 = vld [vmem:[#allocation2 + $0x2e0] sm:$0xff] }
 0x6c3   :  { %10836 = vmatmul.msk.bf16.gmra.mxu3 %vm667_vm1, %v11314_v13  ;;  %v6632_v16 = vpop.f32.mrf.mxu0 }
 0x6c4   :  { %v7633_v11 = vpop.f32.mrf.mxu2  ;;  %v7134_v8 = vpop.f32.mrf.mxu1  ;;  %v6760_v48 = vadd.f32 %v6632_v16, %v12426_v28 }
 0x6c5   :  { %v11318_v11 = vld [vmem:[#allocation2 + $0x3f0] sm:$0xff] }
 0x6c6   :  { %v8127_v10 = vpop.f32.mrf.mxu3  ;;  %10394 = vmatmul.msk.bf16.gmra.mxu0 %vm667_vm1, %v11226_v6  ;;  %v7262_v38 = vadd.f32 %v7134_v8, %v6760_v48 }
 0x6c7   :  { %v8261_v19 = vadd.f32 %v8127_v10, %v7760_v15  ;;  %10542 = vmatmul.msk.bf16.gmra.mxu1 %vm667_vm1, %v11256_v17 }
 0x6c9   :  { %8318 = vst.msk [vmem:[#allocation3 + $0x20] sm:$0xff] %vm8313_vm11, %v8261_v19  ;;  %10690 = vmatmul.msk.bf16.gmra.mxu2 %vm667_vm1, %v11286_v18  ;;  %v11230_v18 = vld [vmem:[#allocation2 + $0xb8] sm:$0xff] }
 0x6cb   :  { %v6634_v55 = vpop.f32.mrf.mxu0 }
 0x6cc   :  { %v7636_v20 = vpop.f32.mrf.mxu2  ;;  %v7136_v21 = vpop.f32.mrf.mxu1  ;;  %v11260_v55 = vld [vmem:[#allocation2 + $0x1d0] sm:$0xff] }
 0x6cd   :  { %v7764_v51 = vadd.f32 %v7636_v20, %v7262_v38 }
 0x6ce   :  { %v8129_v24 = vpop.f32.mrf.mxu3 }
 0x6cf   :  { %v11290_v24 = vld [vmem:[#allocation2 + $0x2e8] sm:$0xff] }
 0x6d0   :  { %v8376_v29 = vld [vmem:[#allocation3 + $0x20] sm:$0xf] }
 0x6d1   :  { %v8377_v31 = vadd.f32 %v8376_v29, %v8370_v62  ;;  %v8378_v22 = vmul.f32 %v8376_v29, %v8376_v29  ;;  %8381 = vst.msk [vmem:[#allocation9 + $0x4] sm:$0xf] %vm8374_vm12, %v8376_v29 }
 0x6d3   :  { %10837 = vmatmul.msk.bf16.gmra.mxu3 %vm667_vm1, %v11315_v25  ;;  %v6637_v33 = vpop.f32.mrf.mxu0  ;;  %v8379_v23 = vadd.f32 %v8378_v22, %v8372_v32 }
 0x6d4   :  { %v7638_v30 = vpop.f32.mrf.mxu2  ;;  %v7139_v35 = vpop.f32.mrf.mxu1 }
 0x6d5   :  { %v11231_v30 = vld [vmem:[#allocation2 + $0xc0] sm:$0xff] }
 0x6d6   :  { %v8132_v43 = vpop.f32.mrf.mxu3  ;;  %10395 = vmatmul.msk.bf16.gmra.mxu0 %vm667_vm1, %v11227_v26  ;;  %v11319_v26 = vld [vmem:[#allocation2 + $0x3f8] sm:$0xff] }
 0x6d7   :  { %10543 = vmatmul.msk.bf16.gmra.mxu1 %vm667_vm1, %v11257_v34 }
 0x6d9   :  { %10691 = vmatmul.msk.bf16.gmra.mxu2 %vm667_vm1, %v11287_v36  ;;  %v11261_v36 = vld [vmem:[#allocation2 + $0x1d8] sm:$0xff] }
 0x6db   :  { %v6639_v42 = vpop.f32.mrf.mxu0 }
 0x6dc   :  { %v7641_v46 = vpop.f32.mrf.mxu2  ;;  %v7141_v47 = vpop.f32.mrf.mxu1 }
 0x6dd   :  { %v11291_v47 = vld [vmem:[#allocation2 + $0x2f0] sm:$0xff] }
 0x6de   :  { %v8134_v49 = vpop.f32.mrf.mxu3 }
 0x6e3   :  { %10838 = vmatmul.msk.bf16.gmra.mxu3 %vm667_vm1, %v11316_v41  ;;  %v6642_v40 = vpop.f32.mrf.mxu0 }
 0x6e4   :  { %v7643_v39 = vpop.f32.mrf.mxu2  ;;  %v7144_v27 = vpop.f32.mrf.mxu1  ;;  %v6764_v16 = vadd.f32 %v6642_v40, %v12436_v54  ;;  %v11232_v40 = vld [vmem:[#allocation2 + $0xc8] sm:$0xff] }
 0x6e5   :  { %v11262_v39 = vld [vmem:[#allocation2 + $0x1e0] sm:$0xff] }
 0x6e6   :  { %v8137_v53 = vpop.f32.mrf.mxu3  ;;  %10396 = vmatmul.msk.bf16.gmra.mxu0 %vm667_vm1, %v11228_v50  ;;  %v7266_v8 = vadd.f32 %v7144_v27, %v6764_v16  ;;  %v11264_v16 = vld [vmem:[#allocation2 + $0x1f0] sm:$0xff] }
 0x6e7   :  { %v8265_v59 = vadd.f32 %v8137_v53, %v7764_v51  ;;  %10544 = vmatmul.msk.bf16.gmra.mxu1 %vm667_vm1, %v11258_v44  ;;  %v11320_v51 = vld [vmem:[#allocation2 + $0x400] sm:$0xff]  ;;  %v11292_v53 = vld [vmem:[#allocation2 + $0x2f8] sm:$0xff] }
 0x6e9   :  { %8322 = vst.msk [vmem:[#allocation3 + $0x40] sm:$0xff] %vm8313_vm11, %v8265_v59  ;;  %10692 = vmatmul.msk.bf16.gmra.mxu2 %vm667_vm1, %v11288_v52 }
 0x6eb   :  { %v6644_v28 = vpop.f32.mrf.mxu0 }
 0x6ec   :  { %v7646_v61 = vpop.f32.mrf.mxu2  ;;  %v7146_v62 = vpop.f32.mrf.mxu1 }
 0x6ed   :  { %v7768_v10 = vadd.f32 %v7646_v61, %v7266_v8  ;;  %v11294_v8 = vld [vmem:[#allocation2 + $0x308] sm:$0xff] }
 0x6ee   :  { %v8139_v57 = vpop.f32.mrf.mxu3 }
 0x6f0   :  { %v8382_v0 = vld [vmem:[#allocation3 + $0x40] sm:$0xf] }
 0x6f1   :  { %v8383_v1 = vadd.f32 %v8382_v0, %v8377_v31  ;;  %v8384_v58 = vmul.f32 %v8382_v0, %v8382_v0  ;;  %8387 = vst.msk [vmem:[#allocation9 + $0x8] sm:$0xf] %vm8374_vm12, %v8382_v0  ;;  %v11233_v0 = vld [vmem:[#allocation2 + $0xd0] sm:$0xff] }
 0x6f3   :  { %10839 = vmatmul.msk.bf16.gmra.mxu3 %vm667_vm1, %v11317_v63  ;;  %v6647_v2 = vpop.f32.mrf.mxu0  ;;  %v8385_v4 = vadd.f32 %v8384_v58, %v8379_v23  ;;  %v11321_v63 = vld [vmem:[#allocation2 + $0x408] sm:$0xff] }
 0x6f4   :  { %v7648_v5 = vpop.f32.mrf.mxu2  ;;  %v7149_v7 = vpop.f32.mrf.mxu1  ;;  %v11263_v58 = vld [vmem:[#allocation2 + $0x1e8] sm:$0xff] }
 0x6f6   :  { %v8142_v13 = vpop.f32.mrf.mxu3  ;;  %10397 = vmatmul.msk.bf16.gmra.mxu0 %vm667_vm1, %v11229_v60 }
 0x6f7   :  { %10545 = vmatmul.msk.bf16.gmra.mxu1 %vm667_vm1, %v11259_v3  ;;  %v11293_v3 = vld [vmem:[#allocation2 + $0x300] sm:$0xff] }
 0x6f9   :  { %10693 = vmatmul.msk.bf16.gmra.mxu2 %vm667_vm1, %v11289_v12 }
 0x6fb   :  { %v6649_v14 = vpop.f32.mrf.mxu0 }
 0x6fc   :  { %v7651_v6 = vpop.f32.mrf.mxu2  ;;  %v7151_v15 = vpop.f32.mrf.mxu1  ;;  %v11322_v14 = vld [vmem:[#allocation2 + $0x410] sm:$0xff] }
 0x6fd   :  { %v11234_v6 = vld [vmem:[#allocation2 + $0xd8] sm:$0xff] }
 0x6fe   :  { %v8144_v17 = vpop.f32.mrf.mxu3 }
 0x703   :  { %10840 = vmatmul.msk.bf16.gmra.mxu3 %vm667_vm1, %v11318_v11  ;;  %v6652_v19 = vpop.f32.mrf.mxu0 }
 0x704   :  { %v7653_v20 = vpop.f32.mrf.mxu2  ;;  %v7154_v21 = vpop.f32.mrf.mxu1 }
 0x705   :  { %v11323_v21 = vld [vmem:[#allocation2 + $0x418] sm:$0xff] }
 0x706   :  { %v8147_v25 = vpop.f32.mrf.mxu3  ;;  %10398 = vmatmul.msk.bf16.gmra.mxu0 %vm667_vm1, %v11230_v18 }
 0x707   :  { %v8269_v29 = vadd.f32 %v8147_v25, %v7768_v10  ;;  %10546 = vmatmul.msk.bf16.gmra.mxu1 %vm667_vm1, %v11260_v55 }
 0x709   :  { %8326 = vst.msk [vmem:[#allocation3 + $0x60] sm:$0xff] %vm8313_vm11, %v8269_v29  ;;  %10694 = vmatmul.msk.bf16.gmra.mxu2 %vm667_vm1, %v11290_v24  ;;  %v11235_v24 = vld [vmem:[#allocation2 + $0xe0] sm:$0xff]  ;;  %v11265_v29 = vld [vmem:[#allocation2 + $0x1f8] sm:$0xff] }
 0x70b   :  { %v6654_v54 = vpop.f32.mrf.mxu0 }
 0x70c   :  { %v7656_v31 = vpop.f32.mrf.mxu2  ;;  %v7156_v32 = vpop.f32.mrf.mxu1 }
 0x70d   :  { %v11295_v32 = vld [vmem:[#allocation2 + $0x310] sm:$0xff] }
 0x70e   :  { %v8149_v22 = vpop.f32.mrf.mxu3 }
 0x710   :  { %v8388_v33 = vld [vmem:[#allocation3 + $0x60] sm:$0xf] }
 0x711   :  { %v12575_v34 = vadd.f32 %v8388_v33, %v8383_v1  ;;  %v8390_v23 = vmul.f32 %v8388_v33, %v8388_v33  ;;  %8393 = vst.msk [vmem:[#allocation9 + $0xc] sm:$0xf] %vm8374_vm12, %v8388_v33 }
 0x713   :  { %10841 = vmatmul.msk.bf16.gmra.mxu3 %vm667_vm1, %v11319_v26  ;;  %v6657_v35 = vpop.f32.mrf.mxu0  ;;  %v12579_v43 = vadd.f32 %v8390_v23, %v8385_v4 }
 0x714   :  { %v7658_v42 = vpop.f32.mrf.mxu2  ;;  %v7159_v46 = vpop.f32.mrf.mxu1  ;;  %v11324_v35 = vld [vmem:[#allocation2 + $0x420] sm:$0xff] }
 0x715   :  { %v11266_v46 = vld [vmem:[#allocation2 + $0x200] sm:$0xff] }
 0x716   :  { %v8152_v48 = vpop.f32.mrf.mxu3  ;;  %10399 = vmatmul.msk.bf16.gmra.mxu0 %vm667_vm1, %v11231_v30 }
 0x717   :  { %10547 = vmatmul.msk.bf16.gmra.mxu1 %vm667_vm1, %v11261_v36  ;;  %v11236_v36 = vld [vmem:[#allocation2 + $0xe8] sm:$0xff] }
 0x719   :  { %10695 = vmatmul.msk.bf16.gmra.mxu2 %vm667_vm1, %v11291_v47 }
 0x71b   :  { %v6659_v49 = vpop.f32.mrf.mxu0 }
 0x71c   :  { %v7661_v41 = vpop.f32.mrf.mxu2  ;;  %v7161_v38 = vpop.f32.mrf.mxu1  ;;  %v11296_v49 = vld [vmem:[#allocation2 + $0x318] sm:$0xff] }
 0x71e   :  { %v8154_v50 = vpop.f32.mrf.mxu3 }
 0x723   :  { %10842 = vmatmul.msk.bf16.gmra.mxu3 %vm667_vm1, %v11320_v51  ;;  %v6662_v44 = vpop.f32.mrf.mxu0 }
 0x724   :  { %v7663_v27 = vpop.f32.mrf.mxu2  ;;  %v7164_v52 = vpop.f32.mrf.mxu1  ;;  %v11325_v44 = vld [vmem:[#allocation2 + $0x428] sm:$0xff] }
 0x725   :  { %v11267_v52 = vld [vmem:[#allocation2 + $0x208] sm:$0xff] }
 0x726   :  { %v8157_v59 = vpop.f32.mrf.mxu3  ;;  %10400 = vmatmul.msk.bf16.gmra.mxu0 %vm667_vm1, %v11232_v40 }
 0x727   :  { %10548 = vmatmul.msk.bf16.gmra.mxu1 %vm667_vm1, %v11262_v39  ;;  %v11237_v39 = vld [vmem:[#allocation2 + $0xf0] sm:$0xff] }
 0x729   :  { %10696 = vmatmul.msk.bf16.gmra.mxu2 %vm667_vm1, %v11292_v53 }
 0x72b   :  { %v6664_v28 = vpop.f32.mrf.mxu0 }
 0x72c   :  { %v7666_v61 = vpop.f32.mrf.mxu2  ;;  %v7166_v62 = vpop.f32.mrf.mxu1  ;;  %v11297_v28 = vld [vmem:[#allocation2 + $0x320] sm:$0xff] }
 0x72e   :  { %v8159_v57 = vpop.f32.mrf.mxu3 }
 0x733   :  { %10843 = vmatmul.msk.bf16.gmra.mxu3 %vm667_vm1, %v11321_v63  ;;  %v6667_v1 = vpop.f32.mrf.mxu0 }
 0x734   :  { %v7668_v60 = vpop.f32.mrf.mxu2  ;;  %v7169_v2 = vpop.f32.mrf.mxu1 }
 0x735   :  { %v11238_v2 = vld [vmem:[#allocation2 + $0xf8] sm:$0xff] }
 0x736   :  { %v8162_v4 = vpop.f32.mrf.mxu3  ;;  %10401 = vmatmul.msk.bf16.gmra.mxu0 %vm667_vm1, %v11233_v0 }
 0x737   :  { %10549 = vmatmul.msk.bf16.gmra.mxu1 %vm667_vm1, %v11263_v58  ;;  %v11326_v58 = vld [vmem:[#allocation2 + $0x430] sm:$0xff] }
 0x739   :  { %10697 = vmatmul.msk.bf16.gmra.mxu2 %vm667_vm1, %v11293_v3 }
 0x73b   :  { %v6669_v5 = vpop.f32.mrf.mxu0 }
 0x73c   :  { %v7671_v7 = vpop.f32.mrf.mxu2  ;;  %v7171_v12 = vpop.f32.mrf.mxu1  ;;  %v11268_v5 = vld [vmem:[#allocation2 + $0x210] sm:$0xff] }
 0x73e   :  { %v8164_v13 = vpop.f32.mrf.mxu3 }
 0x73f   :  { %v11298_v13 = vld [vmem:[#allocation2 + $0x328] sm:$0xff] }
 0x743   :  { %10844 = vmatmul.msk.bf16.gmra.mxu3 %vm667_vm1, %v11322_v14  ;;  %v6672_v15 = vpop.f32.mrf.mxu0 }
 0x744   :  { %v7673_v17 = vpop.f32.mrf.mxu2  ;;  %v7174_v11 = vpop.f32.mrf.mxu1 }
 0x745   :  { %v11327_v11 = vld [vmem:[#allocation2 + $0x438] sm:$0xff] }
 0x746   :  { %v8167_v18 = vpop.f32.mrf.mxu3  ;;  %10402 = vmatmul.msk.bf16.gmra.mxu0 %vm667_vm1, %v11234_v6 }
 0x747   :  { %10550 = vmatmul.msk.bf16.gmra.mxu1 %vm667_vm1, %v11264_v16 }
 0x749   :  { %10698 = vmatmul.msk.bf16.gmra.mxu2 %vm667_vm1, %v11294_v8 }
 0x74b   :  { %v6674_v10 = vpop.f32.mrf.mxu0 }
 0x74c   :  { %v7676_v19 = vpop.f32.mrf.mxu2  ;;  %v7176_v55 = vpop.f32.mrf.mxu1 }
 0x74d   :  { %v11239_v19 = vld [vmem:[#allocation2 + $0x100] sm:$0xff] }
 0x74e   :  { %v8169_v20 = vpop.f32.mrf.mxu3 }
 0x74f   :  { %v11269_v20 = vld [vmem:[#allocation2 + $0x218] sm:$0xff] }
 0x753   :  { %10845 = vmatmul.msk.bf16.gmra.mxu3 %vm667_vm1, %v11323_v21  ;;  %v6677_v25 = vpop.f32.mrf.mxu0 }
 0x754   :  { %v7678_v54 = vpop.f32.mrf.mxu2  ;;  %v7179_v31 = vpop.f32.mrf.mxu1 }
 0x756   :  { %v8172_v22 = vpop.f32.mrf.mxu3  ;;  %10403 = vmatmul.msk.bf16.gmra.mxu0 %vm667_vm1, %v11235_v24 }
 0x757   :  { %10551 = vmatmul.msk.bf16.gmra.mxu1 %vm667_vm1, %v11265_v29  ;;  %v11299_v29 = vld [vmem:[#allocation2 + $0x330] sm:$0xff] }
 0x759   :  { %10699 = vmatmul.msk.bf16.gmra.mxu2 %vm667_vm1, %v11295_v32 }
 0x75b   :  { %v6679_v26 = vpop.f32.mrf.mxu0 }
 0x75c   :  { %v7681_v33 = vpop.f32.mrf.mxu2  ;;  %v7181_v23 = vpop.f32.mrf.mxu1 }
 0x75d   :  { %v11328_v33 = vld [vmem:[#allocation2 + $0x440] sm:$0xff] }
 0x75e   :  { %v8174_v30 = vpop.f32.mrf.mxu3 }
 0x763   :  { %10846 = vmatmul.msk.bf16.gmra.mxu3 %vm667_vm1, %v11324_v35  ;;  %v6682_v42 = vpop.f32.mrf.mxu0 }
 0x764   :  { %v7683_v47 = vpop.f32.mrf.mxu2  ;;  %v7184_v48 = vpop.f32.mrf.mxu1  ;;  %v6780_v0 = vadd.f32 %v6682_v42, %v12472_v45 }
 0x765   :  { %v11300_v47 = vld [vmem:[#allocation2 + $0x338] sm:$0xff] }
 0x766   :  { %v8177_v41 = vpop.f32.mrf.mxu3  ;;  %10404 = vmatmul.msk.bf16.gmra.mxu0 %vm667_vm1, %v11236_v36  ;;  %v7282_v60 = vadd.f32 %v7184_v48, %v6780_v0  ;;  %v11270_v36 = vld [vmem:[#allocation2 + $0x220] sm:$0xff] }
 0x767   :  { %10552 = vmatmul.msk.bf16.gmra.mxu1 %vm667_vm1, %v11266_v46 }
 0x769   :  { %10700 = vmatmul.msk.bf16.gmra.mxu2 %vm667_vm1, %v11296_v49 }
 0x76b   :  { %v6684_v38 = vpop.f32.mrf.mxu0 }
 0x76c   :  { %v7686_v50 = vpop.f32.mrf.mxu2  ;;  %v7186_v51 = vpop.f32.mrf.mxu1 }
 0x76d   :  { %v7784_v3 = vadd.f32 %v7686_v50, %v7282_v60  ;;  %v11329_v51 = vld [vmem:[#allocation2 + $0x448] sm:$0xff] }
 0x76e   :  { %v8179_v40 = vpop.f32.mrf.mxu3 }
 0x773   :  { %10847 = vmatmul.msk.bf16.gmra.mxu3 %vm667_vm1, %v11325_v44  ;;  %v6687_v27 = vpop.f32.mrf.mxu0  ;;  %v11241_v44 = vld [vmem:[#allocation2 + $0x110] sm:$0xff] }
 0x774   :  { %v7688_v53 = vpop.f32.mrf.mxu2  ;;  %v7189_v59 = vpop.f32.mrf.mxu1  ;;  %v11271_v27 = vld [vmem:[#allocation2 + $0x228] sm:$0xff] }
 0x775   :  { %v11301_v59 = vld [vmem:[#allocation2 + $0x340] sm:$0xff] }
 0x776   :  { %v8182_v61 = vpop.f32.mrf.mxu3  ;;  %10405 = vmatmul.msk.bf16.gmra.mxu0 %vm667_vm1, %v11237_v39 }
 0x777   :  { %10553 = vmatmul.msk.bf16.gmra.mxu1 %vm667_vm1, %v11267_v52 }
 0x779   :  { %10701 = vmatmul.msk.bf16.gmra.mxu2 %vm667_vm1, %v11297_v28 }
 0x77b   :  { %v6689_v62 = vpop.f32.mrf.mxu0 }
 0x77c   :  { %v7691_v57 = vpop.f32.mrf.mxu2  ;;  %v7191_v63 = vpop.f32.mrf.mxu1 }
 0x77e   :  { %v8184_v1 = vpop.f32.mrf.mxu3 }
 0x77f   :  { %v11330_v1 = vld [vmem:[#allocation2 + $0x450] sm:$0xff] }
 0x783   :  { %10848 = vmatmul.msk.bf16.gmra.mxu3 %vm667_vm1, %v11326_v58  ;;  %v6692_v4 = vpop.f32.mrf.mxu0 }
 0x784   :  { %v7693_v7 = vpop.f32.mrf.mxu2  ;;  %v7194_v12 = vpop.f32.mrf.mxu1  ;;  %v6784_v22 = vadd.f32 %v6692_v4, %v12483_v9 }
 0x786   :  { %v8187_v14 = vpop.f32.mrf.mxu3  ;;  %10406 = vmatmul.msk.bf16.gmra.mxu0 %vm667_vm1, %v11238_v2  ;;  %v7286_v23 = vadd.f32 %v7194_v12, %v6784_v22 }
 0x787   :  { %v8285_v6 = vadd.f32 %v8187_v14, %v7784_v3  ;;  %10554 = vmatmul.msk.bf16.gmra.mxu1 %vm667_vm1, %v11268_v5 }
 0x789   :  { %8342 = vst.msk [vmem:[#allocation3 + $0xe0] sm:$0xff] %vm8313_vm11, %v8285_v6  ;;  %10702 = vmatmul.msk.bf16.gmra.mxu2 %vm667_vm1, %v11298_v13 }
 0x78b   :  { %v6694_v45 = vpop.f32.mrf.mxu0 }
 0x78c   :  { %v7696_v15 = vpop.f32.mrf.mxu2  ;;  %v7196_v16 = vpop.f32.mrf.mxu1  ;;  %v11331_v45 = vld [vmem:[#allocation2 + $0x458] sm:$0xff] }
 0x78d   :  { %v7788_v30 = vadd.f32 %v7696_v15, %v7286_v23 }
 0x78e   :  { %v8189_v17 = vpop.f32.mrf.mxu3 }
 0x790   :  { %v8394_v8 = vld [vmem:[#allocation3 + $0xe0] sm:$0xf] }
 0x791   :  { %v12615_v18 = vadd.f32 %v8394_v8, %v12575_v34  ;;  %v8396_v10 = vmul.f32 %v8394_v8, %v8394_v8  ;;  %8399 = vst.msk [vmem:[#allocation9 + $0x10] sm:$0xf] %vm8374_vm12, %v8394_v8 }
 0x793   :  { %10849 = vmatmul.msk.bf16.gmra.mxu3 %vm667_vm1, %v11327_v11  ;;  %v6697_v55 = vpop.f32.mrf.mxu0  ;;  %v12620_v21 = vadd.f32 %v8396_v10, %v12579_v43  ;;  %v11240_v43 = vld [vmem:[#allocation2 + $0x108] sm:$0xff] }
 0x794   :  { %v7698_v24 = vpop.f32.mrf.mxu2  ;;  %v7199_v25 = vpop.f32.mrf.mxu1 }
 0x796   :  { %v8192_v54 = vpop.f32.mrf.mxu3  ;;  %10407 = vmatmul.msk.bf16.gmra.mxu0 %vm667_vm1, %v11239_v19 }
 0x797   :  { %10555 = vmatmul.msk.bf16.gmra.mxu1 %vm667_vm1, %v11269_v20 }
 0x799   :  { %10703 = vmatmul.msk.bf16.gmra.mxu2 %vm667_vm1, %v11299_v29 }
 0x79b   :  { %v6699_v34 = vpop.f32.mrf.mxu0 }
 0x79c   :  { %v7701_v31 = vpop.f32.mrf.mxu2  ;;  %v7201_v32 = vpop.f32.mrf.mxu1 }
 0x79e   :  { %v8194_v26 = vpop.f32.mrf.mxu3 }
 0x7a3   :  { %10850 = vmatmul.msk.bf16.gmra.mxu3 %vm667_vm1, %v11328_v33  ;;  %v6702_v35 = vpop.f32.mrf.mxu0 }
 0x7a4   :  { %v7703_v42 = vpop.f32.mrf.mxu2  ;;  %v7204_v46 = vpop.f32.mrf.mxu1  ;;  %v6788_v63 = vadd.f32 %v6702_v35, %v12494_v37 }
 0x7a6   :  { %v8197_v48 = vpop.f32.mrf.mxu3  ;;  %10408 = vmatmul.msk.bf16.gmra.mxu0 %vm667_vm1, %v11240_v43  ;;  %v7290_v58 = vadd.f32 %v7204_v46, %v6788_v63 }
 0x7a7   :  { %v8289_v49 = vadd.f32 %v8197_v48, %v7788_v30  ;;  %10556 = vmatmul.msk.bf16.gmra.mxu1 %vm667_vm1, %v11270_v36 }
 0x7a9   :  { %8346 = vst.msk [vmem:[#allocation3 + $0x100] sm:$0xff] %vm8313_vm11, %v8289_v49  ;;  %10704 = vmatmul.msk.bf16.gmra.mxu2 %vm667_vm1, %v11300_v47 }
 0x7ab   :  { %v6704_v9 = vpop.f32.mrf.mxu0 }
 0x7ac   :  { %v7706_v41 = vpop.f32.mrf.mxu2  ;;  %v7206_v38 = vpop.f32.mrf.mxu1 }
 0x7ad   :  { %v7792_v60 = vadd.f32 %v7706_v41, %v7290_v58 }
 0x7ae   :  { %v8199_v50 = vpop.f32.mrf.mxu3 }
 0x7b0   :  { %v8400_v40 = vld [vmem:[#allocation3 + $0x100] sm:$0xf] }
 0x7b1   :  { %8405 = vst.msk [vmem:[#allocation9 + $0x14] sm:$0xf] %vm8374_vm12, %v8400_v40  ;;  %v8402_v22 = vmul.f32 %v8400_v40, %v8400_v40  ;;  %v8401_v33 = vadd.f32 %v8400_v40, %v12615_v18 }
 0x7b3   :  { %10851 = vmatmul.msk.bf16.gmra.mxu3 %vm667_vm1, %v11329_v51  ;;  %v6707_v39 = vpop.f32.mrf.mxu0  ;;  %v8403_v35 = vadd.f32 %v8402_v22, %v12620_v21 }
 0x7b4   :  { %v7708_v52 = vpop.f32.mrf.mxu2  ;;  %v7209_v53 = vpop.f32.mrf.mxu1 }
 0x7b6   :  { %v8202_v28 = vpop.f32.mrf.mxu3  ;;  %10409 = vmatmul.msk.bf16.gmra.mxu0 %vm667_vm1, %v11241_v44 }
 0x7b7   :  { %10557 = vmatmul.msk.bf16.gmra.mxu1 %vm667_vm1, %v11271_v27 }
 0x7b9   :  { %10705 = vmatmul.msk.bf16.gmra.mxu2 %vm667_vm1, %v11301_v59 }
 0x7bb   :  { %v6709_v61 = vpop.f32.mrf.mxu0 }
 0x7bc   :  { %v7711_v62 = vpop.f32.mrf.mxu2  ;;  %v7211_v57 = vpop.f32.mrf.mxu1 }
 0x7be   :  { %v8204_v0 = vpop.f32.mrf.mxu3 }
 0x7c3   :  { %10852 = vmatmul.msk.bf16.gmra.mxu3 %vm667_vm1, %v11330_v1  ;;  %v6712_v2 = vpop.f32.mrf.mxu0 }
 0x7c4   :  { %v7713_v3 = vpop.f32.mrf.mxu2  ;;  %v7214_v4 = vpop.f32.mrf.mxu1  ;;  %v6792_v19 = vadd.f32 %v6712_v2, %v12504_v56 }
 0x7c6   :  { %v8207_v5 = vpop.f32.mrf.mxu3  ;;  %v7294_v24 = vadd.f32 %v7214_v4, %v6792_v19 }
 0x7c7   :  { %v8293_v7 = vadd.f32 %v8207_v5, %v7792_v60 }
 0x7c9   :  { %8350 = vst.msk [vmem:[#allocation3 + $0x120] sm:$0xff] %vm8313_vm11, %v8293_v7 }
 0x7cb   :  { %v6714_v12 = vpop.f32.mrf.mxu0 }
 0x7cc   :  { %v7716_v13 = vpop.f32.mrf.mxu2  ;;  %v7216_v14 = vpop.f32.mrf.mxu1 }
 0x7cd   :  { %v7796_v25 = vadd.f32 %v7716_v13, %v7294_v24 }
 0x7ce   :  { %v8209_v6 = vpop.f32.mrf.mxu3 }
 0x7d0   :  { %v8406_v15 = vld [vmem:[#allocation3 + $0x120] sm:$0xf] }
 0x7d1   :  { %8411 = vst.msk [vmem:[#allocation9 + $0x18] sm:$0xf] %vm8374_vm12, %v8406_v15  ;;  %v8408_v56 = vmul.f32 %v8406_v15, %v8406_v15  ;;  %v8407_v30 = vadd.f32 %v8406_v15, %v8401_v33 }
 0x7d3   :  { %10853 = vmatmul.msk.bf16.gmra.mxu3 %vm667_vm1, %v11331_v45  ;;  %v6717_v37 = vpop.f32.mrf.mxu0  ;;  %v8409_v46 = vadd.f32 %v8408_v56, %v8403_v35 }
 0x7d4   :  { %v7718_v16 = vpop.f32.mrf.mxu2  ;;  %v7219_v17 = vpop.f32.mrf.mxu1 }
 0x7d6   :  { %v8212_v11 = vpop.f32.mrf.mxu3 }
 0x7db   :  { %v6719_v8 = vpop.f32.mrf.mxu0 }
 0x7dc   :  { %v7721_v10 = vpop.f32.mrf.mxu2  ;;  %v7221_v20 = vpop.f32.mrf.mxu1 }
 0x7de   :  { %v8214_v55 = vpop.f32.mrf.mxu3 }
 0x7e3   :  { %v6722_v54 = vpop.f32.mrf.mxu0 }
 0x7e4   :  { %v7723_v29 = vpop.f32.mrf.mxu2  ;;  %v7224_v32 = vpop.f32.mrf.mxu1 }
 0x7e6   :  { %v8217_v34 = vpop.f32.mrf.mxu3 }
 0x7e7   :  { %v8297_v31 = vadd.f32 %v8217_v34, %v7796_v25 }
 0x7e9   :  { %8354 = vst.msk [vmem:[#allocation3 + $0x140] sm:$0xff] %vm8313_vm11, %v8297_v31 }
 0x7eb   :  { %v6724_v43 = vpop.f32.mrf.mxu0 }
 0x7ec   :  { %v7726_v26 = vpop.f32.mrf.mxu2  ;;  %v7226_v18 = vpop.f32.mrf.mxu1 }
 0x7ee   :  { %v8219_v23 = vpop.f32.mrf.mxu3 }
 0x7f0   :  { %v8412_v36 = vld [vmem:[#allocation3 + $0x140] sm:$0xf] }
 0x7f1   :  { %v8413_v42 = vadd.f32 %v8412_v36, %v8407_v30  ;;  %v8414_v47 = vmul.f32 %v8412_v36, %v8412_v36  ;;  %8417 = vst.msk [vmem:[#allocation9 + $0x1c] sm:$0xf] %vm8374_vm12, %v8412_v36 }
 0x7f2   :  { %8447 = dma.vmem_to_hbm [thread:$0]  %s8440_s1, 512, %s8442_s11, [#allocation6], %s11478_s7, %s11478_s7, %s11479_s8  }
 0x7f3   :  { %v8418_v48 = vsel %vm8374_vm12, %v8413_v42, 0.0  ;;  %v8415_v49 = vadd.f32 %v8414_v47, %v8409_v46  ;;  %v6727_v40 = vpop.f32.mrf.mxu0 }
 0x7f4   :  { %v7728_v9 = vpop.f32.mrf.mxu2  ;;  %v8419_v41 = vrot.slane %v8418_v48, 4  ;;  %v7229_v28 = vpop.f32.mrf.mxu1 }
 0x7f5   :  { %v8427_v21 = vsel %vm8374_vm12, %v8415_v49, 0.0 }
 0x7f6   :  { %v8222_v38 = vpop.f32.mrf.mxu3  ;;  %v8420_v50 = vadd.f32 %v8419_v41, %v8418_v48  ;;  %v8428_v51 = vrot.slane %v8427_v21, 4 }
 0x7f8   :  { %v8421_v44 = vrot.slane %v8420_v50, 2  ;;  %v8429_v39 = vadd.f32 %v8428_v51, %v8427_v21 }
 0x7fa   :  { %v8422_v27 = vadd.f32 %v8421_v44, %v8420_v50  ;;  %v8430_v52 = vrot.slane %v8429_v39, 2 }
 0x7fb   :  { %v6729_v1 = vpop.f32.mrf.mxu0 }
 0x7fc   :  { %v8423_v53 = vrot.slane %v8422_v27, 1  ;;  %v8431_v59 = vadd.f32 %v8430_v52, %v8429_v39  ;;  %v7731_v62 = vpop.f32.mrf.mxu2  ;;  %v7231_v60 = vpop.f32.mrf.mxu1 }
 0x7fe   :  { %v8224_v61 = vpop.f32.mrf.mxu3  ;;  %v8424_v57 = vadd.f32 %v8423_v53, %v8422_v27  ;;  %v8432_v63 = vrot.slane %v8431_v59, 1 }
 0x800   :  { %8426 = vst.msk [vmem:[#allocation10] sm:$0x1] %vm8425_vm13, %v8424_v57  ;;  %v8433_v0 = vadd.f32 %v8432_v63, %v8431_v59 }
 0x801   :  { %8458 = dma.vmem_to_hbm [thread:$0]  %s8454_s12, 16, %s8456_s15, [#allocation11]  }
 0x802   :  { %8434 = vst.msk [vmem:[#allocation12] sm:$0x1] %vm8425_vm13, %v8433_v0 }
 0x803   :  { %8469 = dma.vmem_to_hbm [thread:$0]  %s8465_s17, 16, %s8467_s20, [#allocation11]   ;;  %v6732_v3 = vpop.f32.mrf.mxu0 }
 0x804   :  { %v7733_v2 = vpop.f32.mrf.mxu2  ;;  %v7234_v5 = vpop.f32.mrf.mxu1 }
 0x806   :  { %v8227_v58 = vpop.f32.mrf.mxu3 }
 0x80b   :  { %v6734_v13 = vpop.f32.mrf.mxu0 }
 0x80c   :  { %v7736_v7 = vpop.f32.mrf.mxu2  ;;  %v7236_v14 = vpop.f32.mrf.mxu1 }
 0x80e   :  { %v8229_v4 = vpop.f32.mrf.mxu3 }
 0x813   :  { %v6737_v15 = vpop.f32.mrf.mxu0 }
 0x814   :  { %v7738_v6 = vpop.f32.mrf.mxu2  ;;  %v7239_v37 = vpop.f32.mrf.mxu1 }
 0x816   :  { %v8232_v12 = vpop.f32.mrf.mxu3 }
 0x81b   :  { %v6739_v11 = vpop.f32.mrf.mxu0 }
 0x81c   :  { %v7741_v17 = vpop.f32.mrf.mxu2  ;;  %v7241_v10 = vpop.f32.mrf.mxu1 }
 0x81e   :  { %v8234_v45 = vpop.f32.mrf.mxu3 }
 0x823   :  { %v6742_v55 = vpop.f32.mrf.mxu0 }
 0x824   :  { %v7743_v19 = vpop.f32.mrf.mxu2  ;;  %v7244_v24 = vpop.f32.mrf.mxu1 }
 0x826   :  { %v8237_v16 = vpop.f32.mrf.mxu3 }
 0x82b   :  { %v6744_v54 = vpop.f32.mrf.mxu0 }
 0x82c   :  { %v7746_v25 = vpop.f32.mrf.mxu2  ;;  %v7246_v34 = vpop.f32.mrf.mxu1 }
 0x82e   :  { %v8239_v8 = vpop.f32.mrf.mxu3 }
 0x833   :  { %v6747_v22 = vpop.f32.mrf.mxu0 }
 0x834   :  { %v7748_v31 = vpop.f32.mrf.mxu2  ;;  %v7249_v26 = vpop.f32.mrf.mxu1 }
 0x836   :  { %v8242_v20 = vpop.f32.mrf.mxu3 }
 0x83b   :  { %v6749_v23 = vpop.f32.mrf.mxu0 }
 0x83c   :  { %v7751_v56 = vpop.f32.mrf.mxu2  ;;  %v7251_v30 = vpop.f32.mrf.mxu1 }
 0x83e   :  { %v8244_v29 = vpop.f32.mrf.mxu3 }
 0x844   :  { %v7753_v35 = vpop.f32.mrf.mxu2 }
 0x846   :  { %v8247_v32 = vpop.f32.mrf.mxu3 }
 0x84e   :  { %v8249_v33 = vpop.f32.mrf.mxu3 }
 0x856   :  { %v8252_v43 = vpop.f32.mrf.mxu3 }
 0x85e   :  { %v8254_v36 = vpop.f32.mrf.mxu3 }
 0x85f   :  { %11470 = dma.done.wait [#allocation6], 512  }
 0x860   :  { %11471 = vsyncadd [#allocation6], 4294966784 }
 0x861   :  { %11472 = dma.done.wait [#allocation11], 32  }
 0x862   :  { %11473 = vsyncadd [#allocation11], 4294967264 }
 0x863   :  { %8482 = vsyncpa [#allocation5], 1 }
 0x864   :  { %8483 = vsyncpa [#allocation8], 1 }
 0x865   :  { %8484 = vsyncpa [#allocation6], 1 }
 0x866   :  { %8485 = vsyncpa [#allocation11], 1 }

</bundles_post_ra>
